<compile_context>
chip_gen: v7x
topology: tpu7x:2x2x1
jax: 0.10.0
libtpu: 0.0.40
codegen_flags: <defaults>
</compile_context>

<pallas_src>
import jax
import jax.numpy as jnp
from jax import lax
from jax.experimental import pallas as pl
from jax.experimental.pallas import tpu as pltpu


def down_kernel(x_ref, w1_ref, s1_ref, b1_ref, w2_ref, s2_ref, b2_ref,
                out_ref):
    Hp, _, Wp, _, Cin = x_ref.shape          # (Hp, 2, Wp, 2, Cin)
    Cout = w2_ref.shape[1]
    HW = Hp * Wp

    # Flattened-(h, w) edge masks, shape (HW, 1); hoisted once, broadcast
    # over channels in both convolutions.
    col_id = lax.broadcasted_iota(jnp.int32, (Hp, Wp, 1), 1).reshape(HW, 1)
    row_id = lax.broadcasted_iota(jnp.int32, (Hp, Wp, 1), 0).reshape(HW, 1)
    first_col = col_id == 0
    last_col = col_id == Wp - 1
    first_row = row_id == 0
    last_row = row_id == Hp - 1

    # ---- 2x2 max pool: reduce the two stride-2 phase axes ----
    x5 = x_ref[...]                                   # (Hp, 2, Wp, 2, Cin) f32
    pooled = jnp.max(jnp.max(x5, axis=3), axis=1)     # (Hp, Wp, Cin)
    pooled = pooled.reshape(HW, Cin)                  # flatten (h, w) -> rows

    def conv3x3_bn_relu(x2, w_ref, s_ref, b_ref):
        # x2: (HW, C) f32.  Build the (HW, 9C) im2col slab with rolls on the
        # flattened row axis (wrap positions land exactly on the masked edge
        # columns/rows, so they are zeroed), then one bf16 MXU matmul with
        # f32 accumulation, folded BN affine and ReLU in f32.
        # Column taps (kx = 0, 2); kx = 1 is x2 itself.
        left = jnp.where(first_col, 0.0, pltpu.roll(x2, 1, axis=0))
        right = jnp.where(last_col, 0.0, pltpu.roll(x2, HW - 1, axis=0))
        mid = jnp.concatenate([left, x2, right], axis=-1)        # (HW, 3C)
        # Row taps (ky = 0, 2) = roll by one full row of Wp flattened entries.
        up_taps = jnp.where(first_row, 0.0, pltpu.roll(mid, Wp, axis=0))
        dn_taps = jnp.where(last_row, 0.0, pltpu.roll(mid, HW - Wp, axis=0))
        taps = jnp.concatenate([up_taps, mid, dn_taps],
                               axis=-1).astype(jnp.bfloat16)     # (HW, 9C)
        acc = jnp.dot(taps, w_ref[...],
                      preferred_element_type=jnp.float32)        # (HW, Co) f32
        return jnp.maximum(acc * s_ref[...] + b_ref[...], 0.0)

    h1 = conv3x3_bn_relu(pooled, w1_ref, s1_ref, b1_ref)   # (HW, Cmid)
    h2 = conv3x3_bn_relu(h1, w2_ref, s2_ref, b2_ref)       # (HW, Cout)

    out_ref[...] = h2.reshape(Hp, Wp, Cout).astype(out_ref.dtype)


def down_forward(x_nchw, wt1, g1, be1, m1, v1, wt2, g2, be2, m2, v2, eps=1e-5):
    """x_nchw: (N, Cin, H, W) f32; conv weights in PyTorch OIHW layout,
    BatchNorm params as (gamma, beta, running_mean, running_var). H, W must
    be even (MaxPool2d(2))."""
    N, Cin, H, W = x_nchw.shape
    Hp, Wp = H // 2, W // 2
    Cmid = wt1.shape[0]
    Cout = wt2.shape[0]

    # NCHW -> NHWC -> (N, Hp, 2, Wp, 2, Cin).  The 6-D reshape is free
    # (row-major) and lets the kernel consume x with ONE DMA per batch
    # element; the 2x2 pool phases are reduced inside the kernel.
    x6 = jnp.transpose(x_nchw, (0, 2, 3, 1)).reshape(N, Hp, 2, Wp, 2, Cin)

    # Fold eval-mode BN into per-channel scale/bias; reshape conv weights to
    # the im2col layout (9*Cin, Cout) with (ky, kx, cin) row order; cast the
    # matmul operands to bf16 for the MXU (accumulation stays f32).
    def fold(wt, g, be, m, v):
        s = g / jnp.sqrt(v + eps)
        b = be - m * s
        w = jnp.transpose(wt, (2, 3, 1, 0)).reshape(9 * wt.shape[1],
                                                    wt.shape[0])
        return (w.astype(jnp.bfloat16),
                s.reshape(1, -1).astype(jnp.float32),
                b.reshape(1, -1).astype(jnp.float32))

    w1, s1, b1 = fold(wt1, g1, be1, m1, v1)
    w2, s2, b2 = fold(wt2, g2, be2, m2, v2)

    def full(shape):
        return pl.BlockSpec(shape, lambda n: tuple(0 for _ in shape))

    out_nhwc = pl.pallas_call(
        down_kernel,
        out_shape=jax.ShapeDtypeStruct((N, Hp, Wp, Cout), jnp.float32),
        grid=(N,),
        in_specs=[
            pl.BlockSpec((None, Hp, 2, Wp, 2, Cin),
                         lambda n: (n, 0, 0, 0, 0, 0)),
            full((9 * Cin, Cmid)), full((1, Cmid)), full((1, Cmid)),
            full((9 * Cmid, Cout)), full((1, Cout)), full((1, Cout)),
        ],
        out_specs=pl.BlockSpec((None, Hp, Wp, Cout), lambda n: (n, 0, 0, 0)),
        compiler_params=pltpu.CompilerParams(
            dimension_semantics=("parallel",),      # shard batch over TCs (v7x)
            vmem_limit_bytes=64 * 1024 * 1024),
    )(x6, w1, s1, b1, w2, s2, b2)

    return jnp.transpose(out_nhwc, (0, 3, 1, 2))      # NHWC -> NCHW


# ---------------- pure-JAX reference (mirrors the PyTorch module) ----------
def ref_down(x, wt1, g1, be1, m1, v1, wt2, g2, be2, m2, v2, eps=1e-5):
    pooled = lax.reduce_window(x, -jnp.inf, lax.max,
                               (1, 1, 2, 2), (1, 1, 2, 2), 'VALID')

    def conv_bn_relu(y, wt, g, be, m, v):
        y = lax.conv_general_dilated(
            y, wt, window_strides=(1, 1), padding='SAME',
            dimension_numbers=('NCHW', 'OIHW', 'NCHW'),
            precision=lax.Precision.HIGHEST)
        scale = (g / jnp.sqrt(v + eps))[None, :, None, None]
        shift = (be - m * g / jnp.sqrt(v + eps))[None, :, None, None]
        return jnp.maximum(y * scale + shift, 0.0)

    y = conv_bn_relu(pooled, wt1, g1, be1, m1, v1)
    return conv_bn_relu(y, wt2, g2, be2, m2, v2)


if __name__ == "__main__":
    N, Cin, H, W = 2, 4, 16, 16
    Cout = 8
    Cmid = Cout                      # DoubleConv default: mid = out
    eps = 1e-5

    key = jax.random.PRNGKey(0)
    ks = jax.random.split(key, 11)

    # deterministic synthetic parameters (PyTorch layouts)
    wt1 = jax.random.normal(ks[0], (Cmid, Cin, 3, 3), jnp.float32) * 0.2
    g1 = jax.random.uniform(ks[1], (Cmid,), minval=0.5, maxval=1.5)
    be1 = jax.random.normal(ks[2], (Cmid,)) * 0.1
    m1 = jax.random.normal(ks[3], (Cmid,)) * 0.1
    v1 = jax.random.uniform(ks[4], (Cmid,), minval=0.5, maxval=1.5)

    wt2 = jax.random.normal(ks[5], (Cout, Cmid, 3, 3), jnp.float32) * 0.2
    g2 = jax.random.uniform(ks[6], (Cout,), minval=0.5, maxval=1.5)
    be2 = jax.random.normal(ks[7], (Cout,)) * 0.1
    m2 = jax.random.normal(ks[8], (Cout,)) * 0.1
    v2 = jax.random.uniform(ks[9], (Cout,), minval=0.5, maxval=1.5)

    x = jax.random.normal(ks[10], (N, Cin, H, W), jnp.float32)

    out = down_forward(x, wt1, g1, be1, m1, v1, wt2, g2, be2, m2, v2, eps=eps)
    out = jax.block_until_ready(out)

    ref = ref_down(x, wt1, g1, be1, m1, v1, wt2, g2, be2, m2, v2, eps=eps)
    ref = jax.block_until_ready(ref)

    assert out.shape == (N, Cout, H // 2, W // 2), out.shape
    # bf16 MXU operands vs. f32 HIGHEST-precision reference -> 5e-2 tolerance.
    assert jnp.allclose(out, ref, atol=5e-2, rtol=5e-2), (
        float(jnp.max(jnp.abs(out - ref))))

    print("KERNEL_OK")
</pallas_src>

<mosaic_0001>
module attributes {stable_mosaic.version = 11 : i64} {
  func.func @down_kernel(%arg0: i32, %arg1: memref<1x8x2x8x2x4xf32, #tpu.memory_space<vmem>>, %arg2: memref<36x8xbf16, #tpu.memory_space<vmem>>, %arg3: memref<1x8xf32, #tpu.memory_space<vmem>>, %arg4: memref<1x8xf32, #tpu.memory_space<vmem>>, %arg5: memref<72x8xbf16, #tpu.memory_space<vmem>>, %arg6: memref<1x8xf32, #tpu.memory_space<vmem>>, %arg7: memref<1x8xf32, #tpu.memory_space<vmem>>, %arg8: memref<1x8x8x8xf32, #tpu.memory_space<vmem>>) attributes {dimension_semantics = [#tpu.dimension_semantics<parallel>], iteration_bounds = array<i64: 2>, scalar_prefetch = 0 : i64, scratch_operands = 0 : i64, tpu.core_type = #tpu.core_type<tc>, window_params = [{transform_indices = @transform_0, window_bounds = array<i64: 1, 8, 2, 8, 2, 4>}, {pipeline_mode = #tpu.pipeline_mode<synchronous>, transform_indices = @transform_1, window_bounds = array<i64: 36, 8>}, {pipeline_mode = #tpu.pipeline_mode<synchronous>, transform_indices = @transform_2, window_bounds = array<i64: 1, 8>}, {pipeline_mode = #tpu.pipeline_mode<synchronous>, transform_indices = @transform_3, window_bounds = array<i64: 1, 8>}, {pipeline_mode = #tpu.pipeline_mode<synchronous>, transform_indices = @transform_4, window_bounds = array<i64: 72, 8>}, {pipeline_mode = #tpu.pipeline_mode<synchronous>, transform_indices = @transform_5, window_bounds = array<i64: 1, 8>}, {pipeline_mode = #tpu.pipeline_mode<synchronous>, transform_indices = @transform_6, window_bounds = array<i64: 1, 8>}, {transform_indices = @transform_7, window_bounds = array<i64: 1, 8, 8, 8>}]} {
    %0 = tpu.iota {dimensions = array<i32: 1>} : vector<8x8x1xi32>
    %1 = vector.shape_cast %0 : vector<8x8x1xi32> to vector<64x1xi32>
    %2 = tpu.iota {dimensions = array<i32: 0>} : vector<8x8x1xi32>
    %3 = vector.shape_cast %2 : vector<8x8x1xi32> to vector<64x1xi32>
    %c0_i32 = arith.constant 0 : i32
    %4 = vector.broadcast %c0_i32 : i32 to vector<64x1xi32>
    %5 = arith.cmpi eq, %1, %4 : vector<64x1xi32>
    %c7_i32 = arith.constant 7 : i32
    %6 = vector.broadcast %c7_i32 : i32 to vector<64x1xi32>
    %7 = arith.cmpi eq, %1, %6 : vector<64x1xi32>
    %c0_i32_0 = arith.constant 0 : i32
    %8 = vector.broadcast %c0_i32_0 : i32 to vector<64x1xi32>
    %9 = arith.cmpi eq, %3, %8 : vector<64x1xi32>
    %c7_i32_1 = arith.constant 7 : i32
    %10 = vector.broadcast %c7_i32_1 : i32 to vector<64x1xi32>
    %11 = arith.cmpi eq, %3, %10 : vector<64x1xi32>
    %c0 = arith.constant 0 : index
    %c0_2 = arith.constant 0 : index
    %c0_3 = arith.constant 0 : index
    %c0_4 = arith.constant 0 : index
    %c0_5 = arith.constant 0 : index
    %c0_6 = arith.constant 0 : index
    %12 = vector.load %arg1[%c0, %c0_2, %c0_3, %c0_4, %c0_5, %c0_6] : memref<1x8x2x8x2x4xf32, #tpu.memory_space<vmem>>, vector<1x8x2x8x2x4xf32>
    %13 = vector.shape_cast %12 : vector<1x8x2x8x2x4xf32> to vector<8x2x8x2x4xf32>
    %cst = arith.constant dense<0xFF800000> : vector<8x2x8x4xf32>
    %14 = vector.multi_reduction <maximumf>, %13, %cst [3] : vector<8x2x8x2x4xf32> to vector<8x2x8x4xf32>
    %cst_7 = arith.constant dense<0xFF800000> : vector<8x8x4xf32>
    %15 = vector.multi_reduction <maximumf>, %14, %cst_7 [1] : vector<8x2x8x4xf32> to vector<8x8x4xf32>
    %16 = vector.shape_cast %15 : vector<8x8x4xf32> to vector<64x4xf32>
    %c1_i32 = arith.constant 1 : i32
    %17 = tpu.dynamic_rotate %16 by %c1_i32 dim 0 : vector<64x4xf32>, i32 -> vector<64x4xf32>
    %cst_8 = arith.constant 0.000000e+00 : f32
    %18 = vector.shape_cast %5 : vector<64x1xi1> to vector<64x1xi1>
    %19 = vector.broadcast %18 : vector<64x1xi1> to vector<64x4xi1>
    %20 = vector.broadcast %cst_8 : f32 to vector<64x4xf32>
    %21 = arith.select %19, %20, %17 : vector<64x4xi1>, vector<64x4xf32>
    %c63_i32 = arith.constant 63 : i32
    %22 = tpu.dynamic_rotate %16 by %c63_i32 dim 0 : vector<64x4xf32>, i32 -> vector<64x4xf32>
    %cst_9 = arith.constant 0.000000e+00 : f32
    %23 = vector.shape_cast %7 : vector<64x1xi1> to vector<64x1xi1>
    %24 = vector.broadcast %23 : vector<64x1xi1> to vector<64x4xi1>
    %25 = vector.broadcast %cst_9 : f32 to vector<64x4xf32>
    %26 = arith.select %24, %25, %22 : vector<64x4xi1>, vector<64x4xf32>
    %27 = tpu.concatenate %21, %16, %26 in 1 : vector<64x4xf32>, vector<64x4xf32>, vector<64x4xf32> -> vector<64x12xf32>
    %c8_i32 = arith.constant 8 : i32
    %28 = tpu.dynamic_rotate %27 by %c8_i32 dim 0 : vector<64x12xf32>, i32 -> vector<64x12xf32>
    %cst_10 = arith.constant 0.000000e+00 : f32
    %29 = vector.shape_cast %9 : vector<64x1xi1> to vector<64x1xi1>
    %30 = vector.broadcast %29 : vector<64x1xi1> to vector<64x12xi1>
    %31 = vector.broadcast %cst_10 : f32 to vector<64x12xf32>
    %32 = arith.select %30, %31, %28 : vector<64x12xi1>, vector<64x12xf32>
    %c56_i32 = arith.constant 56 : i32
    %33 = tpu.dynamic_rotate %27 by %c56_i32 dim 0 : vector<64x12xf32>, i32 -> vector<64x12xf32>
    %cst_11 = arith.constant 0.000000e+00 : f32
    %34 = vector.shape_cast %11 : vector<64x1xi1> to vector<64x1xi1>
    %35 = vector.broadcast %34 : vector<64x1xi1> to vector<64x12xi1>
    %36 = vector.broadcast %cst_11 : f32 to vector<64x12xf32>
    %37 = arith.select %35, %36, %33 : vector<64x12xi1>, vector<64x12xf32>
    %38 = tpu.concatenate %32, %27, %37 in 1 : vector<64x12xf32>, vector<64x12xf32>, vector<64x12xf32> -> vector<64x36xf32>
    %39 = arith.truncf %38 : vector<64x36xf32> to vector<64x36xbf16>
    %c0_12 = arith.constant 0 : index
    %c0_13 = arith.constant 0 : index
    %40 = vector.load %arg2[%c0_12, %c0_13] : memref<36x8xbf16, #tpu.memory_space<vmem>>, vector<36x8xbf16>
    %cst_14 = arith.constant dense<0.000000e+00> : vector<64x8xf32>
    %41 = tpu.matmul %39, %40, %cst_14 {dimension_numbers = #tpu.dot_dimension_numbers<[1], [0], [0], [1], [0, 0, 1, 1], [], []>} : vector<64x36xbf16>, vector<36x8xbf16>, vector<64x8xf32> -> vector<64x8xf32>
    %c0_15 = arith.constant 0 : index
    %c0_16 = arith.constant 0 : index
    %42 = vector.load %arg3[%c0_15, %c0_16] : memref<1x8xf32, #tpu.memory_space<vmem>>, vector<1x8xf32>
    %43 = vector.broadcast %42 : vector<1x8xf32> to vector<64x8xf32>
    %44 = arith.mulf %41, %43 : vector<64x8xf32>
    %c0_17 = arith.constant 0 : index
    %c0_18 = arith.constant 0 : index
    %45 = vector.load %arg4[%c0_17, %c0_18] : memref<1x8xf32, #tpu.memory_space<vmem>>, vector<1x8xf32>
    %46 = vector.broadcast %45 : vector<1x8xf32> to vector<64x8xf32>
    %47 = arith.addf %44, %46 : vector<64x8xf32>
    %cst_19 = arith.constant 0.000000e+00 : f32
    %48 = vector.broadcast %cst_19 : f32 to vector<64x8xf32>
    %49 = arith.maximumf %47, %48 : vector<64x8xf32>
    %c1_i32_20 = arith.constant 1 : i32
    %50 = tpu.dynamic_rotate %49 by %c1_i32_20 dim 0 : vector<64x8xf32>, i32 -> vector<64x8xf32>
    %cst_21 = arith.constant 0.000000e+00 : f32
    %51 = vector.shape_cast %5 : vector<64x1xi1> to vector<64x1xi1>
    %52 = vector.broadcast %51 : vector<64x1xi1> to vector<64x8xi1>
    %53 = vector.broadcast %cst_21 : f32 to vector<64x8xf32>
    %54 = arith.select %52, %53, %50 : vector<64x8xi1>, vector<64x8xf32>
    %c63_i32_22 = arith.constant 63 : i32
    %55 = tpu.dynamic_rotate %49 by %c63_i32_22 dim 0 : vector<64x8xf32>, i32 -> vector<64x8xf32>
    %cst_23 = arith.constant 0.000000e+00 : f32
    %56 = vector.shape_cast %7 : vector<64x1xi1> to vector<64x1xi1>
    %57 = vector.broadcast %56 : vector<64x1xi1> to vector<64x8xi1>
    %58 = vector.broadcast %cst_23 : f32 to vector<64x8xf32>
    %59 = arith.select %57, %58, %55 : vector<64x8xi1>, vector<64x8xf32>
    %60 = tpu.concatenate %54, %49, %59 in 1 : vector<64x8xf32>, vector<64x8xf32>, vector<64x8xf32> -> vector<64x24xf32>
    %c8_i32_24 = arith.constant 8 : i32
    %61 = tpu.dynamic_rotate %60 by %c8_i32_24 dim 0 : vector<64x24xf32>, i32 -> vector<64x24xf32>
    %cst_25 = arith.constant 0.000000e+00 : f32
    %62 = vector.shape_cast %9 : vector<64x1xi1> to vector<64x1xi1>
    %63 = vector.broadcast %62 : vector<64x1xi1> to vector<64x24xi1>
    %64 = vector.broadcast %cst_25 : f32 to vector<64x24xf32>
    %65 = arith.select %63, %64, %61 : vector<64x24xi1>, vector<64x24xf32>
    %c56_i32_26 = arith.constant 56 : i32
    %66 = tpu.dynamic_rotate %60 by %c56_i32_26 dim 0 : vector<64x24xf32>, i32 -> vector<64x24xf32>
    %cst_27 = arith.constant 0.000000e+00 : f32
    %67 = vector.shape_cast %11 : vector<64x1xi1> to vector<64x1xi1>
    %68 = vector.broadcast %67 : vector<64x1xi1> to vector<64x24xi1>
    %69 = vector.broadcast %cst_27 : f32 to vector<64x24xf32>
    %70 = arith.select %68, %69, %66 : vector<64x24xi1>, vector<64x24xf32>
    %71 = tpu.concatenate %65, %60, %70 in 1 : vector<64x24xf32>, vector<64x24xf32>, vector<64x24xf32> -> vector<64x72xf32>
    %72 = arith.truncf %71 : vector<64x72xf32> to vector<64x72xbf16>
    %c0_28 = arith.constant 0 : index
    %c0_29 = arith.constant 0 : index
    %73 = vector.load %arg5[%c0_28, %c0_29] : memref<72x8xbf16, #tpu.memory_space<vmem>>, vector<72x8xbf16>
    %cst_30 = arith.constant dense<0.000000e+00> : vector<64x8xf32>
    %74 = tpu.matmul %72, %73, %cst_30 {dimension_numbers = #tpu.dot_dimension_numbers<[1], [0], [0], [1], [0, 0, 1, 1], [], []>} : vector<64x72xbf16>, vector<72x8xbf16>, vector<64x8xf32> -> vector<64x8xf32>
    %c0_31 = arith.constant 0 : index
    %c0_32 = arith.constant 0 : index
    %75 = vector.load %arg6[%c0_31, %c0_32] : memref<1x8xf32, #tpu.memory_space<vmem>>, vector<1x8xf32>
    %76 = vector.broadcast %75 : vector<1x8xf32> to vector<64x8xf32>
    %77 = arith.mulf %74, %76 : vector<64x8xf32>
    %c0_33 = arith.constant 0 : index
    %c0_34 = arith.constant 0 : index
    %78 = vector.load %arg7[%c0_33, %c0_34] : memref<1x8xf32, #tpu.memory_space<vmem>>, vector<1x8xf32>
    %79 = vector.broadcast %78 : vector<1x8xf32> to vector<64x8xf32>
    %80 = arith.addf %77, %79 : vector<64x8xf32>
    %cst_35 = arith.constant 0.000000e+00 : f32
    %81 = vector.broadcast %cst_35 : f32 to vector<64x8xf32>
    %82 = arith.maximumf %80, %81 : vector<64x8xf32>
    %83 = vector.shape_cast %82 : vector<64x8xf32> to vector<8x8x8xf32>
    %c0_36 = arith.constant 0 : index
    %c0_37 = arith.constant 0 : index
    %c0_38 = arith.constant 0 : index
    %c0_39 = arith.constant 0 : index
    %84 = vector.load %arg8[%c0_36, %c0_37, %c0_38, %c0_39] : memref<1x8x8x8xf32, #tpu.memory_space<vmem>>, vector<1x8x8x8xf32>
    %85 = vector.shape_cast %84 : vector<1x8x8x8xf32> to vector<8x8x8xf32>
    %86 = vector.shape_cast %83 : vector<8x8x8xf32> to vector<1x8x8x8xf32>
    tpu.vector_store %arg8[%c0_36, %c0_37, %c0_38, %c0_39], %86 {strides = array<i32>} : memref<1x8x8x8xf32, #tpu.memory_space<vmem>>, vector<1x8x8x8xf32>,
    return
  }
  func.func @transform_0(%arg0: i32) -> (i32, i32, i32, i32, i32, i32) {
    %c0_i32 = arith.constant 0 : i32
    %c0_i32_0 = arith.constant 0 : i32
    %c0_i32_1 = arith.constant 0 : i32
    %c0_i32_2 = arith.constant 0 : i32
    %c0_i32_3 = arith.constant 0 : i32
    %c0_i32_4 = arith.constant 0 : i32
    return %arg0, %c0_i32, %c0_i32_0, %c0_i32_1, %c0_i32_2, %c0_i32_3 : i32, i32, i32, i32, i32, i32
  }
  func.func @transform_1(%arg0: i32) -> (i32, i32) {
    %c0_i32 = arith.constant 0 : i32
    %c0_i32_0 = arith.constant 0 : i32
    %c0_i32_1 = arith.constant 0 : i32
    return %c0_i32, %c0_i32_0 : i32, i32
  }
  func.func @transform_2(%arg0: i32) -> (i32, i32) {
    %c0_i32 = arith.constant 0 : i32
    %c0_i32_0 = arith.constant 0 : i32
    %c0_i32_1 = arith.constant 0 : i32
    return %c0_i32, %c0_i32_0 : i32, i32
  }
  func.func @transform_3(%arg0: i32) -> (i32, i32) {
    %c0_i32 = arith.constant 0 : i32
    %c0_i32_0 = arith.constant 0 : i32
    %c0_i32_1 = arith.constant 0 : i32
    return %c0_i32, %c0_i32_0 : i32, i32
  }
  func.func @transform_4(%arg0: i32) -> (i32, i32) {
    %c0_i32 = arith.constant 0 : i32
    %c0_i32_0 = arith.constant 0 : i32
    %c0_i32_1 = arith.constant 0 : i32
    return %c0_i32, %c0_i32_0 : i32, i32
  }
  func.func @transform_5(%arg0: i32) -> (i32, i32) {
    %c0_i32 = arith.constant 0 : i32
    %c0_i32_0 = arith.constant 0 : i32
    %c0_i32_1 = arith.constant 0 : i32
    return %c0_i32, %c0_i32_0 : i32, i32
  }
  func.func @transform_6(%arg0: i32) -> (i32, i32) {
    %c0_i32 = arith.constant 0 : i32
    %c0_i32_0 = arith.constant 0 : i32
    %c0_i32_1 = arith.constant 0 : i32
    return %c0_i32, %c0_i32_0 : i32, i32
  }
  func.func @transform_7(%arg0: i32) -> (i32, i32, i32, i32) {
    %c0_i32 = arith.constant 0 : i32
    %c0_i32_0 = arith.constant 0 : i32
    %c0_i32_1 = arith.constant 0 : i32
    %c0_i32_2 = arith.constant 0 : i32
    return %arg0, %c0_i32, %c0_i32_0, %c0_i32_1 : i32, i32, i32, i32
  }
}

</mosaic_0001>

<bundles_post_ra>
// kernel: tpu_custom_call.1
= control target key start
LH: loop header
LB: loop body
LE: loop exit
PB: predicated region body
PF: predicated region fallthrough
CT: control target
= control target key end

     0   :  { %12 = vsyncpa [#allocation3], 0  ;;  %s4789_s0 = inlined_call_operand.hbm [shape: f32[2,8,2,8,2,4], index: 0, kind: input, shape index: {}]   ;;  %s4790_s1 = inlined_call_operand.hbm [shape: bf16[36,8], index: 1, kind: input, shape index: {}]   ;;  %s4791_s2 = inlined_call_operand.hbm [shape: f32[1,8], index: 2, kind: input, shape index: {}]   ;;  %s4792_s3 = inlined_call_operand.hbm [shape: f32[1,8], index: 3, kind: input, shape index: {}]   ;;  %s4793_s4 = inlined_call_operand.hbm [shape: bf16[72,8], index: 4, kind: input, shape index: {}]   ;;  %s4794_s5 = inlined_call_operand.hbm [shape: f32[1,8], index: 5, kind: input, shape index: {}]   ;;  %s4795_s6 = inlined_call_operand.hbm [shape: f32[1,8], index: 6, kind: input, shape index: {}]   ;;  %s4796_s7 = inlined_call_operand.hbm [shape: f32[2,8,8,8], index: 7, kind: output, shape index: {}]  }
   0x1   :  { %14 = vsyncpa [#allocation3 + $0x1], 0 }
   0x2   :  { %15 = vsyncpa [#allocation6], 0 }
   0x3   :  { %16 = vsyncpa [#allocation9], 0 }
   0x4   :  { %17 = vsyncpa [#allocation12], 0 }
   0x5   :  { %18 = vsyncpa [#allocation4], 0 }
   0x6   :  { %20 = vsyncpa [#allocation4 + $0x1], 0  ;;  %s3307_s24 = smov 0   ;;  %s3309_s25 = smov 0  }
   0x7   :  { %s3311_s26 = smov 0   ;;  %s3313_s27 = smov 0  }
   0x8 LB: > { %s3247_s28 = smov [#allocation5]   ;;  %s3328_s30 = sadd.s32 4294967295, %s3245_s27   ;;  %s3245_s27 = sphi %s3313_s27, %s4838_s27   ;;  %s3241_s26 = sphi %s3311_s26, %s4837_s26   ;;  %s3237_s25 = sphi %s3309_s25, %s4836_s25   ;;  %s3233_s24 = sphi %s3307_s24, %s4835_s24  }
   0x9   : > { %s221_s29 = sshll.u32 %s3247_s28, 4  ;;  %p2595_p0 = scmp.ge.s32.totalorder %s3245_s27, 1  ;;  %s3333_s29 = int_to_ptr.vmem [resolvable:$true] %s221_s29 }
   0xa   : > { %p4797_p1 = scmp.eq.s32.totalorder %s3328_s30, 0  ;;  %p209_p2 = scmp.lt.s32.totalorder %s3245_s27, 3 }
   0xb   : > { %s3248_s9 = smov [#allocation8]   ;;  %s3249_s12 = smov [#allocation11]  }
   0xc   : > { %p3335_p3 = pnand %p2595_p0, %p209_p2  ;;  %s246_s10 = sshll.u32 %s3248_s9, 4  ;;  %s3348_s10 = int_to_ptr.vmem [resolvable:$true] %s246_s10 }
   0xd   : > { %s270_s13 = sshll.u32 %s3249_s12, 4  ;;  %s2969_s16 = scalar_lea.hbm %s4790_s1, 320  ;;  %s3350_s13 = int_to_ptr.vmem [resolvable:$true] %s270_s13 }
   0xe   : > { %s4802_s8 = scalar_select %p3335_p3, 1, 0 }
   0xf   : > { %p2720_p5 = pneg %p3335_p3  ;;  %p2970_p7 = scmp.ne.s32.totalorder %s4790_s1, %s2969_s16 }
  0x10   : > { %p2976_p11 = scmp.lt.u32.totalorder %s2969_s16, %s4790_s1 }
  0x11   : > { %p3344_p6 = pnand %p2720_p5, %p4797_p1 }
  0x13   : > { %p3360_p8 = pneg %p3344_p6 }
  0x15   : > { %p2972_p9 = pnand %p3360_p8, %p2970_p7 }
  0x17   : > { %p2973_p10 = pneg %p2972_p9 }
  0x19   : > { %p2978_p12 = pnand %p2976_p11, %p2973_p10 }
  0x1b   : > { %2981 = shalt.err (!%p2978_p12)
}
  0x1c   : > { %s2982_s22 = scalar_lea.vmem %s3333_s29, 320  ;;  %p2990_p5 = scmp.lt.s32.totalorder %s3333_s29, %s3333_s29 }
  0x1d   : > { %p2983_p13 = scmp.ne.s32.totalorder %s3333_s29, %s2982_s22  ;;  %p2991_p4 = scmp.lt.s32.totalorder %s2982_s22, %s2982_s22 }
  0x1f   : > { %p2985_p0 = pnand %p2983_p13, %p3360_p8  ;;  %p2992_p7 = por %p2991_p4, %p2990_p5 }
  0x21   : > { %p2986_p2 = pneg %p2985_p0 }
  0x23   : > { %p2993_p9 = pnand %p2992_p7, %p2986_p2 }
  0x25   : > { %2996 = shalt.err (!%p2993_p9)
}
  0x26   : > { %s3250_s23 = smov 64   ;;  %s3251_s28 = smov 4  }
  0x27   : > { %2723 = dma.hbm_to_vmem [thread:$0]  (!%p3344_p6), %s4790_s1, 320, %s3333_s29, [#allocation6], %s3250_s23, %s3250_s23, %s3251_s28  }
  0x28   : > { %s2997_s16 = scalar_lea.hbm %s4792_s3, 16 }
  0x29   : > { %p2998_p4 = scmp.ne.s32.totalorder %s4792_s3, %s2997_s16  ;;  %p3004_p12 = scmp.lt.u32.totalorder %s2997_s16, %s4792_s3 }
  0x2b   : > { %p3000_p10 = pnand %p2998_p4, %p3360_p8 }
  0x2d   : > { %p3001_p11 = pneg %p3000_p10 }
  0x2f   : > { %p3006_p13 = pnand %p3004_p12, %p3001_p11 }
  0x31   : > { %3009 = shalt.err (!%p3006_p13)
}
  0x32   : > { %s3010_s29 = scalar_lea.vmem %s3348_s10, 16  ;;  %s3017_s22 = scalar_lea.vmem %s3348_s10, 32 }
  0x33   : > { %p3011_p0 = scmp.ne.s32.totalorder %s3348_s10, %s3010_s29  ;;  %p3018_p7 = scmp.lt.s32.totalorder %s3348_s10, %s3348_s10 }
  0x34   : > { %p3019_p9 = scmp.lt.s32.totalorder %s3017_s22, %s3010_s29 }
  0x35   : > { %p3013_p2 = pnand %p3011_p0, %p3360_p8 }
  0x36   : > { %p3020_p4 = por %p3019_p9, %p3018_p7 }
  0x37   : > { %p3014_p5 = pneg %p3013_p2 }
  0x39   : > { %p3021_p10 = pnand %p3020_p4, %p3014_p5 }
  0x3b   : > { %3024 = shalt.err (!%p3021_p10)
}
  0x3c   : > { %2729 = dma.hbm_to_vmem [thread:$0]  (!%p3344_p6), %s4792_s3, 16, %s3348_s10, [#allocation9]  }
  0x3d   : > { %s3025_s16 = scalar_lea.hbm %s4794_s5, 16 }
  0x3e   : > { %p3026_p11 = scmp.ne.s32.totalorder %s4794_s5, %s3025_s16  ;;  %p3032_p0 = scmp.lt.u32.totalorder %s3025_s16, %s4794_s5 }
  0x40   : > { %p3028_p12 = pnand %p3026_p11, %p3360_p8 }
  0x42   : > { %p3029_p13 = pneg %p3028_p12 }
  0x44   : > { %p3034_p2 = pnand %p3032_p0, %p3029_p13 }
  0x46   : > { %3037 = shalt.err (!%p3034_p2)
}
  0x47   : > { %s3038_s10 = scalar_lea.vmem %s3350_s13, 16  ;;  %s3045_s29 = scalar_lea.vmem %s3350_s13, 32 }
  0x48   : > { %p3039_p5 = scmp.ne.s32.totalorder %s3350_s13, %s3038_s10  ;;  %p3046_p4 = scmp.lt.s32.totalorder %s3350_s13, %s3350_s13 }
  0x49   : > { %p3047_p10 = scmp.lt.s32.totalorder %s3045_s29, %s3038_s10 }
  0x4a   : > { %p3041_p7 = pnand %p3039_p5, %p3360_p8 }
  0x4b   : > { %p3048_p11 = por %p3047_p10, %p3046_p4 }
  0x4c   : > { %p3042_p9 = pneg %p3041_p7 }
  0x4e   : > { %p3049_p12 = pnand %p3048_p11, %p3042_p9 }
  0x50   : > { %3052 = shalt.err (!%p3049_p12)
}
  0x51   : > { %2735 = dma.hbm_to_vmem [thread:$0]  (!%p3344_p6), %s4794_s5, 16, %s3350_s13, [#allocation12]  }
  0x52   : > { %s3252_s12 = smov [#allocation7]   ;;  %s3253_s15 = smov [#allocation10]  }
  0x53   : > { %s235_s14 = sshll.u32 %s3252_s12, 4  ;;  %s256_s16 = sshll.u32 %s3253_s15, 4  ;;  %s236_s14 = int_to_ptr.vmem [resolvable:$true] %s235_s14  ;;  %s257_s16 = int_to_ptr.vmem [resolvable:$true] %s256_s16 }
  0x54   : > { %s3053_s20 = scalar_lea.hbm %s4791_s2, 16 }
  0x55   : > { %p3054_p13 = scmp.ne.s32.totalorder %s4791_s2, %s3053_s20  ;;  %p3060_p5 = scmp.lt.u32.totalorder %s3053_s20, %s4791_s2 }
  0x57   : > { %p3056_p0 = pnand %p3054_p13, %p3360_p8 }
  0x59   : > { %p3057_p2 = pneg %p3056_p0 }
  0x5b   : > { %p3062_p7 = pnand %p3060_p5, %p3057_p2 }
  0x5d   : > { %3065 = shalt.err (!%p3062_p7)
}
  0x5e   : > { %s3066_s13 = scalar_lea.vmem %s236_s14, 16  ;;  %s3073_s9 = scalar_lea.vmem %s236_s14, 32 }
  0x5f   : > { %p3067_p9 = scmp.ne.s32.totalorder %s236_s14, %s3066_s13  ;;  %p3074_p11 = scmp.lt.s32.totalorder %s236_s14, %s236_s14 }
  0x60   : > { %p3075_p12 = scmp.lt.s32.totalorder %s3073_s9, %s3066_s13 }
  0x61   : > { %p3069_p4 = pnand %p3067_p9, %p3360_p8 }
  0x62   : > { %p3076_p1 = por %p3075_p12, %p3074_p11 }
  0x63   : > { %p3070_p10 = pneg %p3069_p4 }
  0x65   : > { %p3077_p3 = pnand %p3076_p1, %p3070_p10 }
  0x67   : > { %3080 = shalt.err (!%p3077_p3)
}
  0x68   : > { %2726 = dma.hbm_to_vmem [thread:$0]  (!%p3344_p6), %s4791_s2, 16, %s236_s14, [#allocation6]  }
  0x69   : > { %s3081_s20 = scalar_lea.hbm %s4793_s4, 576 }
  0x6a   : > { %p3082_p13 = scmp.ne.s32.totalorder %s4793_s4, %s3081_s20  ;;  %p3088_p3 = scmp.lt.u32.totalorder %s3081_s20, %s4793_s4 }
  0x6c   : > { %p3084_p0 = pnand %p3082_p13, %p3360_p8 }
  0x6e   : > { %p3085_p1 = pneg %p3084_p0 }
  0x70   : > { %p3090_p2 = pnand %p3088_p3, %p3085_p1 }
  0x72   : > { %3093 = shalt.err (!%p3090_p2)
}
  0x73   : > { %s3094_s13 = scalar_lea.vmem %s257_s16, 576  ;;  %p3102_p4 = scmp.lt.s32.totalorder %s257_s16, %s257_s16 }
  0x74   : > { %p3095_p5 = scmp.ne.s32.totalorder %s257_s16, %s3094_s13  ;;  %p3103_p10 = scmp.lt.s32.totalorder %s3094_s13, %s3094_s13 }
  0x76   : > { %p3097_p7 = pnand %p3095_p5, %p3360_p8  ;;  %p3104_p11 = por %p3103_p10, %p3102_p4 }
  0x78   : > { %p3098_p9 = pneg %p3097_p7 }
  0x7a   : > { %p3105_p12 = pnand %p3104_p11, %p3098_p9 }
  0x7c   : > { %3108 = shalt.err (!%p3105_p12)
}
  0x7d   : > { %2732 = dma.hbm_to_vmem [thread:$0]  (!%p3344_p6), %s4793_s4, 576, %s257_s16, [#allocation9], %s3250_s23, %s3250_s23, %s3251_s28  }
  0x7e   : > { %s3254_s12 = smov [#allocation13]   ;;  %s3109_s20 = scalar_lea.hbm %s4795_s6, 16 }
  0x7f   : > { %s281_s15 = sshll.u32 %s3254_s12, 4  ;;  %p3110_p13 = scmp.ne.s32.totalorder %s4795_s6, %s3109_s20  ;;  %s282_s15 = int_to_ptr.vmem [resolvable:$true] %s281_s15 }
  0x80   : > { %p3116_p3 = scmp.lt.u32.totalorder %s3109_s20, %s4795_s6 }
  0x81   : > { %p3112_p0 = pnand %p3110_p13, %p3360_p8 }
  0x83   : > { %p3113_p1 = pneg %p3112_p0 }
  0x85   : > { %p3118_p2 = pnand %p3116_p3, %p3113_p1 }
  0x87   : > { %3121 = shalt.err (!%p3118_p2)
}
  0x88   : > { %s3122_s23 = scalar_lea.vmem %s282_s15, 16  ;;  %s3129_s28 = scalar_lea.vmem %s282_s15, 32 }
  0x89   : > { %p3123_p5 = scmp.ne.s32.totalorder %s282_s15, %s3122_s23  ;;  %p3130_p4 = scmp.lt.s32.totalorder %s282_s15, %s282_s15 }
  0x8a   : > { %p3131_p10 = scmp.lt.s32.totalorder %s3129_s28, %s3122_s23 }
  0x8b   : > { %p3125_p7 = pnand %p3123_p5, %p3360_p8 }
  0x8c   : > { %p3132_p11 = por %p3131_p10, %p3130_p4 }
  0x8d   : > { %p3126_p9 = pneg %p3125_p7 }
  0x8f   : > { %p3133_p12 = pnand %p3132_p11, %p3126_p9 }
  0x91   : > { %3136 = shalt.err (!%p3133_p12)
}
  0x92   : > { %2738 = dma.hbm_to_vmem [thread:$0]  (!%p3344_p6), %s4795_s6, 16, %s282_s15, [#allocation12]  }
  0x93   : > { %s2594_s19 = sadd.s32 4294967294, %s3245_s27   ;;  %s3491_s11 = sadd.s32 1, %s3245_s27  }
  0x94   : > { %s30_s14 = ssub.s32 %s3245_s27, %s3491_s11  ;;  %s33_s9 = sadd.s32 1, %s3241_s26 }
  0x95   : > { %p31_p8 = scmp.eq.s32.totalorder %s30_s14, 0  ;;  %p40_p13 = scmp.ne.s32.totalorder %s3241_s26, %s3237_s25 }
  0x96   : > { %p41_p0 = scmp.eq.s32.totalorder %s3245_s27, 0  ;;  %p46_p1 = scmp.ne.s32.totalorder %s3237_s25, %s3233_s24 }
  0x97   : > { %s3502_s12 = scalar_select %p31_p8, %s3241_s26, %s33_s9  }
  0x98   : > { %p3504_p3 = por %p41_p0, %p40_p13  ;;  %p4806_p2 = scmp.eq.s32.totalorder %s3328_s30, 0 }
  0x99   : > { %p196_p5 = scmp.eq.s32.totalorder %s3328_s30, 1  ;;  %p202_p7 = scmp.eq.s32.totalorder %s2594_s19, 1 }
  0x9a   : > { %p3510_p6 = por %p4806_p2, %p46_p1  ;;  %p2753_p9 = scmp.lt.s32.totalorder %s3245_s27, 2 }
  0x9b   : > { %s292_s18 = sand.u32 1, %s3241_s26   ;;  %p3517_p4 = por %p196_p5, %p40_p13 }
  0x9c   : > { %p3521_p10 = por %p202_p7, %p46_p1  ;;  %s2603_s10 = sshll.u32 %s292_s18, 8 }
  0x9d   : > { %s4808_s20 = scalar_select %p3517_p4, 1, 0 }
  0x9e   : > { %s4809_s21 = scalar_select %p3521_p10, 1, 0 }
  0x9f   : > { %s2640_s29 = sshll.u32 %s3245_s27, 12  ;;  %s296_s16 = scalar_lea.vmem [#allocation2], %s2603_s10 }
  0xa0   : > { %s3529_s28 = scalar_lea.hbm %s4789_s0, %s2640_s29  ;;  %s303_s13 = sshll.u32 %s296_s16, 4  ;;  %s3531_s13 = int_to_ptr.vmem [resolvable:$true] %s303_s13 }
  0xa1   : > { %p3535_p11 = pnand %p2753_p9, %p3504_p3  ;;  %s3539_s14 = scalar_lea.sflag [#allocation3], %s292_s18 }
  0xa2   : > { %s3137_s9 = scalar_lea.hbm %s3529_s28, 4096  ;;  %s3142_s17 = scalar_lea.hbm %s4789_s0, 8192 }
  0xa3   : > { %p3138_p12 = scmp.ne.s32.totalorder %s3529_s28, %s3137_s9  ;;  %p3139_p8 = pneg %p3535_p11 }
  0xa4   : > { %p3143_p1 = scmp.lt.u32.totalorder %s3529_s28, %s4789_s0  ;;  %p3144_p3 = scmp.lt.u32.totalorder %s3142_s17, %s3137_s9 }
  0xa5   : > { %p3140_p13 = pnand %p3139_p8, %p3138_p12  ;;  %p3146_p5 = scmp.lt.u32.totalorder %s3137_s9, %s3529_s28 }
  0xa6   : > { %p3145_p2 = por %p3144_p3, %p3143_p1 }
  0xa7   : > { %p3141_p0 = pneg %p3140_p13 }
  0xa8   : > { %p3147_p7 = por %p3146_p5, %p3145_p2 }
  0xaa   : > { %p3148_p9 = pnand %p3147_p7, %p3141_p0 }
  0xac   : > { %3151 = shalt.err (!%p3148_p9)
}
  0xad   : > { %s3152_s18 = scalar_lea.vmem %s3531_s13, 4096  ;;  %s3255_s16 = smov [#allocation2]  }
  0xae   : > { %p3153_p12 = scmp.ne.s32.totalorder %s3531_s13, %s3152_s18  ;;  %s3157_s10 = sshll.u32 %s3255_s16, 4  ;;  %s3158_s10 = int_to_ptr.vmem [resolvable:$false] %s3157_s10 }
  0xaf   : > { %s3159_s29 = scalar_lea.vmem %s3158_s10, 8192  ;;  %p3160_p4 = scmp.lt.s32.totalorder %s3531_s13, %s3158_s10 }
  0xb0   : > { %p3155_p13 = pnand %p3153_p12, %p3139_p8  ;;  %p3161_p1 = scmp.lt.s32.totalorder %s3159_s29, %s3152_s18 }
  0xb2   : > { %p3156_p10 = pneg %p3155_p13  ;;  %p3162_p3 = por %p3161_p1, %p3160_p4 }
  0xb4   : > { %p3163_p2 = pnand %p3162_p3, %p3156_p10 }
  0xb6   : > { %3166 = shalt.err (!%p3163_p2)
}
  0xb7   : > { %s3256_s9 = smov 32   ;;  %s3257_s17 = smov 2  }
  0xb8   : > { %2742 = dma.hbm_to_vmem [thread:$0]  (!%p3535_p11), %s3529_s28, 4096, %s3531_s13, %s3539_s14, %s3256_s9, %s3256_s9, %s3257_s17  }
  0xb9   : > { %p4811_p8 = scmp.ne.s32.totalorder %s4802_s8, 0 }
  0xba   : > { %s3570_s22 = sand.u32 (!%p4811_p8), 1, %s3237_s25  }
  0xbb   : > { %315 = sbr.rel (%p4811_p8) target bundleno = 1471 (0x5bf), region = 48  ;;  %s2607_s23 = sshll.u32 (!%p4811_p8), %s3570_s22, 8 }
  0xbc   : > { %s318_s18 = scalar_lea.sflag (!%p4811_p8), [#allocation3], %s3570_s22  ;;  %s3574_s16 = scalar_lea.vmem (!%p4811_p8), [#allocation2], %s2607_s23 }
  0xc2   : > { %3212 = dma.done.wait (%p3510_p6), %s318_s18, 4096  }
  0xc3   : > { %3214 = vsyncadd (%p3510_p6), %s318_s18, 4294963200  ;;  %p4812_p4 = scmp.eq.s32.totalorder %s3328_s30, 0 }
  0xc5   : > { %3216 = dma.done.wait (%p4812_p4), [#allocation6], 336   ;;  %p4813_p10 = pmov %p4812_p4 }
  0xc6   : > { %p4814_p11 = pmov %p4812_p4 }
  0xc7   : > { %3218 = vsyncadd (%p4813_p10), [#allocation6], 4294966960 }
  0xc8   : > { %3220 = dma.done.wait (%p4814_p11), [#allocation9], 592   ;;  %p4815_p0 = pmov %p4812_p4 }
  0xca   : > { %3222 = vsyncadd (%p4815_p0), [#allocation9], 4294966704  ;;  %p4816_p5 = pmov %p4815_p0 }
  0xcb   : > { %p4817_p7 = pmov %p4815_p0 }
  0xcc   : > { %3224 = dma.done.wait (%p4816_p5), [#allocation12], 32  }
  0xcd   : > { %3226 = vsyncadd (%p4817_p7), [#allocation12], 4294967264  ;;  %v445_v0 = vld [vmem:[%s3574_s16 + $0x80] sm:$0x3]  ;;  %v446_v1 = vld [vmem:[%s3574_s16 + $0x82] sm:$0x3] }
  0xce   : > { %vm509_vm0 = vcmask 25600   ;;  %v447_v2 = vld [vmem:[%s3574_s16 + $0x84] sm:$0x3]  ;;  %v448_v3 = vld [vmem:[%s3574_s16 + $0x86] sm:$0x3]  ;;  %vm1406_vm1 = vcmask 31744  }
  0xcf   : > { %v449_v4 = vld [vmem:[%s3574_s16 + $0x88] sm:$0x3]  ;;  %v450_v5 = vld [vmem:[%s3574_s16 + $0x8a] sm:$0x3]  ;;  %v451_v6 = vld [vmem:[%s3574_s16 + $0x8c] sm:$0x3] }
  0xd0   : > { %v958_v7 = vsel %vm509_vm0, %v445_v0, -inf  ;;  %v965_v8 = vsel %vm509_vm0, %v446_v1, -inf  ;;  %v452_v9 = vld [vmem:[%s3574_s16 + $0x8e] sm:$0x3]  ;;  %v972_v12 = vsel %vm509_vm0, %v447_v2, -inf  ;;  %v979_v13 = vsel %vm509_vm0, %v448_v3, -inf }
  0xd1   : > { %v959_v10 = vrot.slane %v958_v7, 4  ;;  %v966_v11 = vrot.slane %v965_v8, 4  ;;  %v973_v14 = vrot.slane %v972_v12, 4  ;;  %v980_v15 = vrot.slane %v979_v13, 4  ;;  %v453_v42 = vld [vmem:[%s3574_s16 + $0x90] sm:$0x3] }
  0xd2   : > { %v986_v16 = vsel %vm509_vm0, %v449_v4, -inf  ;;  %v993_v17 = vsel %vm509_vm0, %v450_v5, -inf  ;;  %v1000_v24 = vsel %vm509_vm0, %v451_v6, -inf  ;;  %v1007_v25 = vsel %vm509_vm0, %v452_v9, -inf  ;;  %v454_v47 = vld [vmem:[%s3574_s16 + $0x92] sm:$0x3] }
  0xd3   : > { %v960_v18 = vmax.f32 %v958_v7, %v959_v10  ;;  %v967_v19 = vmax.f32 %v965_v8, %v966_v11  ;;  %v987_v20 = vrot.slane %v986_v16, 4  ;;  %v994_v21 = vrot.slane %v993_v17, 4  ;;  %v455_v52 = vld [vmem:[%s3574_s16 + $0x94] sm:$0x3]  ;;  %v456_v57 = vld [vmem:[%s3574_s16 + $0x96] sm:$0x3] }
  0xd4   : > { %v974_v22 = vmax.f32 %v972_v12, %v973_v14  ;;  %v981_v23 = vmax.f32 %v979_v13, %v980_v15  ;;  %v1001_v32 = vrot.slane %v1000_v24, 4  ;;  %v1008_v33 = vrot.slane %v1007_v25, 4  ;;  %v457_v58 = vld [vmem:[%s3574_s16 + $0x98] sm:$0x3]  ;;  %v458_v59 = vld [vmem:[%s3574_s16 + $0x9a] sm:$0x3] }
  0xd5   : > { %v961_v26 = vrot.slane %v960_v18, 2  ;;  %v968_v27 = vrot.slane %v967_v19, 2  ;;  %v988_v28 = vmax.f32 %v986_v16, %v987_v20  ;;  %v995_v29 = vmax.f32 %v993_v17, %v994_v21  ;;  %v459_v4 = vld [vmem:[%s3574_s16 + $0x9c] sm:$0x3]  ;;  %v460_v9 = vld [vmem:[%s3574_s16 + $0x9e] sm:$0x3] }
  0xd6   : > { %v975_v30 = vrot.slane %v974_v22, 2  ;;  %v982_v31 = vrot.slane %v981_v23, 2  ;;  %v1002_v40 = vmax.f32 %v1000_v24, %v1001_v32  ;;  %v1009_v41 = vmax.f32 %v1007_v25, %v1008_v33  ;;  %s3258_s8 = smov 4   ;;  %s3259_s15 = smov 8  }
  0xd7   : > { %v962_v34 = vmax.f32 %v960_v18, %v961_v26  ;;  %v969_v35 = vmax.f32 %v967_v19, %v968_v27  ;;  %v989_v36 = vrot.slane %v988_v28, 2  ;;  %v996_v37 = vrot.slane %v995_v29, 2  ;;  %s3260_s28 = smov 12   ;;  %s3261_s13 = smov 24  }
  0xd8   : > { %v976_v38 = vmax.f32 %v974_v22, %v975_v30  ;;  %v983_v39 = vmax.f32 %v981_v23, %v982_v31  ;;  %v1003_v50 = vrot.slane %v1002_v40, 2  ;;  %v1010_v51 = vrot.slane %v1009_v41, 2  ;;  %s3263_s19 = smov 16   ;;  %s3264_s14 = smov 48  }
  0xd9   : > { %v963_v43 = vrot.slane %v962_v34, 1  ;;  %v970_v44 = vrot.slane %v969_v35, 1  ;;  %v990_v45 = vmax.f32 %v988_v28, %v989_v36  ;;  %v997_v46 = vmax.f32 %v995_v29, %v996_v37  ;;  %s2614_s10 = sshll.u32 %s3570_s22, 6  ;;  %s2641_s9 = sshll.u32 %s3328_s30, 10 }
  0xda   : > { %v977_v48 = vrot.slane %v976_v38, 1  ;;  %v984_v49 = vrot.slane %v983_v39, 1  ;;  %v1004_v62 = vmax.f32 %v1002_v40, %v1003_v50  ;;  %v1011_v63 = vmax.f32 %v1009_v41, %v1010_v51  ;;  %s375_s29 = scalar_lea.vmem [#allocation14], %s2614_s10  ;;  %s2451_s30 = scalar_lea.sflag [#allocation4], %s3570_s22 }
  0xdb   : > { %v3611_v53 = vmax.f32 %v962_v34, %v963_v43  ;;  %v3613_v54 = vmax.f32 %v969_v35, %v970_v44  ;;  %v991_v55 = vrot.slane %v990_v45, 1  ;;  %v998_v56 = vrot.slane %v997_v46, 1  ;;  %v462_v43 = vld [vmem:[%s3574_s16 + $0xa2] sm:$0x3]  ;;  %s2464_s17 = sshll.u32 %s375_s29, 4  ;;  %p4832_p9 = scmp.ne.s32.totalorder %s4808_s20, 0  ;;  %s4742_s17 = int_to_ptr.vmem [resolvable:$true] %s2464_s17 }
  0xdc   : > { %v3618_v60 = vmax.f32 %v976_v38, %v977_v48  ;;  %v3620_v61 = vmax.f32 %v983_v39, %v984_v49  ;;  %v1014_v2 = vsel %vm509_vm0, %v453_v42, -inf  ;;  %v1021_v3 = vsel %vm509_vm0, %v454_v47, -inf  ;;  %v461_v42 = vld [vmem:[%s3574_s16 + $0xa0] sm:$0x3]  ;;  %v463_v48 = vld [vmem:[%s3574_s16 + $0xa4] sm:$0x3] }
  0xdd   : > { %v3622_v0 = vmax.f32 %v990_v45, %v991_v55  ;;  %v3624_v1 = vmax.f32 %v997_v46, %v998_v56  ;;  %v1005_v5 = vrot.slane %v1004_v62, 1  ;;  %v1012_v6 = vrot.slane %v1011_v63, 1  ;;  %v464_v55 = vld [vmem:[%s3574_s16 + $0xa6] sm:$0x3] }
  0xde   : > { %v1015_v7 = vrot.slane %v1014_v2, 4  ;;  %v1022_v8 = vrot.slane %v1021_v3, 4  ;;  %v1028_v10 = vsel %vm509_vm0, %v455_v52, -inf  ;;  %v1035_v11 = vsel %vm509_vm0, %v456_v57, -inf }
  0xdf   : > { %v1042_v12 = vsel %vm509_vm0, %v457_v58, -inf  ;;  %v1049_v13 = vsel %vm509_vm0, %v458_v59, -inf  ;;  %v3634_v14 = vmax.f32 %v1004_v62, %v1005_v5  ;;  %v3636_v15 = vmax.f32 %v1011_v63, %v1012_v6  ;;  %v465_v62 = vld [vmem:[%s3574_s16 + $0xa8] sm:$0x3]  ;;  %v466_v63 = vld [vmem:[%s3574_s16 + $0xaa] sm:$0x3] }
  0xe0   : > { %v1016_v16 = vmax.f32 %v1014_v2, %v1015_v7  ;;  %v1023_v17 = vmax.f32 %v1021_v3, %v1022_v8  ;;  %v1029_v18 = vrot.slane %v1028_v10, 4  ;;  %v1036_v19 = vrot.slane %v1035_v11, 4 }
  0xe1   : > { %v1043_v20 = vrot.slane %v1042_v12, 4  ;;  %v1050_v21 = vrot.slane %v1049_v13, 4  ;;  %v1056_v24 = vsel %vm509_vm0, %v459_v4, -inf  ;;  %v1063_v25 = vsel %vm509_vm0, %v460_v9, -inf }
  0xe2   : > { %v1017_v22 = vrot.slane %v1016_v16, 2  ;;  %v1024_v23 = vrot.slane %v1023_v17, 2  ;;  %v1030_v26 = vmax.f32 %v1028_v10, %v1029_v18  ;;  %v1037_v27 = vmax.f32 %v1035_v11, %v1036_v19  ;;  %v467_v10 = vld [vmem:[%s3574_s16 + $0xac] sm:$0x3] }
  0xe3   : > { %v1044_v28 = vmax.f32 %v1042_v12, %v1043_v20  ;;  %v1051_v29 = vmax.f32 %v1049_v13, %v1050_v21  ;;  %v1057_v32 = vrot.slane %v1056_v24, 4  ;;  %v1064_v33 = vrot.slane %v1063_v25, 4 }
  0xe4   : > { %v1018_v30 = vmax.f32 %v1016_v16, %v1017_v22  ;;  %v1025_v31 = vmax.f32 %v1023_v17, %v1024_v23  ;;  %v1031_v34 = vrot.slane %v1030_v26, 2  ;;  %v1038_v35 = vrot.slane %v1037_v27, 2  ;;  %v468_v17 = vld [vmem:[%s3574_s16 + $0xae] sm:$0x3] }
  0xe5   : > { %v1045_v36 = vrot.slane %v1044_v28, 2  ;;  %v1052_v37 = vrot.slane %v1051_v29, 2  ;;  %v1058_v40 = vmax.f32 %v1056_v24, %v1057_v32  ;;  %v1065_v41 = vmax.f32 %v1063_v25, %v1064_v33 }
  0xe6   : > { %v1019_v38 = vrot.slane %v1018_v30, 1  ;;  %v1026_v39 = vrot.slane %v1025_v31, 1  ;;  %v1032_v44 = vmax.f32 %v1030_v26, %v1031_v34  ;;  %v1039_v45 = vmax.f32 %v1037_v27, %v1038_v35 }
  0xe7   : > { %v1046_v46 = vmax.f32 %v1044_v28, %v1045_v36  ;;  %v1053_v47 = vmax.f32 %v1051_v29, %v1052_v37  ;;  %v1059_v51 = vrot.slane %v1058_v40, 2  ;;  %v1066_v52 = vrot.slane %v1065_v41, 2 }
  0xe8   : > { %v3643_v49 = vmax.f32 %v1018_v30, %v1019_v38  ;;  %v3645_v50 = vmax.f32 %v1025_v31, %v1026_v39  ;;  %v1033_v56 = vrot.slane %v1032_v44, 1  ;;  %v1040_v57 = vrot.slane %v1039_v45, 1 }
  0xe9   : > { %v1047_v58 = vrot.slane %v1046_v46, 1  ;;  %v1054_v59 = vrot.slane %v1053_v47, 1  ;;  %v1060_v2 = vmax.f32 %v1058_v40, %v1059_v51  ;;  %v1067_v3 = vmax.f32 %v1065_v41, %v1066_v52 }
  0xea   : > { %v1070_v4 = vsel %vm509_vm0, %v461_v42, -inf  ;;  %v1077_v5 = vsel %vm509_vm0, %v462_v43, -inf  ;;  %v3652_v6 = vmax.f32 %v1032_v44, %v1033_v56  ;;  %v3654_v7 = vmax.f32 %v1039_v45, %v1040_v57  ;;  %v469_v42 = vld [vmem:[%s3574_s16 + $0xb0] sm:$0x3] }
  0xeb   : > { %v3656_v8 = vmax.f32 %v1046_v46, %v1047_v58  ;;  %v3658_v9 = vmax.f32 %v1053_v47, %v1054_v59  ;;  %v1061_v11 = vrot.slane %v1060_v2, 1  ;;  %v1068_v12 = vrot.slane %v1067_v3, 1  ;;  %v470_v47 = vld [vmem:[%s3574_s16 + $0xb2] sm:$0x3] }
  0xec   : > { %v1071_v13 = vrot.slane %v1070_v4, 4  ;;  %v1078_v16 = vrot.slane %v1077_v5, 4  ;;  %v1084_v18 = vsel %vm509_vm0, %v463_v48, -inf  ;;  %v1091_v19 = vsel %vm509_vm0, %v464_v55, -inf }
  0xed   : > { %v1098_v20 = vsel %vm509_vm0, %v465_v62, -inf  ;;  %v1105_v21 = vsel %vm509_vm0, %v466_v63, -inf  ;;  %v3666_v22 = vmax.f32 %v1060_v2, %v1061_v11  ;;  %v3668_v23 = vmax.f32 %v1067_v3, %v1068_v12  ;;  %v471_v62 = vld [vmem:[%s3574_s16 + $0xb4] sm:$0x3]  ;;  %v472_v63 = vld [vmem:[%s3574_s16 + $0xb6] sm:$0x3] }
  0xee   : > { %v1072_v24 = vmax.f32 %v1070_v4, %v1071_v13  ;;  %v1079_v25 = vmax.f32 %v1077_v5, %v1078_v16  ;;  %v1085_v26 = vrot.slane %v1084_v18, 4  ;;  %v1092_v27 = vrot.slane %v1091_v19, 4  ;;  %v473_v2 = vld [vmem:[%s3574_s16 + $0xb8] sm:$0x3]  ;;  %v474_v3 = vld [vmem:[%s3574_s16 + $0xba] sm:$0x3] }
  0xef   : > { %v1099_v28 = vrot.slane %v1098_v20, 4  ;;  %v1106_v29 = vrot.slane %v1105_v21, 4  ;;  %v1112_v32 = vsel %vm509_vm0, %v467_v10, -inf  ;;  %v1119_v33 = vsel %vm509_vm0, %v468_v17, -inf }
  0xf0   : > { %v1073_v30 = vrot.slane %v1072_v24, 2  ;;  %v1080_v31 = vrot.slane %v1079_v25, 2  ;;  %v1086_v34 = vmax.f32 %v1084_v18, %v1085_v26  ;;  %v1093_v35 = vmax.f32 %v1091_v19, %v1092_v27 }
  0xf1   : > { %v1100_v36 = vmax.f32 %v1098_v20, %v1099_v28  ;;  %v1107_v37 = vmax.f32 %v1105_v21, %v1106_v29  ;;  %v1113_v40 = vrot.slane %v1112_v32, 4  ;;  %v1120_v41 = vrot.slane %v1119_v33, 4 }
  0xf2   : > { %v1074_v38 = vmax.f32 %v1072_v24, %v1073_v30  ;;  %v1081_v39 = vmax.f32 %v1079_v25, %v1080_v31  ;;  %v1087_v43 = vrot.slane %v1086_v34, 2  ;;  %v1094_v44 = vrot.slane %v1093_v35, 2  ;;  %v475_v24 = vld [vmem:[%s3574_s16 + $0xbc] sm:$0x3]  ;;  %v476_v25 = vld [vmem:[%s3574_s16 + $0xbe] sm:$0x3] }
  0xf3   : > { %v1101_v45 = vrot.slane %v1100_v36, 2  ;;  %v1108_v46 = vrot.slane %v1107_v37, 2  ;;  %v1114_v52 = vmax.f32 %v1112_v32, %v1113_v40  ;;  %v1121_v55 = vmax.f32 %v1119_v33, %v1120_v41 }
  0xf4   : > { %v1075_v48 = vrot.slane %v1074_v38, 1  ;;  %v1082_v51 = vrot.slane %v1081_v39, 1  ;;  %v1088_v56 = vmax.f32 %v1086_v34, %v1087_v43  ;;  %v1095_v57 = vmax.f32 %v1093_v35, %v1094_v44 }
  0xf5   : > { %v1102_v58 = vmax.f32 %v1100_v36, %v1101_v45  ;;  %v1109_v59 = vmax.f32 %v1107_v37, %v1108_v46  ;;  %v1115_v10 = vrot.slane %v1114_v52, 2  ;;  %v1122_v11 = vrot.slane %v1121_v55, 2 }
  0xf6   : > { %v3678_v4 = vmax.f32 %v1074_v38, %v1075_v48  ;;  %v3680_v5 = vmax.f32 %v1081_v39, %v1082_v51  ;;  %v1089_v12 = vrot.slane %v1088_v56, 1  ;;  %v1096_v13 = vrot.slane %v1095_v57, 1 }
  0xf7   : > { %v1103_v16 = vrot.slane %v1102_v58, 1  ;;  %v1110_v17 = vrot.slane %v1109_v59, 1  ;;  %v1116_v18 = vmax.f32 %v1114_v52, %v1115_v10  ;;  %v1123_v19 = vmax.f32 %v1121_v55, %v1122_v11 }
  0xf8   : > { %v1126_v20 = vsel %vm509_vm0, %v469_v42, -inf  ;;  %v1133_v21 = vsel %vm509_vm0, %v470_v47, -inf  ;;  %v3686_v26 = vmax.f32 %v1088_v56, %v1089_v12  ;;  %v3688_v27 = vmax.f32 %v1095_v57, %v1096_v13 }
  0xf9   : > { %v3690_v28 = vmax.f32 %v1102_v58, %v1103_v16  ;;  %v3692_v29 = vmax.f32 %v1109_v59, %v1110_v17  ;;  %v1117_v30 = vrot.slane %v1116_v18, 1  ;;  %v1124_v31 = vrot.slane %v1123_v19, 1 }
  0xfa   : > { %v1127_v32 = vrot.slane %v1126_v20, 4  ;;  %v1134_v33 = vrot.slane %v1133_v21, 4  ;;  %v1140_v34 = vsel %vm509_vm0, %v471_v62, -inf  ;;  %v1147_v35 = vsel %vm509_vm0, %v472_v63, -inf }
  0xfb   : > { %v1154_v36 = vsel %vm509_vm0, %v473_v2, -inf  ;;  %v1161_v37 = vsel %vm509_vm0, %v474_v3, -inf  ;;  %v3698_v38 = vmax.f32 %v1116_v18, %v1117_v30  ;;  %v3700_v39 = vmax.f32 %v1123_v19, %v1124_v31 }
  0xfc   : > { %v1128_v40 = vmax.f32 %v1126_v20, %v1127_v32  ;;  %v1135_v41 = vmax.f32 %v1133_v21, %v1134_v33  ;;  %v1141_v42 = vrot.slane %v1140_v34, 4  ;;  %v1148_v43 = vrot.slane %v1147_v35, 4 }
  0xfd   : > { %v1155_v44 = vrot.slane %v1154_v36, 4  ;;  %v1162_v45 = vrot.slane %v1161_v37, 4  ;;  %v1168_v48 = vsel %vm509_vm0, %v475_v24, -inf  ;;  %v1175_v51 = vsel %vm509_vm0, %v476_v25, -inf }
  0xfe   : > { %v1129_v46 = vrot.slane %v1128_v40, 2  ;;  %v1136_v47 = vrot.slane %v1135_v41, 2  ;;  %v1142_v52 = vmax.f32 %v1140_v34, %v1141_v42  ;;  %v1149_v55 = vmax.f32 %v1147_v35, %v1148_v43 }
  0xff   : > { %v1156_v56 = vmax.f32 %v1154_v36, %v1155_v44  ;;  %v1163_v57 = vmax.f32 %v1161_v37, %v1162_v45  ;;  %v1169_v62 = vrot.slane %v1168_v48, 4  ;;  %v1176_v63 = vrot.slane %v1175_v51, 4 }
 0x100   : > { %v1130_v58 = vmax.f32 %v1128_v40, %v1129_v46  ;;  %v1137_v59 = vmax.f32 %v1135_v41, %v1136_v47  ;;  %v1143_v2 = vrot.slane %v1142_v52, 2  ;;  %v1150_v3 = vrot.slane %v1149_v55, 2 }
 0x101   : > { %v1157_v10 = vrot.slane %v1156_v56, 2  ;;  %v1164_v11 = vrot.slane %v1163_v57, 2  ;;  %v1170_v16 = vmax.f32 %v1168_v48, %v1169_v62  ;;  %v1177_v17 = vmax.f32 %v1175_v51, %v1176_v63 }
 0x102   : > { %v1131_v12 = vrot.slane %v1130_v58, 1  ;;  %v1138_v13 = vrot.slane %v1137_v59, 1  ;;  %v1144_v18 = vmax.f32 %v1142_v52, %v1143_v2  ;;  %v1151_v19 = vmax.f32 %v1149_v55, %v1150_v3 }
 0x103   : > { %v1158_v20 = vmax.f32 %v1156_v56, %v1157_v10  ;;  %v1165_v21 = vmax.f32 %v1163_v57, %v1164_v11  ;;  %v1171_v30 = vrot.slane %v1170_v16, 2  ;;  %v1178_v31 = vrot.slane %v1177_v17, 2 }
 0x104   : > { %v1132_v24 = vmax.f32 %v1130_v58, %v1131_v12  ;;  %v1139_v25 = vmax.f32 %v1137_v59, %v1138_v13  ;;  %v1145_v32 = vrot.slane %v1144_v18, 1  ;;  %v1152_v33 = vrot.slane %v1151_v19, 1 }
 0x105   : > { %v1159_v34 = vrot.slane %v1158_v20, 1  ;;  %v1166_v35 = vrot.slane %v1165_v21, 1  ;;  %v1172_v36 = vmax.f32 %v1170_v16, %v1171_v30  ;;  %v1179_v37 = vmax.f32 %v1177_v17, %v1178_v31 }
 0x106   : > { %v3706_v40 = vsel %vm1406_vm1, %v3611_v53, -inf  ;;  %v3710_v41 = vsel %vm1406_vm1, %v3643_v49, -inf  ;;  %v1146_v42 = vmax.f32 %v1144_v18, %v1145_v32  ;;  %v1153_v43 = vmax.f32 %v1151_v19, %v1152_v33 }
 0x107   : > { %v1160_v44 = vmax.f32 %v1158_v20, %v1159_v34  ;;  %v1167_v45 = vmax.f32 %v1165_v21, %v1166_v35  ;;  %v1173_v46 = vrot.slane %v1172_v36, 1  ;;  %v1180_v47 = vrot.slane %v1179_v37, 1  ;;  %v381_v20 = vld [vmem:[%s3574_s16] sm:$0x3] }
 0x108   : > { %v1505_v48 = vmax.f32 %v3706_v40, %v3710_v41  ;;  %v1506_v51 = vsel %vm1406_vm1, %v3613_v54, -inf  ;;  %v1507_v53 = vsel %vm1406_vm1, %v3645_v50, -inf  ;;  %v1509_v52 = vsel %vm1406_vm1, %v3618_v60, -inf }
 0x109   : > { %v1510_v49 = vsel %vm1406_vm1, %v3652_v6, -inf  ;;  %v1512_v55 = vsel %vm1406_vm1, %v3620_v61, -inf  ;;  %vm1663_vm2 = vcmask 1041409   ;;  %v1174_v56 = vmax.f32 %v1172_v36, %v1173_v46  ;;  %v383_v36 = vld [vmem:[%s3574_s16 + $0x4] sm:$0x3] }
 0x10a   : > { %v1181_v57 = vmax.f32 %v1179_v37, %v1180_v47  ;;  %v1508_v58 = vmax.f32 %v1506_v51, %v1507_v53  ;;  %v1511_v59 = vmax.f32 %v1509_v52, %v1510_v49  ;;  %vm1665_vm3 = vcmask 1042434   ;;  %v384_v37 = vld [vmem:[%s3574_s16 + $0x6] sm:$0x3] }
 0x10b   : > { %v1513_v54 = vsel %vm1406_vm1, %v3654_v7, -inf  ;;  %v1515_v50 = vsel %vm1406_vm1, %v3622_v0, -inf  ;;  %v1516_v60 = vsel %vm1406_vm1, %v3656_v8, -inf  ;;  %v1518_v6 = vsel %vm1406_vm1, %v3624_v1, -inf }
 0x10c   : > { %vm1667_vm4 = vcmask 1043459   ;;  %v1514_v61 = vmax.f32 %v1512_v55, %v1513_v54  ;;  %v1517_v62 = vmax.f32 %v1515_v50, %v1516_v60  ;;  %v1519_v63 = vsel %vm1406_vm1, %v3658_v9, -inf }
 0x10d   : > { %v1521_v2 = vsel %vm1406_vm1, %v3634_v14, -inf  ;;  %vm1669_vm5 = vcmask 1044484   ;;  %v1520_v7 = vmax.f32 %v1518_v6, %v1519_v63  ;;  %v1522_v0 = vsel %vm1406_vm1, %v3666_v22, -inf  ;;  %v386_v6 = vld [vmem:[%s3574_s16 + $0xa] sm:$0x3] }
 0x10e   : > { %v1524_v8 = vsel %vm1406_vm1, %v3636_v15, -inf  ;;  %v1525_v1 = vsel %vm1406_vm1, %v3668_v23, -inf  ;;  %vm1671_vm6 = vcmask 1045509   ;;  %v1523_v3 = vmax.f32 %v1521_v2, %v1522_v0 }
 0x10f   : > { %v1526_v10 = vmax.f32 %v1524_v8, %v1525_v1  ;;  %v1527_v9 = vsel %vm1406_vm1, %v3678_v4, -inf  ;;  %v1528_v14 = vsel %vm1406_vm1, %v1132_v24, -inf  ;;  %vm1673_vm7 = vcmask 1046534   ;;  %v388_v1 = vld [vmem:[%s3574_s16 + $0xe] sm:$0x3] }
 0x110   : > { %v1529_v11 = vmax.f32 %v1527_v9, %v1528_v14  ;;  %v1530_v22 = vsel %vm1406_vm1, %v3680_v5, -inf  ;;  %v1531_v12 = vsel %vm1406_vm1, %v1139_v25, -inf  ;;  %v1533_v15 = vsel %vm1406_vm1, %v3686_v26, -inf  ;;  %v382_v25 = vld [vmem:[%s3574_s16 + $0x2] sm:$0x3] }
 0x111   : > { %vm1675_vm8 = vcmask 1047559   ;;  %v1532_v23 = vmax.f32 %v1530_v22, %v1531_v12  ;;  %v1534_v13 = vsel %vm1406_vm1, %v1146_v42, -inf  ;;  %v1536_v4 = vsel %vm1406_vm1, %v3688_v27, -inf }
 0x112   : > { %v1537_v16 = vsel %vm1406_vm1, %v1153_v43, -inf  ;;  %v1535_v17 = vmax.f32 %v1533_v15, %v1534_v13  ;;  %v1539_v5 = vsel %vm1406_vm1, %v3690_v28, -inf  ;;  %v1540_v19 = vsel %vm1406_vm1, %v1160_v44, -inf  ;;  %v389_v15 = vld [vmem:[%s3574_s16 + $0x10] sm:$0x3] }
 0x113   : > { %v1538_v18 = vmax.f32 %v1536_v4, %v1537_v16  ;;  %v1541_v26 = vmax.f32 %v1539_v5, %v1540_v19  ;;  %v1542_v21 = vsel %vm1406_vm1, %v3692_v29, -inf  ;;  %v1543_v24 = vsel %vm1406_vm1, %v1167_v45, -inf }
 0x114   : > { %v1545_v27 = vsel %vm1406_vm1, %v3698_v38, -inf  ;;  %v1544_v30 = vmax.f32 %v1542_v21, %v1543_v24  ;;  %v1546_v31 = vsel %vm1406_vm1, %v1174_v56, -inf  ;;  %v1548_v28 = vsel %vm1406_vm1, %v3700_v39, -inf }
 0x115   : > { %v1549_v32 = vsel %vm1406_vm1, %v1181_v57, -inf  ;;  %v1547_v33 = vmax.f32 %v1545_v27, %v1546_v31  ;;  %v1698_v35 = vsel %vm1663_vm2, %v1508_v58, %v1505_v48  ;;  %v1705_v29 = vsel %vm1663_vm2, %v1532_v23, %v1529_v11  ;;  %v385_v58 = vld [vmem:[%s3574_s16 + $0x8] sm:$0x3] }
 0x116   : > { %v1550_v34 = vmax.f32 %v1548_v28, %v1549_v32  ;;  %v1699_v40 = vsel %vm1665_vm3, %v1511_v59, %v1698_v35  ;;  %v1706_v38 = vsel %vm1665_vm3, %v1535_v17, %v1705_v29  ;;  %v510_v41 = vsel %vm509_vm0, %v381_v20, -inf  ;;  %v390_v17 = vld [vmem:[%s3574_s16 + $0x12] sm:$0x3]  ;;  %v391_v29 = vld [vmem:[%s3574_s16 + $0x14] sm:$0x3] }
 0x117   : > { %v517_v42 = vsel %vm509_vm0, %v382_v25, -inf  ;;  %v1700_v39 = vsel %vm1667_vm4, %v1514_v61, %v1699_v40  ;;  %v1707_v43 = vsel %vm1667_vm4, %v1538_v18, %v1706_v38  ;;  %v511_v44 = vrot.slane %v510_v41, 4  ;;  %v387_v61 = vld [vmem:[%s3574_s16 + $0xc] sm:$0x3] }
 0x118   : > { %v518_v45 = vrot.slane %v517_v42, 4  ;;  %v1701_v46 = vsel %vm1669_vm5, %v1517_v62, %v1700_v39  ;;  %v1708_v47 = vsel %vm1669_vm5, %v1541_v26, %v1707_v43  ;;  %v524_v48 = vsel %vm509_vm0, %v383_v36, -inf }
 0x119   : > { %v531_v51 = vsel %vm509_vm0, %v384_v37, -inf  ;;  %v1702_v53 = vsel %vm1671_vm6, %v1520_v7, %v1701_v46  ;;  %v1709_v52 = vsel %vm1671_vm6, %v1544_v30, %v1708_v47  ;;  %v512_v49 = vmax.f32 %v510_v41, %v511_v44  ;;  %v392_v44 = vld [vmem:[%s3574_s16 + $0x16] sm:$0x3] }
 0x11a   : > { %v519_v55 = vmax.f32 %v517_v42, %v518_v45  ;;  %v1703_v56 = vsel %vm1673_vm7, %v1523_v3, %v1702_v53  ;;  %v1710_v57 = vsel %vm1673_vm7, %v1547_v33, %v1709_v52  ;;  %v525_v59 = vrot.slane %v524_v48, 4 }
 0x11b   : > { %v532_v54 = vrot.slane %v531_v51, 4  ;;  %v3788_v50 = vsel %vm1675_vm8, %v1526_v10, %v1703_v56  ;;  %v3791_v60 = vsel %vm1675_vm8, %v1550_v34, %v1710_v57  ;;  %v513_v62 = vrot.slane %v512_v49, 2 }
 0x11c   : > { %v520_v63 = vrot.slane %v519_v55, 2  ;;  %v4800_v7 = vrot.slane %v3791_v60, 1  ;;  %v2821_v0 = vpack.i.bf16 %v3791_v60, %v3788_v50  ;;  %v526_v9 = vmax.f32 %v524_v48, %v525_v59 }
 0x11d   : > { %v514_v3 = vmax.f32 %v512_v49, %v513_v62  ;;  %v533_v14 = vmax.f32 %v531_v51, %v532_v54  ;;  %v538_v11 = vsel %vm509_vm0, %v385_v58, -inf  ;;  %v545_v22 = vsel %vm509_vm0, %v386_v6, -inf  ;;  %v394_v54 = vld [vmem:[%s3574_s16 + $0x1a] sm:$0x3] }
 0x11e   : > { %v521_v10 = vmax.f32 %v519_v55, %v520_v63  ;;  %2822 = vrot.lane.b32.xlu1 %v2821_v0, %s3258_s8  ;;  %v552_v12 = vsel %vm509_vm0, %v387_v61, -inf  ;;  %v527_v4 = vrot.slane %v526_v9, 2  ;;  %v539_v16 = vrot.slane %v538_v11, 4  ;;  %v393_v55 = vld [vmem:[%s3574_s16 + $0x18] sm:$0x3] }
 0x11f   : > { %v515_v23 = vrot.slane %v514_v3, 1  ;;  %v534_v18 = vrot.slane %v533_v14, 2  ;;  %v546_v5 = vrot.slane %v545_v22, 4  ;;  %v553_v19 = vrot.slane %v552_v12, 4 }
 0x120   : > { %v522_v13 = vrot.slane %v521_v10, 1  ;;  %v559_v20 = vsel %vm509_vm0, %v388_v1, -inf  ;;  %v528_v24 = vmax.f32 %v526_v9, %v527_v4  ;;  %v540_v27 = vmax.f32 %v538_v11, %v539_v16  ;;  %v395_v9 = vld [vmem:[%s3574_s16 + $0x1c] sm:$0x3] }
 0x121   : > { %v3808_v26 = vmax.f32 %v514_v3, %v515_v23  ;;  %v535_v25 = vmax.f32 %v533_v14, %v534_v18  ;;  %v547_v30 = vmax.f32 %v545_v22, %v546_v5  ;;  %v554_v31 = vmax.f32 %v552_v12, %v553_v19  ;;  %v396_v14 = vld [vmem:[%s3574_s16 + $0x1e] sm:$0x3] }
 0x122   : > { %v3810_v21 = vmax.f32 %v521_v10, %v522_v13  ;;  %v560_v28 = vrot.slane %v559_v20, 4  ;;  %v529_v32 = vrot.slane %v528_v24, 1  ;;  %v541_v33 = vrot.slane %v540_v27, 2 }
 0x123   : > { %v566_v34 = vsel %vm509_vm0, %v389_v15, -inf  ;;  %v573_v35 = vsel %vm509_vm0, %v390_v17, -inf  ;;  %v536_v36 = vrot.slane %v535_v25, 1  ;;  %v548_v37 = vrot.slane %v547_v30, 2 }
 0x124   : > { %v555_v40 = vrot.slane %v554_v31, 2  ;;  %v561_v38 = vmax.f32 %v559_v20, %v560_v28  ;;  %v3815_v41 = vmax.f32 %v528_v24, %v529_v32  ;;  %v542_v42 = vmax.f32 %v540_v27, %v541_v33  ;;  %v397_v20 = vld [vmem:[%s3574_s16 + $0x20] sm:$0x3]  ;;  %v398_v24 = vld [vmem:[%s3574_s16 + $0x22] sm:$0x3] }
 0x125   : > { %v567_v39 = vrot.slane %v566_v34, 4  ;;  %v574_v43 = vrot.slane %v573_v35, 4  ;;  %v3818_v45 = vmax.f32 %v535_v25, %v536_v36  ;;  %v549_v46 = vmax.f32 %v547_v30, %v548_v37 }
 0x126   : > { %v556_v47 = vmax.f32 %v554_v31, %v555_v40  ;;  %v562_v48 = vrot.slane %v561_v38, 2  ;;  %v543_v51 = vrot.slane %v542_v42, 1  ;;  %v580_v49 = vsel %vm509_vm0, %v391_v29, -inf  ;;  %v399_v40 = vld [vmem:[%s3574_s16 + $0x24] sm:$0x3] }
 0x127   : > { %v568_v53 = vmax.f32 %v566_v34, %v567_v39  ;;  %v575_v52 = vmax.f32 %v573_v35, %v574_v43  ;;  %v550_v56 = vrot.slane %v549_v46, 1  ;;  %v581_v59 = vrot.slane %v580_v49, 4 }
 0x128   : > { %v557_v57 = vrot.slane %v556_v47, 1  ;;  %v563_v58 = vmax.f32 %v561_v38, %v562_v48  ;;  %v3823_v6 = vmax.f32 %v542_v42, %v543_v51  ;;  %v587_v63 = vsel %vm509_vm0, %v392_v44, -inf }
 0x129   : > { %v569_v61 = vrot.slane %v568_v53, 2  ;;  %v576_v62 = vrot.slane %v575_v52, 2  ;;  %v3826_v0 = vmax.f32 %v549_v46, %v550_v56  ;;  %v582_v10 = vmax.f32 %v580_v49, %v581_v59 }
 0x12a   : > { %v3828_v1 = vmax.f32 %v556_v47, %v557_v57  ;;  %v564_v3 = vrot.slane %v563_v58, 1  ;;  %v588_v12 = vrot.slane %v587_v63, 4  ;;  %v594_v15 = vsel %vm509_vm0, %v393_v55, -inf  ;;  %v400_v55 = vld [vmem:[%s3574_s16 + $0x26] sm:$0x3] }
 0x12b   : > { %v570_v11 = vmax.f32 %v568_v53, %v569_v61  ;;  %v577_v22 = vmax.f32 %v575_v52, %v576_v62  ;;  %v583_v13 = vrot.slane %v582_v10, 2  ;;  %v595_v4 = vrot.slane %v594_v15, 4 }
 0x12c   : > { %v3833_v23 = vmax.f32 %v563_v58, %v564_v3  ;;  %v601_v16 = vsel %vm509_vm0, %v394_v54, -inf  ;;  %v589_v5 = vmax.f32 %v587_v63, %v588_v12  ;;  %v608_v30 = vsel %vm509_vm0, %v395_v9, -inf  ;;  %v401_v3 = vld [vmem:[%s3574_s16 + $0x28] sm:$0x3] }
 0x12d   : > { %v571_v17 = vrot.slane %v570_v11, 1  ;;  %v578_v18 = vrot.slane %v577_v22, 1  ;;  %v602_v19 = vrot.slane %v601_v16, 4  ;;  %v584_v27 = vmax.f32 %v582_v10, %v583_v13  ;;  %v402_v10 = vld [vmem:[%s3574_s16 + $0x2a] sm:$0x3] }
 0x12e   : > { %v596_v25 = vmax.f32 %v594_v15, %v595_v4  ;;  %v615_v31 = vsel %vm509_vm0, %v396_v14, -inf  ;;  %v590_v33 = vrot.slane %v589_v5, 2  ;;  %v609_v36 = vrot.slane %v608_v30, 4 }
 0x12f   : > { %v3840_v28 = vmax.f32 %v570_v11, %v571_v17  ;;  %v3842_v32 = vmax.f32 %v577_v22, %v578_v18  ;;  %v603_v34 = vmax.f32 %v601_v16, %v602_v19  ;;  %v585_v35 = vrot.slane %v584_v27, 1  ;;  %v403_v19 = vld [vmem:[%s3574_s16 + $0x2c] sm:$0x3] }
 0x130   : > { %v597_v29 = vrot.slane %v596_v25, 2  ;;  %v616_v37 = vrot.slane %v615_v31, 4  ;;  %v591_v38 = vmax.f32 %v589_v5, %v590_v33  ;;  %v622_v39 = vsel %vm509_vm0, %v397_v20, -inf  ;;  %v404_v20 = vld [vmem:[%s3574_s16 + $0x2e] sm:$0x3] }
 0x131   : > { %v604_v42 = vrot.slane %v603_v34, 2  ;;  %v629_v43 = vsel %vm509_vm0, %v398_v24, -inf  ;;  %v3847_v44 = vmax.f32 %v584_v27, %v585_v35  ;;  %v610_v47 = vmax.f32 %v608_v30, %v609_v36 }
 0x132   : > { %v598_v46 = vmax.f32 %v596_v25, %v597_v29  ;;  %v617_v48 = vmax.f32 %v615_v31, %v616_v37  ;;  %v592_v51 = vrot.slane %v591_v38, 1  ;;  %v623_v52 = vrot.slane %v622_v39, 4  ;;  %v405_v29 = vld [vmem:[%s3574_s16 + $0x30] sm:$0x3] }
 0x133   : > { %v605_v53 = vmax.f32 %v603_v34, %v604_v42  ;;  %v630_v49 = vrot.slane %v629_v43, 4  ;;  %v611_v57 = vrot.slane %v610_v47, 2  ;;  %v636_v59 = vsel %vm509_vm0, %v399_v40, -inf  ;;  %v406_v42 = vld [vmem:[%s3574_s16 + $0x32] sm:$0x3] }
 0x134   : > { %v599_v56 = vrot.slane %v598_v46, 1  ;;  %v618_v58 = vrot.slane %v617_v48, 2  ;;  %v3851_v54 = vmax.f32 %v591_v38, %v592_v51  ;;  %v624_v62 = vmax.f32 %v622_v39, %v623_v52 }
 0x135   : > { %v606_v61 = vrot.slane %v605_v53, 1  ;;  %v631_v63 = vmax.f32 %v629_v43, %v630_v49  ;;  %v612_v14 = vmax.f32 %v610_v47, %v611_v57  ;;  %v637_v22 = vrot.slane %v636_v59, 4 }
 0x136   : > { %v3855_v9 = vmax.f32 %v598_v46, %v599_v56  ;;  %v619_v11 = vmax.f32 %v617_v48, %v618_v58  ;;  %v625_v15 = vrot.slane %v624_v62, 2  ;;  %v643_v4 = vsel %vm509_vm0, %v400_v55, -inf  ;;  %v407_v58 = vld [vmem:[%s3574_s16 + $0x34] sm:$0x3] }
 0x137   : > { %v3857_v12 = vmax.f32 %v605_v53, %v606_v61  ;;  %v632_v13 = vrot.slane %v631_v63, 2  ;;  %v613_v16 = vrot.slane %v612_v14, 1  ;;  %v638_v18 = vmax.f32 %v636_v59, %v637_v22  ;;  %v408_v22 = vld [vmem:[%s3574_s16 + $0x36] sm:$0x3] }
 0x138   : > { %v620_v17 = vrot.slane %v619_v11, 1  ;;  %v644_v5 = vrot.slane %v643_v4, 4  ;;  %v626_v24 = vmax.f32 %v624_v62, %v625_v15  ;;  %v650_v25 = vsel %vm509_vm0, %v401_v3, -inf }
 0x139   : > { %v633_v27 = vmax.f32 %v631_v63, %v632_v13  ;;  %v657_v30 = vsel %vm509_vm0, %v402_v10, -inf  ;;  %v3864_v31 = vmax.f32 %v612_v14, %v613_v16  ;;  %v639_v34 = vrot.slane %v638_v18, 2 }
 0x13a   : > { %v3866_v33 = vmax.f32 %v619_v11, %v620_v17  ;;  %v645_v35 = vmax.f32 %v643_v4, %v644_v5  ;;  %v627_v36 = vrot.slane %v626_v24, 1  ;;  %v651_v40 = vrot.slane %v650_v25, 4 }
 0x13b   : > { %v634_v37 = vrot.slane %v633_v27, 1  ;;  %v658_v38 = vrot.slane %v657_v30, 4  ;;  %v640_v39 = vmax.f32 %v638_v18, %v639_v34  ;;  %v664_v46 = vsel %vm509_vm0, %v403_v19, -inf  ;;  %v410_v34 = vld [vmem:[%s3574_s16 + $0x3a] sm:$0x3] }
 0x13c   : > { %v646_v43 = vrot.slane %v645_v35, 2  ;;  %v671_v47 = vsel %vm509_vm0, %v404_v20, -inf  ;;  %v3872_v48 = vmax.f32 %v626_v24, %v627_v36  ;;  %v652_v53 = vmax.f32 %v650_v25, %v651_v40 }
 0x13d   : > { %v3874_v51 = vmax.f32 %v633_v27, %v634_v37  ;;  %v659_v52 = vmax.f32 %v657_v30, %v658_v38  ;;  %v641_v49 = vrot.slane %v640_v39, 1  ;;  %v665_v56 = vrot.slane %v664_v46, 4  ;;  %v409_v30 = vld [vmem:[%s3574_s16 + $0x38] sm:$0x3] }
 0x13e   : > { %v647_v55 = vmax.f32 %v645_v35, %v646_v43  ;;  %v672_v57 = vrot.slane %v671_v47, 4  ;;  %v653_v59 = vrot.slane %v652_v53, 2  ;;  %v678_v62 = vsel %vm509_vm0, %v405_v29, -inf }
 0x13f   : > { %v660_v61 = vrot.slane %v659_v52, 2  ;;  %v685_v63 = vsel %vm509_vm0, %v406_v42, -inf  ;;  %v3879_v3 = vmax.f32 %v640_v39, %v641_v49  ;;  %v666_v14 = vmax.f32 %v664_v46, %v665_v56  ;;  %v412_v49 = vld [vmem:[%s3574_s16 + $0x3e] sm:$0x3] }
 0x140   : > { %v648_v10 = vrot.slane %v647_v55, 1  ;;  %v673_v11 = vmax.f32 %v671_v47, %v672_v57  ;;  %v654_v15 = vmax.f32 %v652_v53, %v653_v59  ;;  %v679_v4 = vrot.slane %v678_v62, 4 }
 0x141   : > { %v661_v13 = vmax.f32 %v659_v52, %v660_v61  ;;  %v686_v16 = vrot.slane %v685_v63, 4  ;;  %v667_v18 = vrot.slane %v666_v14, 2  ;;  %v692_v19 = vsel %vm509_vm0, %v407_v58, -inf  ;;  %v411_v52 = vld [vmem:[%s3574_s16 + $0x3c] sm:$0x3] }
 0x142   : > { %v3882_v17 = vmax.f32 %v647_v55, %v648_v10  ;;  %v674_v5 = vrot.slane %v673_v11, 2  ;;  %v655_v20 = vrot.slane %v654_v15, 1  ;;  %v680_v27 = vmax.f32 %v678_v62, %v679_v4 }
 0x143   : > { %v662_v24 = vrot.slane %v661_v13, 1  ;;  %v687_v25 = vmax.f32 %v685_v63, %v686_v16  ;;  %v668_v35 = vmax.f32 %v666_v14, %v667_v18  ;;  %v693_v36 = vrot.slane %v692_v19, 4 }
 0x144   : > { %v675_v29 = vmax.f32 %v673_v11, %v674_v5  ;;  %v699_v37 = vsel %vm509_vm0, %v408_v22, -inf  ;;  %v3888_v40 = vmax.f32 %v654_v15, %v655_v20  ;;  %v681_v42 = vrot.slane %v680_v27, 2 }
 0x145   : > { %v3890_v38 = vmax.f32 %v661_v13, %v662_v24  ;;  %v688_v39 = vrot.slane %v687_v25, 2  ;;  %v669_v43 = vrot.slane %v668_v35, 1  ;;  %v694_v47 = vmax.f32 %v692_v19, %v693_v36 }
 0x146   : > { %v676_v46 = vrot.slane %v675_v29, 1  ;;  %v700_v53 = vrot.slane %v699_v37, 4  ;;  %v682_v55 = vmax.f32 %v680_v27, %v681_v42  ;;  %v706_v57 = vsel %vm509_vm0, %v409_v30, -inf }
 0x147   : > { %v689_v56 = vmax.f32 %v687_v25, %v688_v39  ;;  %v713_v58 = vsel %vm509_vm0, %v410_v34, -inf  ;;  %v3896_v59 = vmax.f32 %v668_v35, %v669_v43  ;;  %v695_v62 = vrot.slane %v694_v47, 2 }
 0x148   : > { %v3898_v61 = vmax.f32 %v675_v29, %v676_v46  ;;  %v701_v63 = vmax.f32 %v699_v37, %v700_v53  ;;  %v683_v10 = vrot.slane %v682_v55, 1  ;;  %v707_v11 = vrot.slane %v706_v57, 4 }
 0x149   : > { %v690_v14 = vrot.slane %v689_v56, 1  ;;  %v714_v22 = vrot.slane %v713_v58, 4  ;;  %v696_v15 = vmax.f32 %v694_v47, %v695_v62  ;;  %v720_v4 = vsel %vm509_vm0, %v411_v52, -inf }
 0x14a   : > { %v702_v13 = vrot.slane %v701_v63, 2  ;;  %v727_v16 = vsel %vm509_vm0, %v412_v49, -inf  ;;  %v684_v18 = vmax.f32 %v682_v55, %v683_v10  ;;  %v708_v19 = vmax.f32 %v706_v57, %v707_v11 }
 0x14b   : > { %v691_v5 = vmax.f32 %v689_v56, %v690_v14  ;;  %v715_v20 = vmax.f32 %v713_v58, %v714_v22  ;;  %v697_v24 = vrot.slane %v696_v15, 1  ;;  %v721_v25 = vrot.slane %v720_v4, 4 }
 0x14c   : > { %v703_v27 = vmax.f32 %v701_v63, %v702_v13  ;;  %v728_v30 = vrot.slane %v727_v16, 4  ;;  %v709_v34 = vrot.slane %v708_v19, 2  ;;  %v3904_v29 = vsel %vm1406_vm1, %v3808_v26, -inf }
 0x14d   : > { %v716_v35 = vrot.slane %v715_v20, 2  ;;  %v3908_v36 = vsel %vm1406_vm1, %v3840_v28, -inf  ;;  %v698_v37 = vmax.f32 %v696_v15, %v697_v24  ;;  %v722_v39 = vmax.f32 %v720_v4, %v721_v25 }
 0x14e   : > { %v704_v42 = vrot.slane %v703_v27, 1  ;;  %v729_v43 = vmax.f32 %v727_v16, %v728_v30  ;;  %v710_v46 = vmax.f32 %v708_v19, %v709_v34  ;;  %v1409_v53 = vmax.f32 %v3904_v29, %v3908_v36 }
 0x14f   : > { %v717_v47 = vmax.f32 %v715_v20, %v716_v35  ;;  %v3914_v52 = vsel %vm1406_vm1, %v3810_v21, -inf  ;;  %v723_v26 = vrot.slane %v722_v39, 2  ;;  %v1411_v28 = vsel %vm1406_vm1, %v3842_v32, -inf }
 0x150   : > { %v705_v49 = vmax.f32 %v703_v27, %v704_v42  ;;  %v730_v55 = vrot.slane %v729_v43, 2  ;;  %v711_v56 = vrot.slane %v710_v46, 1  ;;  %v1412_v58 = vmax.f32 %v3914_v52, %v1411_v28 }
 0x151   : > { %v718_v57 = vrot.slane %v717_v47, 1  ;;  %v1413_v62 = vsel %vm1406_vm1, %v3815_v41, -inf  ;;  %v724_v63 = vmax.f32 %v722_v39, %v723_v26  ;;  %v1414_v14 = vsel %vm1406_vm1, %v3847_v44, -inf }
 0x152   : > { %v731_v10 = vmax.f32 %v729_v43, %v730_v55  ;;  %v1416_v21 = vsel %vm1406_vm1, %v3818_v45, -inf  ;;  %v712_v11 = vmax.f32 %v710_v46, %v711_v56  ;;  %v1415_v15 = vmax.f32 %v1413_v62, %v1414_v14 }
 0x153   : > { %v719_v22 = vmax.f32 %v717_v47, %v718_v57  ;;  %v1417_v32 = vsel %vm1406_vm1, %v3851_v54, -inf  ;;  %v725_v13 = vrot.slane %v724_v63, 1  ;;  %v1419_v41 = vsel %vm1406_vm1, %v3823_v6, -inf  ;;  %v415_v57 = vld [vmem:[%s3574_s16 + $0x44] sm:$0x3] }
 0x154   : > { %v732_v4 = vrot.slane %v731_v10, 1  ;;  %v1418_v16 = vmax.f32 %v1416_v21, %v1417_v32  ;;  %v1420_v19 = vsel %vm1406_vm1, %v3855_v9, -inf  ;;  %v1422_v44 = vsel %vm1406_vm1, %v3826_v0, -inf  ;;  %v416_v21 = vld [vmem:[%s3574_s16 + $0x46] sm:$0x3] }
 0x155   : > { %v1423_v45 = vsel %vm1406_vm1, %v3857_v12, -inf  ;;  %v1425_v20 = vsel %vm1406_vm1, %v3828_v1, -inf  ;;  %v726_v24 = vmax.f32 %v724_v63, %v725_v13  ;;  %v1421_v27 = vmax.f32 %v1419_v41, %v1420_v19 }
 0x156   : > { %v733_v54 = vmax.f32 %v731_v10, %v732_v4  ;;  %v1424_v25 = vmax.f32 %v1422_v44, %v1423_v45  ;;  %v1426_v30 = vsel %vm1406_vm1, %v3864_v31, -inf  ;;  %v1428_v6 = vsel %vm1406_vm1, %v3833_v23, -inf }
 0x157   : > { %v1429_v9 = vsel %vm1406_vm1, %v3866_v33, -inf  ;;  %v1431_v0 = vsel %vm1406_vm1, %v3872_v48, -inf  ;;  %v1427_v12 = vmax.f32 %v1425_v20, %v1426_v30  ;;  %v1432_v1 = vsel %vm1406_vm1, %v684_v18, -inf  ;;  %v417_v20 = vld [vmem:[%s3574_s16 + $0x48] sm:$0x3] }
 0x158   : > { %v1430_v34 = vmax.f32 %v1428_v6, %v1429_v9  ;;  %v1434_v35 = vsel %vm1406_vm1, %v3874_v51, -inf  ;;  %v1433_v42 = vmax.f32 %v1431_v0, %v1432_v1  ;;  %v1435_v31 = vsel %vm1406_vm1, %v691_v5, -inf  ;;  %v419_v6 = vld [vmem:[%s3574_s16 + $0x4c] sm:$0x3] }
 0x159   : > { %v1437_v23 = vsel %vm1406_vm1, %v3879_v3, -inf  ;;  %v1438_v33 = vsel %vm1406_vm1, %v698_v37, -inf  ;;  %v1436_v39 = vmax.f32 %v1434_v35, %v1435_v31  ;;  %v1440_v48 = vsel %vm1406_vm1, %v3882_v17, -inf  ;;  %v413_v3 = vld [vmem:[%s3574_s16 + $0x40] sm:$0x3] }
 0x15a   : > { %v1439_v43 = vmax.f32 %v1437_v23, %v1438_v33  ;;  %v1441_v18 = vsel %vm1406_vm1, %v705_v49, -inf  ;;  %v1443_v51 = vsel %vm1406_vm1, %v3888_v40, -inf  ;;  %v1444_v5 = vsel %vm1406_vm1, %v712_v11, -inf  ;;  %v414_v49 = vld [vmem:[%s3574_s16 + $0x42] sm:$0x3] }
 0x15b   : > { %v1442_v46 = vmax.f32 %v1440_v48, %v1441_v18  ;;  %v1446_v47 = vsel %vm1406_vm1, %v3890_v38, -inf  ;;  %v1445_v52 = vmax.f32 %v1443_v51, %v1444_v5  ;;  %v1447_v37 = vsel %vm1406_vm1, %v719_v22, -inf  ;;  %v420_v31 = vld [vmem:[%s3574_s16 + $0x4e] sm:$0x3]  ;;  %v421_v51 = vld [vmem:[%s3574_s16 + $0x50] sm:$0x3] }
 0x15c   : > { %v1449_v17 = vsel %vm1406_vm1, %v3896_v59, -inf  ;;  %v1450_v26 = vsel %vm1406_vm1, %v726_v24, -inf  ;;  %v1448_v55 = vmax.f32 %v1446_v47, %v1447_v37  ;;  %v1452_v40 = vsel %vm1406_vm1, %v3898_v61, -inf  ;;  %v422_v37 = vld [vmem:[%s3574_s16 + $0x52] sm:$0x3] }
 0x15d   : > { %v1451_v28 = vmax.f32 %v1449_v17, %v1450_v26  ;;  %v1453_v56 = vsel %vm1406_vm1, %v733_v54, -inf  ;;  %v1664_v62 = vsel %vm1663_vm2, %v1412_v58, %v1409_v53  ;;  %v1677_v63 = vsel %vm1663_vm2, %v1436_v39, %v1433_v42 }
 0x15e   : > { %v1454_v38 = vmax.f32 %v1452_v40, %v1453_v56  ;;  %v734_v59 = vsel %vm509_vm0, %v413_v3, -inf  ;;  %v1666_v10 = vsel %vm1665_vm3, %v1415_v15, %v1664_v62  ;;  %v1678_v14 = vsel %vm1665_vm3, %v1439_v43, %v1677_v63 }
 0x15f   : > { %v735_v11 = vrot.slane %v734_v59, 4  ;;  %v741_v61 = vsel %vm509_vm0, %v414_v49, -inf  ;;  %v1668_v22 = vsel %vm1667_vm4, %v1418_v16, %v1666_v10  ;;  %v1679_v32 = vsel %vm1667_vm4, %v1442_v46, %v1678_v14 }
 0x160   : > { %v742_v29 = vrot.slane %v741_v61, 4  ;;  %v748_v36 = vsel %vm509_vm0, %v415_v57, -inf  ;;  %v1670_v53 = vsel %vm1669_vm5, %v1421_v27, %v1668_v22  ;;  %v1680_v58 = vsel %vm1669_vm5, %v1445_v52, %v1679_v32 }
 0x161   : > { %v736_v15 = vmax.f32 %v734_v59, %v735_v11  ;;  %v749_v13 = vrot.slane %v748_v36, 4  ;;  %v1672_v4 = vsel %vm1671_vm6, %v1424_v25, %v1670_v53  ;;  %v1681_v41 = vsel %vm1671_vm6, %v1448_v55, %v1680_v58  ;;  %v418_v25 = vld [vmem:[%s3574_s16 + $0x4a] sm:$0x3]  ;;  %v424_v53 = vld [vmem:[%s3574_s16 + $0x56] sm:$0x3] }
 0x162   : > { %v743_v19 = vmax.f32 %v741_v61, %v742_v29  ;;  %v755_v16 = vsel %vm509_vm0, %v416_v21, -inf  ;;  %v1674_v44 = vsel %vm1673_vm7, %v1427_v12, %v1672_v4  ;;  %v1682_v45 = vsel %vm1673_vm7, %v1451_v28, %v1681_v41 }
 0x163   : > { %v737_v24 = vrot.slane %v736_v15, 2  ;;  %v750_v54 = vmax.f32 %v748_v36, %v749_v13  ;;  %v3992_v27 = vsel %vm1675_vm8, %v1430_v34, %v1674_v44  ;;  %v3995_v30 = vsel %vm1675_vm8, %v1454_v38, %v1682_v45  ;;  %v423_v38 = vld [vmem:[%s3574_s16 + $0x54] sm:$0x3] }
 0x164   : > { %v744_v9 = vrot.slane %v743_v19, 2  ;;  %v756_v0 = vrot.slane %v755_v16, 4  ;;  %v1765_v1 = vrot.slane %v3788_v50, 1  ;;  %v1762_v35 = vrot.slane %v3995_v30, 1 }
 0x165   : > { %v2811_v42 = vpack.i.bf16 %v3995_v30, %v3992_v27  ;;  %v4801_v34 = vrot.slane %v3992_v27, 1  ;;  %v738_v23 = vmax.f32 %v736_v15, %v737_v24  ;;  %v751_v39 = vrot.slane %v750_v54, 2 }
 0x166   : > { %v745_v33 = vmax.f32 %v743_v19, %v744_v9  ;;  %v757_v43 = vmax.f32 %v755_v16, %v756_v0  ;;  %v762_v48 = vsel %vm509_vm0, %v417_v20, -inf  ;;  %v769_v18 = vsel %vm509_vm0, %v418_v25, -inf  ;;  %v425_v25 = vld [vmem:[%s3574_s16 + $0x58] sm:$0x3] }
 0x167   : > { %2812 = vrot.lane.b32.xlu0 %v2811_v42, %s3258_s8  ;;  %v776_v46 = vsel %vm509_vm0, %v419_v6, -inf  ;;  %v739_v5 = vrot.slane %v738_v23, 1  ;;  %v752_v3 = vmax.f32 %v750_v54, %v751_v39  ;;  %v763_v52 = vrot.slane %v762_v48, 4 }
 0x168   : > { %v746_v47 = vrot.slane %v745_v33, 1  ;;  %v758_v17 = vrot.slane %v757_v43, 2  ;;  %v770_v26 = vrot.slane %v769_v18, 4  ;;  %v777_v49 = vrot.slane %v776_v46, 4 }
 0x169   : > { %v783_v55 = vsel %vm509_vm0, %v420_v31, -inf  ;;  %v4013_v28 = vmax.f32 %v738_v23, %v739_v5  ;;  %v753_v56 = vrot.slane %v752_v3, 1  ;;  %v764_v57 = vmax.f32 %v762_v48, %v763_v52  ;;  %v426_v31 = vld [vmem:[%s3574_s16 + $0x5a] sm:$0x3]  ;;  %v427_v5 = vld [vmem:[%s3574_s16 + $0x5c] sm:$0x3] }
 0x16a   : > { %v4015_v40 = vmax.f32 %v745_v33, %v746_v47  ;;  %v759_v62 = vmax.f32 %v757_v43, %v758_v17  ;;  %v771_v63 = vmax.f32 %v769_v18, %v770_v26  ;;  %v778_v59 = vmax.f32 %v776_v46, %v777_v49  ;;  %v428_v47 = vld [vmem:[%s3574_s16 + $0x5e] sm:$0x3] }
 0x16b   : > { %v784_v10 = vrot.slane %v783_v55, 4  ;;  %v4018_v14 = vmax.f32 %v752_v3, %v753_v56  ;;  %v765_v21 = vrot.slane %v764_v57, 2  ;;  %v790_v11 = vsel %vm509_vm0, %v421_v51, -inf }
 0x16c   : > { %v797_v61 = vsel %vm509_vm0, %v422_v37, -inf  ;;  %v760_v22 = vrot.slane %v759_v62, 1  ;;  %v772_v32 = vrot.slane %v771_v63, 2  ;;  %v779_v29 = vrot.slane %v778_v59, 2 }
 0x16d   : > { %v785_v36 = vmax.f32 %v783_v55, %v784_v10  ;;  %v766_v58 = vmax.f32 %v764_v57, %v765_v21  ;;  %v791_v15 = vrot.slane %v790_v11, 4  ;;  %v798_v13 = vrot.slane %v797_v61, 4  ;;  %v429_v57 = vld [vmem:[%s3574_s16 + $0x60] sm:$0x3]  ;;  %v430_v10 = vld [vmem:[%s3574_s16 + $0x62] sm:$0x3] }
 0x16e   : > { %v804_v4 = vsel %vm509_vm0, %v423_v38, -inf  ;;  %v4024_v41 = vmax.f32 %v759_v62, %v760_v22  ;;  %v773_v19 = vmax.f32 %v771_v63, %v772_v32  ;;  %v780_v16 = vmax.f32 %v778_v59, %v779_v29 }
 0x16f   : > { %v786_v44 = vrot.slane %v785_v36, 2  ;;  %v767_v45 = vrot.slane %v766_v58, 1  ;;  %v792_v20 = vmax.f32 %v790_v11, %v791_v15  ;;  %v799_v24 = vmax.f32 %v797_v61, %v798_v13 }
 0x170   : > { %v805_v54 = vrot.slane %v804_v4, 4  ;;  %v774_v6 = vrot.slane %v773_v19, 1  ;;  %v781_v9 = vrot.slane %v780_v16, 1  ;;  %v811_v42 = vsel %vm509_vm0, %v424_v53, -inf }
 0x171   : > { %v787_v0 = vmax.f32 %v785_v36, %v786_v44  ;;  %v4029_v23 = vmax.f32 %v766_v58, %v767_v45  ;;  %v793_v33 = vrot.slane %v792_v20, 2  ;;  %v800_v39 = vrot.slane %v799_v24, 2  ;;  %v431_v58 = vld [vmem:[%s3574_s16 + $0x64] sm:$0x3] }
 0x172   : > { %v806_v43 = vmax.f32 %v804_v4, %v805_v54  ;;  %v4031_v48 = vmax.f32 %v773_v19, %v774_v6  ;;  %v4033_v18 = vmax.f32 %v780_v16, %v781_v9  ;;  %v812_v51 = vrot.slane %v811_v42, 4  ;;  %v432_v9 = vld [vmem:[%s3574_s16 + $0x66] sm:$0x3] }
 0x173   : > { %v788_v46 = vrot.slane %v787_v0, 1  ;;  %v794_v3 = vmax.f32 %v792_v20, %v793_v33  ;;  %v801_v52 = vmax.f32 %v799_v24, %v800_v39  ;;  %v818_v17 = vsel %vm509_vm0, %v425_v25, -inf }
 0x174   : > { %v807_v37 = vrot.slane %v806_v43, 2  ;;  %v813_v49 = vmax.f32 %v811_v42, %v812_v51  ;;  %v819_v55 = vrot.slane %v818_v17, 4  ;;  %v825_v56 = vsel %vm509_vm0, %v426_v31, -inf }
 0x175   : > { %v4038_v26 = vmax.f32 %v787_v0, %v788_v46  ;;  %v795_v38 = vrot.slane %v794_v3, 1  ;;  %v802_v62 = vrot.slane %v801_v52, 1  ;;  %v826_v59 = vrot.slane %v825_v56, 4 }
 0x176   : > { %v808_v63 = vmax.f32 %v806_v43, %v807_v37  ;;  %v814_v21 = vrot.slane %v813_v49, 2  ;;  %v820_v11 = vmax.f32 %v818_v17, %v819_v55  ;;  %v832_v61 = vsel %vm509_vm0, %v427_v5, -inf  ;;  %v433_v5 = vld [vmem:[%s3574_s16 + $0x68] sm:$0x3] }
 0x177   : > { %v839_v22 = vsel %vm509_vm0, %v428_v47, -inf  ;;  %v4045_v32 = vmax.f32 %v794_v3, %v795_v38  ;;  %v4047_v29 = vmax.f32 %v801_v52, %v802_v62  ;;  %v827_v53 = vmax.f32 %v825_v56, %v826_v59 }
 0x178   : > { %v809_v36 = vrot.slane %v808_v63, 1  ;;  %v815_v15 = vmax.f32 %v813_v49, %v814_v21  ;;  %v821_v13 = vrot.slane %v820_v11, 2  ;;  %v833_v4 = vrot.slane %v832_v61, 4 }
 0x179   : > { %v840_v19 = vrot.slane %v839_v22, 4  ;;  %v828_v44 = vrot.slane %v827_v53, 2  ;;  %v846_v45 = vsel %vm509_vm0, %v429_v57, -inf  ;;  %v853_v20 = vsel %vm509_vm0, %v430_v10, -inf  ;;  %v434_v57 = vld [vmem:[%s3574_s16 + $0x6a] sm:$0x3] }
 0x17a   : > { %v4050_v16 = vmax.f32 %v808_v63, %v809_v36  ;;  %v816_v24 = vrot.slane %v815_v15, 1  ;;  %v822_v54 = vmax.f32 %v820_v11, %v821_v13  ;;  %v834_v25 = vmax.f32 %v832_v61, %v833_v4  ;;  %v436_v36 = vld [vmem:[%s3574_s16 + $0x6e] sm:$0x3] }
 0x17b   : > { %v841_v6 = vmax.f32 %v839_v22, %v840_v19  ;;  %v829_v0 = vmax.f32 %v827_v53, %v828_v44  ;;  %v847_v42 = vrot.slane %v846_v45, 4  ;;  %v854_v31 = vrot.slane %v853_v20, 4  ;;  %v435_v22 = vld [vmem:[%s3574_s16 + $0x6c] sm:$0x3] }
 0x17c   : > { %v860_v33 = vsel %vm509_vm0, %v431_v58, -inf  ;;  %v4056_v39 = vmax.f32 %v815_v15, %v816_v24  ;;  %v823_v43 = vrot.slane %v822_v54, 1  ;;  %v835_v46 = vrot.slane %v834_v25, 2 }
 0x17d   : > { %v842_v51 = vrot.slane %v841_v6, 2  ;;  %v830_v47 = vrot.slane %v829_v0, 1  ;;  %v848_v3 = vmax.f32 %v846_v45, %v847_v42  ;;  %v855_v52 = vmax.f32 %v853_v20, %v854_v31  ;;  %v437_v20 = vld [vmem:[%s3574_s16 + $0x70] sm:$0x3] }
 0x17e   : > { %v861_v37 = vrot.slane %v860_v33, 4  ;;  %v4059_v17 = vmax.f32 %v822_v54, %v823_v43  ;;  %v836_v49 = vmax.f32 %v834_v25, %v835_v46  ;;  %v867_v56 = vsel %vm509_vm0, %v432_v9, -inf  ;;  %v438_v9 = vld [vmem:[%s3574_s16 + $0x72] sm:$0x3] }
 0x17f   : > { %v843_v55 = vmax.f32 %v841_v6, %v842_v51  ;;  %v4063_v38 = vmax.f32 %v829_v0, %v830_v47  ;;  %v849_v62 = vrot.slane %v848_v3, 2  ;;  %v856_v63 = vrot.slane %v855_v52, 2  ;;  %v439_v47 = vld [vmem:[%s3574_s16 + $0x74] sm:$0x3] }
 0x180   : > { %v862_v59 = vmax.f32 %v860_v33, %v861_v37  ;;  %v837_v10 = vrot.slane %v836_v49, 1  ;;  %v868_v11 = vrot.slane %v867_v56, 4  ;;  %v874_v61 = vsel %vm509_vm0, %v433_v5, -inf }
 0x181   : > { %v844_v21 = vrot.slane %v843_v55, 1  ;;  %v850_v53 = vmax.f32 %v848_v3, %v849_v62  ;;  %v857_v58 = vmax.f32 %v855_v52, %v856_v63  ;;  %v875_v13 = vrot.slane %v874_v61, 4 }
 0x182   : > { %v863_v15 = vrot.slane %v862_v59, 2  ;;  %v4068_v4 = vmax.f32 %v836_v49, %v837_v10  ;;  %v869_v44 = vmax.f32 %v867_v56, %v868_v11  ;;  %v881_v45 = vsel %vm509_vm0, %v434_v57, -inf  ;;  %v440_v11 = vld [vmem:[%s3574_s16 + $0x76] sm:$0x3] }
 0x183   : > { %v4070_v19 = vmax.f32 %v843_v55, %v844_v21  ;;  %v851_v24 = vrot.slane %v850_v53, 1  ;;  %v858_v54 = vrot.slane %v857_v58, 1  ;;  %v876_v6 = vmax.f32 %v874_v61, %v875_v13 }
 0x184   : > { %v864_v25 = vmax.f32 %v862_v59, %v863_v15  ;;  %v870_v0 = vrot.slane %v869_v44, 2  ;;  %v882_v42 = vrot.slane %v881_v45, 4  ;;  %v888_v31 = vsel %vm509_vm0, %v435_v22, -inf }
 0x185   : > { %v895_v33 = vsel %vm509_vm0, %v436_v36, -inf  ;;  %v4077_v43 = vmax.f32 %v850_v53, %v851_v24  ;;  %v4079_v46 = vmax.f32 %v857_v58, %v858_v54  ;;  %v877_v5 = vrot.slane %v876_v6, 2 }
 0x186   : > { %v865_v51 = vrot.slane %v864_v25, 1  ;;  %v871_v3 = vmax.f32 %v869_v44, %v870_v0  ;;  %v883_v52 = vmax.f32 %v881_v45, %v882_v42  ;;  %v889_v37 = vrot.slane %v888_v31, 4  ;;  %v441_v45 = vld [vmem:[%s3574_s16 + $0x78] sm:$0x3] }
 0x187   : > { %v896_v49 = vrot.slane %v895_v33, 4  ;;  %v878_v56 = vmax.f32 %v876_v6, %v877_v5  ;;  %v902_v57 = vsel %vm509_vm0, %v437_v20, -inf  ;;  %v909_v62 = vsel %vm509_vm0, %v438_v9, -inf }
 0x188   : > { %v4082_v55 = vmax.f32 %v864_v25, %v865_v51  ;;  %v872_v63 = vrot.slane %v871_v3, 1  ;;  %v884_v59 = vrot.slane %v883_v52, 2  ;;  %v890_v10 = vmax.f32 %v888_v31, %v889_v37  ;;  %v442_v31 = vld [vmem:[%s3574_s16 + $0x7a] sm:$0x3] }
 0x189   : > { %v897_v21 = vmax.f32 %v895_v33, %v896_v49  ;;  %v879_v61 = vrot.slane %v878_v56, 1  ;;  %v903_v22 = vrot.slane %v902_v57, 4  ;;  %v910_v36 = vrot.slane %v909_v62, 4 }
 0x18a   : > { %v916_v53 = vsel %vm509_vm0, %v439_v47, -inf  ;;  %v4088_v58 = vmax.f32 %v871_v3, %v872_v63  ;;  %v885_v15 = vmax.f32 %v883_v52, %v884_v59  ;;  %v891_v13 = vrot.slane %v890_v10, 2 }
 0x18b   : > { %v898_v44 = vrot.slane %v897_v21, 2  ;;  %v4091_v20 = vmax.f32 %v878_v56, %v879_v61  ;;  %v904_v24 = vmax.f32 %v902_v57, %v903_v22  ;;  %v911_v54 = vmax.f32 %v909_v62, %v910_v36  ;;  %v443_v56 = vld [vmem:[%s3574_s16 + $0x7c] sm:$0x3]  ;;  %v444_v57 = vld [vmem:[%s3574_s16 + $0x7e] sm:$0x3] }
 0x18c   : > { %v917_v25 = vrot.slane %v916_v53, 4  ;;  %v886_v6 = vrot.slane %v885_v15, 1  ;;  %v892_v9 = vmax.f32 %v890_v10, %v891_v13  ;;  %v923_v42 = vsel %vm509_vm0, %v440_v11, -inf }
 0x18d   : > { %v899_v0 = vmax.f32 %v897_v21, %v898_v44  ;;  %v905_v33 = vrot.slane %v904_v24, 2  ;;  %v912_v51 = vrot.slane %v911_v54, 2  ;;  %v924_v47 = vrot.slane %v923_v42, 4 }
 0x18e   : > { %v918_v5 = vmax.f32 %v916_v53, %v917_v25  ;;  %v4095_v3 = vmax.f32 %v885_v15, %v886_v6  ;;  %v893_v52 = vrot.slane %v892_v9, 1  ;;  %v930_v49 = vsel %vm509_vm0, %v441_v45, -inf }
 0x18f   : > { %v900_v37 = vrot.slane %v899_v0, 1  ;;  %v906_v62 = vmax.f32 %v904_v24, %v905_v33  ;;  %v913_v63 = vmax.f32 %v911_v54, %v912_v51  ;;  %v925_v10 = vmax.f32 %v923_v42, %v924_v47 }
 0x190   : > { %v919_v59 = vrot.slane %v918_v5, 2  ;;  %v4100_v21 = vmax.f32 %v892_v9, %v893_v52  ;;  %v931_v61 = vrot.slane %v930_v49, 4  ;;  %v937_v22 = vsel %vm509_vm0, %v442_v31, -inf }
 0x191   : > { %v4102_v11 = vmax.f32 %v899_v0, %v900_v37  ;;  %v907_v36 = vrot.slane %v906_v62, 1  ;;  %v914_v53 = vrot.slane %v913_v63, 1  ;;  %v926_v13 = vrot.slane %v925_v10, 2 }
 0x192   : > { %v920_v15 = vmax.f32 %v918_v5, %v919_v59  ;;  %v932_v44 = vmax.f32 %v930_v49, %v931_v61  ;;  %v938_v25 = vrot.slane %v937_v22, 4  ;;  %v944_v45 = vsel %vm509_vm0, %v443_v56, -inf }
 0x193   : > { %v951_v24 = vsel %vm509_vm0, %v444_v57, -inf  ;;  %v908_v54 = vmax.f32 %v906_v62, %v907_v36  ;;  %v915_v6 = vmax.f32 %v913_v63, %v914_v53  ;;  %v927_v9 = vmax.f32 %v925_v10, %v926_v13 }
 0x194   : > { %v921_v42 = vrot.slane %v920_v15, 1  ;;  %v933_v33 = vrot.slane %v932_v44, 2  ;;  %v939_v0 = vmax.f32 %v937_v22, %v938_v25  ;;  %v945_v51 = vrot.slane %v944_v45, 4 }
 0x195   : > { %v952_v47 = vrot.slane %v951_v24, 4  ;;  %v928_v31 = vrot.slane %v927_v9, 1  ;;  %v4109_v5 = vsel %vm1406_vm1, %v4013_v28, -inf  ;;  %v4113_v37 = vsel %vm1406_vm1, %v4045_v32, -inf }
 0x196   : > { %v922_v52 = vmax.f32 %v920_v15, %v921_v42  ;;  %v934_v49 = vmax.f32 %v932_v44, %v933_v33  ;;  %v940_v56 = vrot.slane %v939_v0, 2  ;;  %v946_v57 = vmax.f32 %v944_v45, %v945_v51 }
 0x197   : > { %v953_v62 = vmax.f32 %v951_v24, %v952_v47  ;;  %v929_v63 = vmax.f32 %v927_v9, %v928_v31  ;;  %v1457_v59 = vmax.f32 %v4109_v5, %v4113_v37  ;;  %v1458_v10 = vsel %vm1406_vm1, %v4015_v40, -inf }
 0x198   : > { %v1459_v61 = vsel %vm1406_vm1, %v4047_v29, -inf  ;;  %v935_v28 = vrot.slane %v934_v49, 1  ;;  %v941_v22 = vmax.f32 %v939_v0, %v940_v56  ;;  %v947_v36 = vrot.slane %v946_v57, 2 }
 0x199   : > { %v954_v53 = vrot.slane %v953_v62, 2  ;;  %v1460_v32 = vmax.f32 %v1458_v10, %v1459_v61  ;;  %v1461_v15 = vsel %vm1406_vm1, %v4018_v14, -inf  ;;  %v1462_v13 = vsel %vm1406_vm1, %v4050_v16, -inf }
 0x19a   : > { %v1464_v44 = vsel %vm1406_vm1, %v4024_v41, -inf  ;;  %v936_v25 = vmax.f32 %v934_v49, %v935_v28  ;;  %v942_v45 = vrot.slane %v941_v22, 1  ;;  %v948_v40 = vmax.f32 %v946_v57, %v947_v36 }
 0x19b   : > { %v955_v24 = vmax.f32 %v953_v62, %v954_v53  ;;  %v1463_v42 = vmax.f32 %v1461_v15, %v1462_v13  ;;  %v1465_v29 = vsel %vm1406_vm1, %v4056_v39, -inf  ;;  %v1467_v9 = vsel %vm1406_vm1, %v4029_v23, -inf  ;;  %v478_v13 = vld [vmem:[%s3574_s16 + $0xc2] sm:$0x3] }
 0x19c   : > { %v1468_v14 = vsel %vm1406_vm1, %v4059_v17, -inf  ;;  %v943_v33 = vmax.f32 %v941_v22, %v942_v45  ;;  %v949_v0 = vrot.slane %v948_v40, 1  ;;  %v1466_v51 = vmax.f32 %v1464_v44, %v1465_v29 }
 0x19d   : > { %v956_v16 = vrot.slane %v955_v24, 1  ;;  %v1469_v47 = vmax.f32 %v1467_v9, %v1468_v14  ;;  %v1470_v41 = vsel %vm1406_vm1, %v4031_v48, -inf  ;;  %v1471_v31 = vsel %vm1406_vm1, %v4063_v38, -inf  ;;  %v479_v9 = vld [vmem:[%s3574_s16 + $0xc4] sm:$0x3] }
 0x19e   : > { %v1473_v39 = vsel %vm1406_vm1, %v4033_v18, -inf  ;;  %v950_v5 = vmax.f32 %v948_v40, %v949_v0  ;;  %v1472_v23 = vmax.f32 %v1470_v41, %v1471_v31  ;;  %v1474_v17 = vsel %vm1406_vm1, %v4068_v4, -inf }
 0x19f   : > { %v957_v37 = vmax.f32 %v955_v24, %v956_v16  ;;  %v1475_v49 = vmax.f32 %v1473_v39, %v1474_v17  ;;  %v1476_v56 = vsel %vm1406_vm1, %v4038_v26, -inf  ;;  %v1477_v57 = vsel %vm1406_vm1, %v4070_v19, -inf }
 0x1a0   : > { %v1479_v48 = vsel %vm1406_vm1, %v4077_v43, -inf  ;;  %v1478_v38 = vmax.f32 %v1476_v56, %v1477_v57  ;;  %v1480_v62 = vsel %vm1406_vm1, %v908_v54, -inf  ;;  %v1482_v18 = vsel %vm1406_vm1, %v4079_v46, -inf }
 0x1a1   : > { %v1483_v10 = vsel %vm1406_vm1, %v915_v6, -inf  ;;  %v1481_v61 = vmax.f32 %v1479_v48, %v1480_v62  ;;  %v1485_v26 = vsel %vm1406_vm1, %v4082_v55, -inf  ;;  %v1486_v19 = vsel %vm1406_vm1, %v922_v52, -inf }
 0x1a2   : > { %v1484_v4 = vmax.f32 %v1482_v18, %v1483_v10  ;;  %v1487_v28 = vmax.f32 %v1485_v26, %v1486_v19  ;;  %v1488_v43 = vsel %vm1406_vm1, %v4088_v58, -inf  ;;  %v1489_v54 = vsel %vm1406_vm1, %v929_v63, -inf  ;;  %v477_v63 = vld [vmem:[%s3574_s16 + $0xc0] sm:$0x3]  ;;  %v481_v26 = vld [vmem:[%s3574_s16 + $0xc8] sm:$0x3] }
 0x1a3   : > { %v1491_v46 = vsel %vm1406_vm1, %v4091_v20, -inf  ;;  %v1490_v22 = vmax.f32 %v1488_v43, %v1489_v54  ;;  %v1492_v6 = vsel %vm1406_vm1, %v936_v25, -inf  ;;  %v1494_v36 = vsel %vm1406_vm1, %v4095_v3, -inf  ;;  %v482_v19 = vld [vmem:[%s3574_s16 + $0xca] sm:$0x3] }
 0x1a4   : > { %v1495_v55 = vsel %vm1406_vm1, %v943_v33, -inf  ;;  %v1493_v53 = vmax.f32 %v1491_v46, %v1492_v6  ;;  %v1497_v15 = vsel %vm1406_vm1, %v4100_v21, -inf  ;;  %v1498_v58 = vsel %vm1406_vm1, %v950_v5, -inf }
 0x1a5   : > { %v1496_v52 = vmax.f32 %v1494_v36, %v1495_v55  ;;  %v1499_v44 = vmax.f32 %v1497_v15, %v1498_v58  ;;  %v1500_v20 = vsel %vm1406_vm1, %v4102_v11, -inf  ;;  %v1501_v25 = vsel %vm1406_vm1, %v957_v37, -inf }
 0x1a6   : > { %v1684_v3 = vsel %vm1663_vm2, %v1460_v32, %v1457_v59  ;;  %v1502_v45 = vmax.f32 %v1500_v20, %v1501_v25  ;;  %v1691_v24 = vsel %vm1663_vm2, %v1484_v4, %v1481_v61  ;;  %v377_v29 = vlaneseq }
 0x1a7   : > { %v1685_v40 = vsel %vm1665_vm3, %v1463_v42, %v1684_v3  ;;  %v1692_v14 = vsel %vm1665_vm3, %v1487_v28, %v1691_v24  ;;  %v1182_v33 = vsel %vm509_vm0, %v477_v63, -inf  ;;  %v1189_v0 = vsel %vm509_vm0, %v478_v13, -inf  ;;  %v484_v63 = vld [vmem:[%s3574_s16 + $0xce] sm:$0x3] }
 0x1a8   : > { %v1686_v21 = vsel %vm1667_vm4, %v1466_v51, %v1685_v40  ;;  %v1693_v16 = vsel %vm1667_vm4, %v1490_v22, %v1692_v14  ;;  %v4181_v59 = vshrl.u32 %v377_v29, 7  ;;  %v1183_v32 = vrot.slane %v1182_v33, 4 }
 0x1a9   : > { %v1687_v11 = vsel %vm1669_vm5, %v1469_v47, %v1686_v21  ;;  %v1694_v41 = vsel %vm1669_vm5, %v1493_v53, %v1693_v16  ;;  %v1190_v31 = vrot.slane %v1189_v0, 4  ;;  %v1196_v51 = vsel %vm509_vm0, %v479_v9, -inf }
 0x1aa   : > { %v1688_v42 = vsel %vm1671_vm6, %v1472_v23, %v1687_v11  ;;  %v1695_v5 = vsel %vm1671_vm6, %v1496_v52, %v1694_v41  ;;  %vm380_vm9 = vcmp.eq.s32.totalorder %v4181_v59, 7  ;;  %vm1769_vm10 = vcmp.lt.s32.totalorder %v4181_v59, 7  ;;  %v485_v11 = vld [vmem:[%s3574_s16 + $0xd0] sm:$0x3] }
 0x1ab   : > { %v1689_v39 = vsel %vm1673_vm7, %v1475_v49, %v1688_v42  ;;  %v1696_v37 = vsel %vm1673_vm7, %v1499_v44, %v1695_v5  ;;  %v1776_v23 = vsel %vm1769_vm10, %v4801_v34, %v1762_v35  ;;  %v1772_v17 = vsel %vm1769_vm10, %v1765_v1, %v4800_v7 }
 0x1ac   : > { %v4191_v47 = vsel %vm1675_vm8, %v1478_v38, %v1689_v39  ;;  %v4208_v56 = vsel %vm1675_vm8, %v1502_v45, %v1696_v37  ;;  %v480_v38 = vld [vmem:[%s3574_s16 + $0xc6] sm:$0x3]  ;;  %v1780_v10 = vsel %vm380_vm9, 0.0, %v1776_v23  ;;  %v1784_v61 = vsel %vm380_vm9, 0.0, %v1772_v17  ;;  %v486_v37 = vld [vmem:[%s3574_s16 + $0xd2] sm:$0x3] }
 0x1ad   : > { %v1763_v48 = vrot.slane %v4191_v47, 1  ;;  %v1764_v62 = vrot.slane %v4208_v56, 1  ;;  %v2816_v18 = vpack.i.bf16 %v4208_v56, %v4191_v47  ;;  %v1184_v28 = vmax.f32 %v1182_v33, %v1183_v32 }
 0x1ae   : > { %v1191_v43 = vmax.f32 %v1189_v0, %v1190_v31  ;;  %v1197_v54 = vrot.slane %v1196_v51, 4  ;;  %v1203_v36 = vsel %vm509_vm0, %v480_v38, -inf  ;;  %v1210_v25 = vsel %vm509_vm0, %v481_v26, -inf  ;;  %v487_v26 = vld [vmem:[%s3574_s16 + $0xd4] sm:$0x3] }
 0x1af   : > { %v1775_v4 = vsel %vm1769_vm10, %v1762_v35, %v1763_v48  ;;  %2817 = vrot.lane.b32.xlu0 %v2816_v18, %s3258_s8  ;;  %v1773_v22 = vsel %vm1769_vm10, %v1764_v62, %v1765_v1  ;;  %v1774_v6 = vsel %vm1769_vm10, %v1763_v48, %v1764_v62  ;;  %v483_v35 = vld [vmem:[%s3574_s16 + $0xcc] sm:$0x3]  ;;  %v1185_v15 = vrot.slane %v1184_v28, 2 }
 0x1b0   : > { %v1781_v46 = vsel %vm380_vm9, 0.0, %v1775_v4  ;;  %v1782_v53 = vsel %vm380_vm9, 0.0, %v1774_v6  ;;  %v1783_v52 = vsel %vm380_vm9, 0.0, %v1773_v22  ;;  %v1192_v13 = vrot.slane %v1191_v43, 2 }
 0x1b1   : > { %v2826_v55 = vpack.i.bf16 %v1781_v46, %v1780_v10  ;;  %v2831_v58 = vpack.i.bf16 %v1783_v52, %v1782_v53  ;;  %v1198_v44 = vmax.f32 %v1196_v51, %v1197_v54  ;;  %v1204_v20 = vrot.slane %v1203_v36, 4 }
 0x1b2   : > { %v1186_v1 = vmax.f32 %v1184_v28, %v1185_v15  ;;  %v1217_v3 = vsel %vm509_vm0, %v482_v19, -inf  ;;  %v1224_v45 = vsel %vm509_vm0, %v483_v35, -inf  ;;  %v1193_v40 = vmax.f32 %v1191_v43, %v1192_v13  ;;  %v488_v35 = vld [vmem:[%s3574_s16 + $0xd6] sm:$0x3]  ;;  %v489_v15 = vld [vmem:[%s3574_s16 + $0xd8] sm:$0x3] }
 0x1b3   : > { %2827 = vrot.lane.b32.xlu1 %v2826_v55, %s3259_s15  ;;  %2832 = vrot.lane.b32.xlu0 %v2831_v58, %s3259_s15  ;;  %v1199_v24 = vrot.slane %v1198_v44, 2  ;;  %v1205_v29 = vmax.f32 %v1203_v36, %v1204_v20  ;;  %v1211_v9 = vrot.slane %v1210_v25, 4  ;;  %v1218_v14 = vrot.slane %v1217_v3, 4  ;;  %v490_v20 = vld [vmem:[%s3574_s16 + $0xda] sm:$0x3] }
 0x1b4   : > { %v1187_v21 = vrot.slane %v1186_v1, 1  ;;  %v1225_v33 = vrot.slane %v1224_v45, 4  ;;  %v1231_v0 = vsel %vm509_vm0, %v484_v63, -inf  ;;  %v1194_v16 = vrot.slane %v1193_v40, 1 }
 0x1b5   : > { %v1200_v32 = vmax.f32 %v1198_v44, %v1199_v24  ;;  %v1206_v42 = vrot.slane %v1205_v29, 2  ;;  %v1212_v41 = vmax.f32 %v1210_v25, %v1211_v9  ;;  %v1219_v51 = vmax.f32 %v1217_v3, %v1218_v14  ;;  %v492_v14 = vld [vmem:[%s3574_s16 + $0xde] sm:$0x3] }
 0x1b6   : > { %v1226_v39 = vmax.f32 %v1224_v45, %v1225_v33  ;;  %v1232_v5 = vrot.slane %v1231_v0, 4  ;;  %v4252_v23 = vmax.f32 %v1186_v1, %v1187_v21  ;;  %v1238_v4 = vsel %vm509_vm0, %v485_v11, -inf  ;;  %v491_v1 = vld [vmem:[%s3574_s16 + $0xdc] sm:$0x3] }
 0x1b7   : > { %1828 = vrot.lane.b32.xlu1 %v1784_v61, %s3259_s15  ;;  %v1201_v17 = vrot.slane %v1200_v32, 1  ;;  %v1207_v48 = vmax.f32 %v1205_v29, %v1206_v42  ;;  %v1213_v38 = vrot.slane %v1212_v41, 2  ;;  %v1220_v62 = vrot.slane %v1219_v51, 2 }
 0x1b8   : > { %v1227_v18 = vrot.slane %v1226_v39, 2  ;;  %v1233_v10 = vmax.f32 %v1231_v0, %v1232_v5  ;;  %v4256_v19 = vmax.f32 %v1193_v40, %v1194_v16  ;;  %v1239_v43 = vrot.slane %v1238_v4, 4 }
 0x1b9   : > { %v1208_v61 = vrot.slane %v1207_v48, 1  ;;  %v1214_v28 = vmax.f32 %v1212_v41, %v1213_v38  ;;  %v1221_v54 = vmax.f32 %v1219_v51, %v1220_v62  ;;  %v1245_v6 = vsel %vm509_vm0, %v486_v37, -inf }
 0x1ba   : > { %v1228_v46 = vmax.f32 %v1226_v39, %v1227_v18  ;;  %v1234_v22 = vrot.slane %v1233_v10, 2  ;;  %v4260_v36 = vmax.f32 %v1200_v32, %v1201_v17  ;;  %v1240_v53 = vmax.f32 %v1238_v4, %v1239_v43  ;;  %v494_v43 = vld [vmem:[%s3574_s16 + $0xe2] sm:$0x3] }
 0x1bb   : > { %v1215_v55 = vrot.slane %v1214_v28, 1  ;;  %v1246_v52 = vrot.slane %v1245_v6, 4  ;;  %v1222_v58 = vrot.slane %v1221_v54, 1  ;;  %v1252_v44 = vsel %vm509_vm0, %v487_v26, -inf }
 0x1bc   : > { %v1229_v63 = vrot.slane %v1228_v46, 1  ;;  %v1235_v13 = vmax.f32 %v1233_v10, %v1234_v22  ;;  %v4266_v25 = vmax.f32 %v1207_v48, %v1208_v61  ;;  %v1241_v3 = vrot.slane %v1240_v53, 2  ;;  %v493_v48 = vld [vmem:[%s3574_s16 + $0xe0] sm:$0x3] }
 0x1bd   : > { %v1247_v45 = vmax.f32 %v1245_v6, %v1246_v52  ;;  %v1253_v40 = vrot.slane %v1252_v44, 4  ;;  %v4268_v24 = vmax.f32 %v1214_v28, %v1215_v55  ;;  %v4270_v29 = vmax.f32 %v1221_v54, %v1222_v58 }
 0x1be   : > { %v1236_v9 = vrot.slane %v1235_v13, 1  ;;  %v1259_v21 = vsel %vm509_vm0, %v488_v35, -inf  ;;  %v1242_v33 = vmax.f32 %v1240_v53, %v1241_v3  ;;  %v4274_v32 = vmax.f32 %v1228_v46, %v1229_v63 }
 0x1bf   : > { %v1248_v0 = vrot.slane %v1247_v45, 2  ;;  %v1254_v11 = vmax.f32 %v1252_v44, %v1253_v40  ;;  %v1260_v16 = vrot.slane %v1259_v21, 4  ;;  %v1266_v42 = vsel %vm509_vm0, %v489_v15, -inf  ;;  %v495_v15 = vld [vmem:[%s3574_s16 + $0xe4] sm:$0x3] }
 0x1c0   : > { %v1273_v41 = vsel %vm509_vm0, %v490_v20, -inf  ;;  %v1280_v51 = vsel %vm509_vm0, %v491_v1, -inf  ;;  %v1243_v39 = vrot.slane %v1242_v33, 1  ;;  %v1267_v38 = vrot.slane %v1266_v42, 4  ;;  %v496_v40 = vld [vmem:[%s3574_s16 + $0xe6] sm:$0x3] }
 0x1c1   : > { %v1249_v5 = vmax.f32 %v1247_v45, %v1248_v0  ;;  %v1255_v37 = vrot.slane %v1254_v11, 2  ;;  %v1261_v17 = vmax.f32 %v1259_v21, %v1260_v16  ;;  %v1274_v62 = vrot.slane %v1273_v41, 4  ;;  %v497_v0 = vld [vmem:[%s3574_s16 + $0xe8] sm:$0x3] }
 0x1c2   : > { %v1281_v18 = vrot.slane %v1280_v51, 4  ;;  %v1287_v10 = vsel %vm509_vm0, %v492_v14, -inf  ;;  %v4281_v4 = vmax.f32 %v1235_v13, %v1236_v9  ;;  %v1268_v54 = vmax.f32 %v1266_v42, %v1267_v38 }
 0x1c3   : > { %v1250_v26 = vrot.slane %v1249_v5, 1  ;;  %v1256_v61 = vmax.f32 %v1254_v11, %v1255_v37  ;;  %v1262_v28 = vrot.slane %v1261_v17, 2  ;;  %v1275_v46 = vmax.f32 %v1273_v41, %v1274_v62 }
 0x1c4   : > { %v1282_v22 = vmax.f32 %v1280_v51, %v1281_v18  ;;  %v1288_v6 = vrot.slane %v1287_v10, 4  ;;  %v4284_v35 = vmax.f32 %v1242_v33, %v1243_v39  ;;  %v1294_v52 = vsel %vm509_vm0, %v493_v48, -inf  ;;  %v498_v51 = vld [vmem:[%s3574_s16 + $0xea] sm:$0x3]  ;;  %v499_v48 = vld [vmem:[%s3574_s16 + $0xec] sm:$0x3] }
 0x1c5   : > { %v1257_v55 = vrot.slane %v1256_v61, 1  ;;  %v1263_v53 = vmax.f32 %v1261_v17, %v1262_v28  ;;  %v1269_v58 = vrot.slane %v1268_v54, 2  ;;  %v1276_v63 = vrot.slane %v1275_v46, 2 }
 0x1c6   : > { %v1283_v13 = vrot.slane %v1282_v22, 2  ;;  %v1289_v44 = vmax.f32 %v1287_v10, %v1288_v6  ;;  %v4288_v20 = vmax.f32 %v1249_v5, %v1250_v26  ;;  %v1295_v3 = vrot.slane %v1294_v52, 4 }
 0x1c7   : > { %v1264_v1 = vrot.slane %v1263_v53, 1  ;;  %v1301_v45 = vsel %vm509_vm0, %v494_v43, -inf  ;;  %v1270_v9 = vmax.f32 %v1268_v54, %v1269_v58  ;;  %v1277_v21 = vmax.f32 %v1275_v46, %v1276_v63  ;;  %v500_v54 = vld [vmem:[%s3574_s16 + $0xee] sm:$0x3] }
 0x1c8   : > { %v1284_v14 = vmax.f32 %v1282_v22, %v1283_v13  ;;  %v1290_v33 = vrot.slane %v1289_v44, 2  ;;  %v4293_v11 = vmax.f32 %v1256_v61, %v1257_v55  ;;  %v1296_v16 = vmax.f32 %v1294_v52, %v1295_v3  ;;  %v501_v3 = vld [vmem:[%s3574_s16 + $0xf0] sm:$0x3] }
 0x1c9   : > { %v1302_v42 = vrot.slane %v1301_v45, 4  ;;  %v1308_v41 = vsel %vm509_vm0, %v495_v15, -inf  ;;  %v1271_v39 = vrot.slane %v1270_v9, 1  ;;  %v1278_v5 = vrot.slane %v1277_v21, 1 }
 0x1ca   : > { %v1285_v37 = vrot.slane %v1284_v14, 1  ;;  %v1291_v17 = vmax.f32 %v1289_v44, %v1290_v33  ;;  %v1297_v38 = vrot.slane %v1296_v16, 2  ;;  %v1309_v18 = vrot.slane %v1308_v41, 4 }
 0x1cb   : > { %v1303_v62 = vmax.f32 %v1301_v45, %v1302_v42  ;;  %v1315_v10 = vsel %vm509_vm0, %v496_v40, -inf  ;;  %v4299_v26 = vmax.f32 %v1263_v53, %v1264_v1  ;;  %v4301_v61 = vmax.f32 %v1270_v9, %v1271_v39  ;;  %v502_v42 = vld [vmem:[%s3574_s16 + $0xf2] sm:$0x3] }
 0x1cc   : > { %v4303_v28 = vmax.f32 %v1277_v21, %v1278_v5  ;;  %v1292_v43 = vrot.slane %v1291_v17, 1  ;;  %v1298_v46 = vmax.f32 %v1296_v16, %v1297_v38  ;;  %v1310_v6 = vmax.f32 %v1308_v41, %v1309_v18  ;;  %v503_v18 = vld [vmem:[%s3574_s16 + $0xf4] sm:$0x3] }
 0x1cd   : > { %v1304_v22 = vrot.slane %v1303_v62, 2  ;;  %v1316_v55 = vrot.slane %v1315_v10, 4  ;;  %v4306_v52 = vmax.f32 %v1284_v14, %v1285_v37  ;;  %v1322_v15 = vsel %vm509_vm0, %v497_v0, -inf }
 0x1ce   : > { %v1329_v58 = vsel %vm509_vm0, %v498_v51, -inf  ;;  %v1336_v53 = vsel %vm509_vm0, %v499_v48, -inf  ;;  %v1299_v63 = vrot.slane %v1298_v46, 1  ;;  %v1311_v44 = vrot.slane %v1310_v6, 2 }
 0x1cf   : > { %v1305_v13 = vmax.f32 %v1303_v62, %v1304_v22  ;;  %v1317_v1 = vmax.f32 %v1315_v10, %v1316_v55  ;;  %v1323_v45 = vrot.slane %v1322_v15, 4  ;;  %v1330_v40 = vrot.slane %v1329_v58, 4 }
 0x1d0   : > { %v1337_v9 = vrot.slane %v1336_v53, 4  ;;  %v1343_v21 = vsel %vm509_vm0, %v500_v54, -inf  ;;  %v4313_v14 = vmax.f32 %v1291_v17, %v1292_v43  ;;  %v1312_v0 = vmax.f32 %v1310_v6, %v1311_v44 }
 0x1d1   : > { %v1306_v33 = vrot.slane %v1305_v13, 1  ;;  %v1318_v16 = vrot.slane %v1317_v1, 2  ;;  %v1324_v41 = vmax.f32 %v1322_v15, %v1323_v45  ;;  %v1331_v51 = vmax.f32 %v1329_v58, %v1330_v40 }
 0x1d2   : > { %v1338_v39 = vmax.f32 %v1336_v53, %v1337_v9  ;;  %v1344_v5 = vrot.slane %v1343_v21, 4  ;;  %v4316_v37 = vmax.f32 %v1298_v46, %v1299_v63  ;;  %v1313_v48 = vrot.slane %v1312_v0, 1  ;;  %v504_v46 = vld [vmem:[%s3574_s16 + $0xf6] sm:$0x3] }
 0x1d3   : > { %v1319_v38 = vmax.f32 %v1317_v1, %v1318_v16  ;;  %v1350_v62 = vsel %vm509_vm0, %v501_v3, -inf  ;;  %v1325_v10 = vrot.slane %v1324_v41, 2  ;;  %v1332_v17 = vrot.slane %v1331_v51, 2  ;;  %v505_v1 = vld [vmem:[%s3574_s16 + $0xf8] sm:$0x3] }
 0x1d4   : > { %v1339_v43 = vrot.slane %v1338_v39, 2  ;;  %v1345_v54 = vmax.f32 %v1343_v21, %v1344_v5  ;;  %v4320_v22 = vmax.f32 %v1305_v13, %v1306_v33  ;;  %v1351_v55 = vrot.slane %v1350_v62, 4  ;;  %v506_v13 = vld [vmem:[%s3574_s16 + $0xfa] sm:$0x3] }
 0x1d5   : > { %v1320_v6 = vrot.slane %v1319_v38, 1  ;;  %v1357_v15 = vsel %vm509_vm0, %v502_v42, -inf  ;;  %v1326_v58 = vmax.f32 %v1324_v41, %v1325_v10  ;;  %v1333_v53 = vmax.f32 %v1331_v51, %v1332_v17  ;;  %v507_v42 = vld [vmem:[%s3574_s16 + $0xfc] sm:$0x3]  ;;  %v508_v10 = vld [vmem:[%s3574_s16 + $0xfe] sm:$0x3]  ;;  %s4739_s16 = scalar_lea.hbm %s4796_s7, %s2641_s9 }
 0x1d6   : > { %v1340_v63 = vmax.f32 %v1338_v39, %v1339_v43  ;;  %v1346_v44 = vrot.slane %v1345_v54, 2  ;;  %v4325_v3 = vmax.f32 %v1312_v0, %v1313_v48  ;;  %v1352_v45 = vmax.f32 %v1350_v62, %v1351_v55 }
 0x1d7   : > { %v1358_v40 = vrot.slane %v1357_v15, 4  ;;  %v1364_v9 = vsel %vm509_vm0, %v503_v18, -inf  ;;  %v1327_v21 = vrot.slane %v1326_v58, 1  ;;  %v1334_v33 = vrot.slane %v1333_v53, 1 }
 0x1d8   : > { %v1341_v16 = vrot.slane %v1340_v63, 1  ;;  %v1347_v5 = vmax.f32 %v1345_v54, %v1346_v44  ;;  %v1353_v7 = vrot.slane %v1352_v45, 2  ;;  %v1365_v41 = vrot.slane %v1364_v9, 4 }
 0x1d9   : > { %v1359_v34 = vmax.f32 %v1357_v15, %v1358_v40  ;;  %v1371_v51 = vsel %vm509_vm0, %v504_v46, -inf  ;;  %v4331_v39 = vmax.f32 %v1319_v38, %v1320_v6  ;;  %v4333_v0 = vmax.f32 %v1326_v58, %v1327_v21 }
 0x1da   : > { %v4335_v48 = vmax.f32 %v1333_v53, %v1334_v33  ;;  %v1348_v62 = vrot.slane %v1347_v5, 1  ;;  %v1354_v18 = vmax.f32 %v1352_v45, %v1353_v7  ;;  %v1366_v43 = vmax.f32 %v1364_v9, %v1365_v41 }
 0x1db   : > { %v1360_v17 = vrot.slane %v1359_v34, 2  ;;  %v1372_v55 = vrot.slane %v1371_v51, 4  ;;  %v4338_v57 = vmax.f32 %v1340_v63, %v1341_v16  ;;  %v1378_v54 = vsel %vm509_vm0, %v505_v1, -inf }
 0x1dc   : > { %v1385_v15 = vsel %vm509_vm0, %v506_v13, -inf  ;;  %v1392_v46 = vsel %vm509_vm0, %v507_v42, -inf  ;;  %v1355_v38 = vrot.slane %v1354_v18, 1  ;;  %v1367_v58 = vrot.slane %v1366_v43, 2 }
 0x1dd   : > { %v1361_v6 = vmax.f32 %v1359_v34, %v1360_v17  ;;  %v1373_v44 = vmax.f32 %v1371_v51, %v1372_v55  ;;  %v1379_v53 = vrot.slane %v1378_v54, 4  ;;  %v1386_v40 = vrot.slane %v1385_v15, 4 }
 0x1de   : > { %v1393_v21 = vrot.slane %v1392_v46, 4  ;;  %v1399_v7 = vsel %vm509_vm0, %v508_v10, -inf  ;;  %v4344_v45 = vmax.f32 %v1347_v5, %v1348_v62  ;;  %v1368_v63 = vmax.f32 %v1366_v43, %v1367_v58 }
 0x1df   : > { %v1362_v9 = vrot.slane %v1361_v6, 1  ;;  %v1374_v33 = vrot.slane %v1373_v44, 2  ;;  %v1380_v16 = vmax.f32 %v1378_v54, %v1379_v53  ;;  %v1387_v1 = vmax.f32 %v1385_v15, %v1386_v40 }
 0x1e0   : > { %v1394_v41 = vmax.f32 %v1392_v46, %v1393_v21  ;;  %v1400_v13 = vrot.slane %v1399_v7, 4  ;;  %v1356_v31 = vmax.f32 %v1354_v18, %v1355_v38  ;;  %v1369_v49 = vrot.slane %v1368_v63, 1 }
 0x1e1   : > { %v1363_v42 = vmax.f32 %v1361_v6, %v1362_v9  ;;  %v1375_v34 = vmax.f32 %v1373_v44, %v1374_v33  ;;  %v1381_v17 = vrot.slane %v1380_v16, 2  ;;  %v1388_v51 = vrot.slane %v1387_v1, 2 }
 0x1e2   : > { %v1395_v55 = vrot.slane %v1394_v41, 2  ;;  %v1401_v12 = vmax.f32 %v1399_v7, %v1400_v13  ;;  %v1370_v8 = vmax.f32 %v1368_v63, %v1369_v49  ;;  %v1551_v5 = vsel %vm1406_vm1, %v4252_v23, -inf }
 0x1e3   : > { %v1376_v2 = vrot.slane %v1375_v34, 1  ;;  %v1552_v62 = vsel %vm1406_vm1, %v4284_v35, -inf  ;;  %v1382_v10 = vmax.f32 %v1380_v16, %v1381_v17  ;;  %v1389_v43 = vmax.f32 %v1387_v1, %v1388_v51 }
 0x1e4   : > { %v1396_v54 = vmax.f32 %v1394_v41, %v1395_v55  ;;  %v1402_v15 = vrot.slane %v1401_v12, 2  ;;  %v1554_v46 = vsel %vm1406_vm1, %v4256_v19, -inf  ;;  %v1555_v38 = vsel %vm1406_vm1, %v4288_v20, -inf }
 0x1e5   : > { %v1377_v18 = vmax.f32 %v1375_v34, %v1376_v2  ;;  %v1557_v49 = vsel %vm1406_vm1, %v4260_v36, -inf  ;;  %v1383_v6 = vrot.slane %v1382_v10, 1  ;;  %v1390_v58 = vrot.slane %v1389_v43, 1 }
 0x1e6   : > { %v1397_v23 = vrot.slane %v1396_v54, 1  ;;  %v1403_v44 = vmax.f32 %v1401_v12, %v1402_v15  ;;  %v1553_v53 = vmax.f32 %v1551_v5, %v1552_v62  ;;  %v1558_v35 = vsel %vm1406_vm1, %v4293_v11, -inf }
 0x1e7   : > { %v1560_v2 = vsel %vm1406_vm1, %v4266_v25, -inf  ;;  %v1561_v19 = vsel %vm1406_vm1, %v4299_v26, -inf  ;;  %v1384_v40 = vmax.f32 %v1382_v10, %v1383_v6  ;;  %v1391_v21 = vmax.f32 %v1389_v43, %v1390_v58  ;;  %v4406_v58 = vpop.permute.xlu1 %2822 }
 0x1e8   : > { %v1404_v20 = vrot.slane %v1403_v44, 1  ;;  %v1556_v7 = vmax.f32 %v1554_v46, %v1555_v38  ;;  %v1398_v9 = vmax.f32 %v1396_v54, %v1397_v23  ;;  %v1559_v36 = vmax.f32 %v1557_v49, %v1558_v35 }
 0x1e9   : > { %v1563_v63 = vsel %vm1406_vm1, %v4268_v24, -inf  ;;  %v1564_v12 = vsel %vm1406_vm1, %v4301_v61, -inf  ;;  %v1562_v11 = vmax.f32 %v1560_v2, %v1561_v19  ;;  %v1566_v25 = vsel %vm1406_vm1, %v4270_v29, -inf }
 0x1ea   : > { %v1405_v33 = vmax.f32 %v1403_v44, %v1404_v20  ;;  %v1567_v26 = vsel %vm1406_vm1, %v4303_v28, -inf  ;;  %v1565_v16 = vmax.f32 %v1563_v63, %v1564_v12  ;;  %v1569_v41 = vsel %vm1406_vm1, %v4274_v32, -inf }
 0x1eb   : > { %v1568_v1 = vmax.f32 %v1566_v25, %v1567_v26  ;;  %v1570_v13 = vsel %vm1406_vm1, %v4306_v52, -inf  ;;  %v1572_v61 = vsel %vm1406_vm1, %v4281_v4, -inf  ;;  %v1575_v34 = vsel %vm1406_vm1, %v4316_v37, -inf }
 0x1ec   : > { %v1571_v24 = vmax.f32 %v1569_v41, %v1570_v13  ;;  %v1576_v29 = vsel %vm1406_vm1, %v1356_v31, -inf  ;;  %v1573_v28 = vsel %vm1406_vm1, %v4313_v14, -inf  ;;  %v1578_v51 = vsel %vm1406_vm1, %v4320_v22, -inf }
 0x1ed   : > { %v1577_v17 = vmax.f32 %v1575_v34, %v1576_v29  ;;  %v1579_v32 = vsel %vm1406_vm1, %v1363_v42, -inf  ;;  %v1581_v52 = vsel %vm1406_vm1, %v4325_v3, -inf  ;;  %v1582_v4 = vsel %vm1406_vm1, %v1370_v8, -inf }
 0x1ee   : > { %v1580_v55 = vmax.f32 %v1578_v51, %v1579_v32  ;;  %v1584_v37 = vsel %vm1406_vm1, %v4331_v39, -inf  ;;  %v1583_v5 = vmax.f32 %v1581_v52, %v1582_v4  ;;  %v1585_v31 = vsel %vm1406_vm1, %v1377_v18, -inf }
 0x1ef   : > { %v1587_v14 = vsel %vm1406_vm1, %v4333_v0, -inf  ;;  %v1588_v62 = vsel %vm1406_vm1, %v1384_v40, -inf  ;;  %v1574_v22 = vmax.f32 %v1572_v61, %v1573_v28  ;;  %v1586_v10 = vmax.f32 %v1584_v37, %v1585_v31 }
 0x1f0   : > { %v1590_v42 = vsel %vm1406_vm1, %v4335_v48, -inf  ;;  %v1591_v3 = vsel %vm1406_vm1, %v1391_v21, -inf  ;;  %v1589_v43 = vmax.f32 %v1587_v14, %v1588_v62  ;;  %v1593_v8 = vsel %vm1406_vm1, %v4338_v57, -inf }
 0x1f1   : > { %v1594_v39 = vsel %vm1406_vm1, %v1398_v9, -inf  ;;  %v1596_v54 = vsel %vm1406_vm1, %v4344_v45, -inf  ;;  %v1592_v15 = vmax.f32 %v1590_v42, %v1591_v3  ;;  %v1597_v0 = vsel %vm1406_vm1, %v1405_v33, -inf  ;;  %v2813_v3 = vpop.permute.xlu0 %2812 }
 0x1f2   : > { %v1712_v18 = vsel %vm1663_vm2, %v1556_v7, %v1553_v53  ;;  %v1719_v46 = vsel %vm1663_vm2, %v1580_v55, %v1577_v17  ;;  %v1595_v38 = vmax.f32 %v1593_v8, %v1594_v39  ;;  %v1598_v48 = vmax.f32 %v1596_v54, %v1597_v0 }
 0x1f3   : > { %v1713_v49 = vsel %vm1665_vm3, %v1559_v36, %v1712_v18  ;;  %v1720_v6 = vsel %vm1665_vm3, %v1583_v5, %v1719_v46  ;;  %vm1742_vm11 = vcmp.lt.s32.totalorder %v4181_v59, 1  ;;  %v2825_v45 = vunpack.i.h.bf16 %v4406_v58 }
 0x1f4   : > { %v1714_v57 = vsel %vm1667_vm4, %v1562_v11, %v1713_v49  ;;  %v1721_v23 = vsel %vm1667_vm4, %v1586_v10, %v1720_v6  ;;  %vm379_vm12 = vcmp.eq.s32.totalorder %v4181_v59, 0  ;;  %v4818_v35 = vrot.slane %v3791_v60, 7 }
 0x1f5   : > { %v1715_v44 = vsel %vm1669_vm5, %v1565_v16, %v1714_v57  ;;  %v1722_v53 = vsel %vm1669_vm5, %v1589_v43, %v1721_v23  ;;  %v4819_v2 = vrot.slane %v3788_v50, 7  ;;  %v4820_v33 = vrot.slane %v3995_v30, 7  ;;  %v2961_v50 = vld [vmem:[#allocation5] sm:$0xff]  }
 0x1f6   : > { %v1716_v40 = vsel %vm1671_vm6, %v1568_v1, %v1715_v44  ;;  %v1723_v21 = vsel %vm1671_vm6, %v1592_v15, %v1722_v53  ;;  %v4821_v11 = vrot.slane %v3992_v27, 7  ;;  %v4822_v26 = vrot.slane %v4208_v56, 7  ;;  %2658 = vmatprep.subr.bf16.mxu0 %v2961_v50 }
 0x1f7   : > { %v1745_v19 = vsel %vm1742_vm11, %v4819_v2, %v4818_v35  ;;  %v1717_v7 = vsel %vm1673_vm7, %v1571_v24, %v1716_v40  ;;  %v1724_v9 = vsel %vm1673_vm7, %v1595_v38, %v1723_v21  ;;  %v4823_v16 = vrot.slane %v4191_v47, 7  ;;  %2659 = vmatpush3.bf16.msra.mxu0 %v2961_v50 }
 0x1f8   : > { %v1758_v20 = vsel %vm379_vm12, 0.0, %v1745_v19  ;;  %v1718_v63 = vsel %vm1675_vm8, %v1574_v22, %v1717_v7  ;;  %v1725_v12 = vsel %vm1675_vm8, %v1598_v48, %v1724_v9  ;;  %v1749_v25 = vsel %vm1742_vm11, %v4821_v11, %v4820_v33 }
 0x1f9   : > { %v4428_v36 = vsel %vm1406_vm1, %v1758_v20, %v2825_v45  ;;  %v1747_v1 = vsel %vm1742_vm11, %v4823_v16, %v4822_v26  ;;  %v1768_v41 = vrot.slane %v1725_v12, 1  ;;  %v2836_v13 = vpack.i.bf16 %v1725_v12, %v1718_v63 }
 0x1fa   : > { %v1740_v24 = vrot.slane %v1718_v63, 7  ;;  %v1767_v61 = vrot.slane %v1718_v63, 1  ;;  %v4824_v34 = vmov %v4823_v16  ;;  %v4825_v29 = vmov %v4820_v33  ;;  %v2963_v16 = vld [vmem:[#allocation5 + $0x10] ss:$0 sps:$4 sm:$0x33]  }
 0x1fb   : > { %v1748_v28 = vsel %vm1742_vm11, %v4825_v29, %v4824_v34  ;;  %2837 = vrot.lane.b32.xlu0 %v2836_v13, %s3258_s8  ;;  %v4826_v17 = vrot.slane %v3992_v27, 1  ;;  %v4827_v55 = vrot.slane %v3791_v60, 1  ;;  %v1741_v52 = vrot.slane %v1725_v12, 7  ;;  %v2962_v60 = vld [vmem:[#allocation5 + $0x8] sm:$0xff]   ;;  %s3167_s8 = scalar_lea.vmem %s4742_s17, 1024 }
 0x1fc   : > { %v1770_v32 = vsel %vm1769_vm10, %v1767_v61, %v1768_v41  ;;  %v4828_v5 = vmov %v4819_v2  ;;  %v4829_v31 = vmov %v4822_v26  ;;  %v4830_v22 = vmov %v4818_v35  ;;  %2660 = vmatprep.subr.bf16.mxu0 %v2962_v60  ;;  %p3168_p6 = scmp.ne.s32.totalorder %s4742_s17, %s3167_s8 }
 0x1fd   : > { %v1777_v51 = vsel %vm1769_vm10, %v1768_v41, %v4826_v17  ;;  %v1771_v47 = vsel %vm1769_vm10, %v4827_v55, %v1767_v61  ;;  %v1786_v37 = vsel %vm380_vm9, 0.0, %v1770_v32  ;;  %v1746_v14 = vsel %vm1742_vm11, %v4829_v31, %v4828_v5  ;;  %2661 = vmatpush3.bf16.msra.mxu0 %v2962_v60 }
 0x1fe   : > { %v1787_v30 = vsel %vm380_vm9, 0.0, %v1777_v51  ;;  %v1785_v4 = vsel %vm380_vm9, 0.0, %v1771_v47  ;;  %v1744_v10 = vsel %vm1742_vm11, %v4830_v22, %v1740_v24  ;;  %v1743_v42 = vsel %vm1742_vm11, %v1740_v24, %v1741_v52  ;;  %p3169_p12 = pnand %p3168_p6, %p4832_p9 }
 0x1ff   : > { %v2841_v62 = vpack.i.bf16 %v1786_v37, %v1785_v4  ;;  %1834 = vrot.lane.b32.xlu0 %v1787_v30, %s3259_s15  ;;  %v4831_v56 = vmov %v4821_v11  ;;  %v2815_v39 = vunpack.i.h.bf16 %v2813_v3  ;;  %v2814_v54 = vunpack.i.l.bf16 %v2813_v3 }
 0x200   : > { %v1750_v43 = vsel %vm1742_vm11, %v1741_v52, %v4831_v56  ;;  %v1754_v0 = vsel %vm379_vm12, 0.0, %v1749_v25  ;;  %v1755_v27 = vsel %vm379_vm12, 0.0, %v1748_v28  ;;  %v1756_v38 = vsel %vm379_vm12, 0.0, %v1747_v1  ;;  %p3170_p13 = pneg %p3169_p12 }
 0x201   : > { %2842 = vrot.lane.b32.xlu1 %v2841_v62, %s3259_s15  ;;  %v1753_v15 = vsel %vm379_vm12, 0.0, %v1750_v43  ;;  %vm1852_vm13 = vcmask 64512   ;;  %v2824_v49 = vunpack.i.l.bf16 %v4406_v58  ;;  %v1845_v44 = vsel %vm1406_vm1, %v1754_v0, %v2815_v39 }
 0x202   : > { %v1844_v45 = vsel %vm1406_vm1, %v1753_v15, %v2814_v54  ;;  %v1757_v58 = vsel %vm379_vm12, 0.0, %v1746_v14  ;;  %vm1973_vm14 = vcmask 1041408   ;;  %v1760_v13 = vsel %vm379_vm12, 0.0, %v1743_v42 }
 0x203   : > { %v1848_v11 = vsel %vm1406_vm1, %v1757_v58, %v2824_v49  ;;  %2690 = vmatprep.subr.msk.bf16.mxu0 %vm1973_vm14, %v2963_v16  ;;  %v1975_v1 = vsel %vm1973_vm14, %v2963_v16, 0  ;;  %v1759_v34 = vsel %vm379_vm12, 0.0, %v1744_v10  ;;  %v3262_v5 = vmov 0.0  }
 0x204   : > { %2663 = vmatpush3.bf16.msra.mxu0 %v1975_v1  ;;  %vm1918_vm15 = vcmask 97280   ;;  %vm1927_vm0 = vcmask 195584   ;;  %vm2200_vm2 = vcmask 130048   ;;  %vm2335_vm3 = vcmask 1043456  }
 0x205   : > { %vm2273_vm4 = vcmask 392192   ;;  %vm2322_vm5 = vcmask 588800  }
 0x221   : > { %v2818_v8 = vpop.permute.xlu0 %2817 }
 0x222   : > { %v2820_v18 = vunpack.i.h.bf16 %v2818_v8  ;;  %v2819_v46 = vunpack.i.l.bf16 %v2818_v8 }
 0x224   : > { %v1847_v2 = vsel %vm1406_vm1, %v1756_v38, %v2820_v18  ;;  %v1846_v19 = vsel %vm1406_vm1, %v1755_v27, %v2819_v46 }
 0x225   : > { %v2828_v48 = vpop.permute.xlu1 %2827  ;;  %v2833_v23 = vpop.permute.xlu0 %2832 }
 0x226   : > { %v2830_v6 = vunpack.i.h.bf16 %v2828_v48  ;;  %v2829_v57 = vunpack.i.l.bf16 %v2828_v48  ;;  %v2835_v53 = vunpack.i.h.bf16 %v2833_v23  ;;  %v2834_v35 = vunpack.i.l.bf16 %v2833_v23 }
 0x228   : > { %v4499_v40 = vsel %vm1852_vm13, %v1844_v45, %v2829_v57  ;;  %v4502_v21 = vsel %vm1852_vm13, %v1845_v44, %v2830_v6  ;;  %v1855_v7 = vsel %vm1852_vm13, %v1846_v19, %v2834_v35  ;;  %v4510_v9 = vsel %vm1852_vm13, %v1847_v2, %v2835_v53 }
 0x229   : > { %v2846_v20 = vpack.i.bf16 %v4502_v21, %v4499_v40  ;;  %v1829_v63 = vpop.permute.xlu1 %1828  ;;  %v2851_v12 = vpack.i.bf16 %v4510_v9, %v1855_v7  ;;  %v2856_v33 = vpack.i.bf16 %v1855_v7, %v4502_v21 }
 0x22a   : > { %v4518_v25 = vsel %vm1852_vm13, %v1848_v11, %v1829_v63 }
 0x22b   : > { %2847 = vrot.lane.b32.xlu1 %v2846_v20, %s3260_s28  ;;  %2852 = vrot.lane.b32.xlu0 %v2851_v12, %s3260_s28  ;;  %v2861_v26 = vpack.i.bf16 %v4518_v25, %v4510_v9 }
 0x22f   : > { %2857 = vrot.lane.b32.xlu1 %v2856_v33, %s3261_s13  ;;  %2862 = vrot.lane.b32.xlu0 %v2861_v26, %s3261_s13 }
 0x26d   : > { %v2838_v41 = vpop.permute.xlu0 %2837 }
 0x26e   : > { %v2840_v24 = vunpack.i.h.bf16 %v2838_v41  ;;  %v2839_v61 = vunpack.i.l.bf16 %v2838_v41 }
 0x270   : > { %v1851_v29 = vsel %vm1406_vm1, %v1760_v13, %v2840_v24  ;;  %v1850_v17 = vsel %vm1406_vm1, %v1759_v34, %v2839_v61  ;;  %vm1960_vm1 = vcmask 293888   ;;  %v2623_v24 = vld [vmem:[#allocation8] ss:$0 sm:$0xff] }
 0x271   : > { %v1835_v28 = vpop.permute.xlu0 %1834 }
 0x272   : > { %v1860_v47 = vsel %vm1852_vm13, %v1851_v29, %v1835_v28 }
 0x273   : > { %v2843_v51 = vpop.permute.xlu1 %2842  ;;  %v2881_v31 = vpack.i.bf16 %v3262_v5, %v1860_v47 }
 0x274   : > { %v2845_v32 = vunpack.i.h.bf16 %v2843_v51  ;;  %v2844_v55 = vunpack.i.l.bf16 %v2843_v51 }
 0x276   : > { %v1859_v30 = vsel %vm1852_vm13, %v1850_v17, %v2845_v32  ;;  %v1858_v52 = vsel %vm1852_vm13, %v4428_v36, %v2844_v55 }
 0x277   : > { %v2871_v4 = vpack.i.bf16 %v1860_v47, %v1859_v30  ;;  %v2866_v37 = vpack.i.bf16 %v1858_v52, %v4518_v25  ;;  %v2876_v14 = vpack.i.bf16 %v1859_v30, %v1858_v52 }
 0x279   : > { %2867 = vrot.lane.b32.xlu1 %v2866_v37, %s3260_s28  ;;  %2872 = vrot.lane.b32.xlu0 %v2871_v4, %s3260_s28  ;;  %s3265_s28 = smov [#allocation14]  }
 0x27d   : > { %2877 = vrot.lane.b32.xlu1 %v2876_v14, %s3261_s13  ;;  %2882 = vrot.lane.b32.xlu0 %v2881_v31, %s3261_s13 }
 0x29d   : > { %v2848_v62 = vpop.permute.xlu1 %2847  ;;  %v2853_v22 = vpop.permute.xlu0 %2852 }
 0x29e   : > { %v2850_v10 = vunpack.i.h.bf16 %v2848_v62  ;;  %v2849_v42 = vunpack.i.l.bf16 %v2848_v62  ;;  %v2855_v36 = vunpack.i.h.bf16 %v2853_v22  ;;  %v2854_v3 = vunpack.i.l.bf16 %v2853_v22 }
 0x2a0   : > { %v1919_v60 = vsel %vm1918_vm15, 0.0, %v2849_v42  ;;  %v1920_v15 = vsel %vm1918_vm15, %v4499_v40, %v2850_v10  ;;  %v1922_v0 = vsel %vm1918_vm15, %v1855_v7, %v2855_v36  ;;  %v1921_v18 = vsel %vm1918_vm15, %v4502_v21, %v2854_v3 }
 0x2a1   : > { %v2858_v50 = vpop.permute.xlu1 %2857  ;;  %v2863_v8 = vpop.permute.xlu0 %2862 }
 0x2a2   : > { %v2860_v56 = vunpack.i.h.bf16 %v2858_v50  ;;  %v2859_v43 = vunpack.i.l.bf16 %v2858_v50  ;;  %v2865_v39 = vunpack.i.h.bf16 %v2863_v8  ;;  %v2864_v54 = vunpack.i.l.bf16 %v2863_v8 }
 0x2a4   : > { %v1928_v46 = vsel %vm1927_vm0, %v1919_v60, %v2859_v43  ;;  %v1929_v27 = vsel %vm1927_vm0, %v1920_v15, %v2860_v56  ;;  %v1931_v38 = vsel %vm1927_vm0, %v1922_v0, %v2865_v39  ;;  %v1930_v48 = vsel %vm1927_vm0, %v1921_v18, %v2864_v54 }
 0x2a5   : > { %v1936_v49 = vpack.c.bf16 %v1929_v27, %v1928_v46  ;;  %v1937_v6 = vpack.c.bf16 %v1931_v38, %v1930_v48 }
 0x2a7   : > { %2664 = vmatprep.mubr.msk.bf16.mxu0 %vm1960_vm1, %v1936_v49 }
 0x2a8   : > { %2665 = vmatmul.mubr.msk.bf16.vlgmr.msra.gmra.mrb[0].mxu0 %vm1960_vm1, %v1937_v6 }
 0x2eb   : > { %v2868_v57 = vpop.permute.xlu1 %2867  ;;  %v2873_v23 = vpop.permute.xlu0 %2872 }
 0x2ec   : > { %v2870_v45 = vunpack.i.h.bf16 %v2868_v57  ;;  %v2869_v44 = vunpack.i.l.bf16 %v2868_v57  ;;  %v2875_v53 = vunpack.i.h.bf16 %v2873_v23  ;;  %v2874_v35 = vunpack.i.l.bf16 %v2873_v23 }
 0x2ee   : > { %v1924_v7 = vsel %vm1918_vm15, %v4518_v25, %v2870_v45  ;;  %v1923_v63 = vsel %vm1918_vm15, %v4510_v9, %v2869_v44  ;;  %v1926_v12 = vsel %vm1918_vm15, %v1859_v30, %v2875_v53  ;;  %v1925_v33 = vsel %vm1918_vm15, %v1858_v52, %v2874_v35  ;;  %v2622_v25 = vld [vmem:[#allocation7] ss:$0 sm:$0xff] }
 0x2ef   : > { %v2878_v2 = vpop.permute.xlu1 %2877  ;;  %v2883_v19 = vpop.permute.xlu0 %2882 }
 0x2f0   : > { %v2880_v40 = vunpack.i.h.bf16 %v2878_v2  ;;  %v2879_v21 = vunpack.i.l.bf16 %v2878_v2  ;;  %v2885_v58 = vunpack.i.h.bf16 %v2883_v19  ;;  %v2884_v20 = vunpack.i.l.bf16 %v2883_v19 }
 0x2f2   : > { %v1932_v11 = vsel %vm1927_vm0, %v1923_v63, %v2879_v21  ;;  %v1933_v26 = vsel %vm1927_vm0, %v1924_v7, %v2880_v40  ;;  %v1934_v16 = vsel %vm1927_vm0, %v1925_v33, %v2884_v20  ;;  %v1935_v1 = vsel %vm1927_vm0, %v1926_v12, %v2885_v58 }
 0x2f3   : > { %v1938_v41 = vpack.c.bf16 %v1933_v26, %v1932_v11  ;;  %v1939_v13 = vpack.c.bf16 %v1935_v1, %v1934_v16 }
 0x2f5   : > { %2668 = vmatprep.mubr.msk.bf16.mxu0 %vm1960_vm1, %v1938_v41 }
 0x2f6   : > { %2669 = vmatmul.mubr.msk.bf16.gmra.mrb[4].mxu0 %vm1960_vm1, %v1939_v13 }
 0x37b   : > { %v2666_v9 = vpop.f32.mrb[0].mxu0 }
 0x37c   : > { %v2051_v61 = vmul.f32 %v2666_v9, %v2622_v25  ;;  %v2011_v34 = vpop.f32.mrb[1].mxu0 }
 0x37d   : > { %v2049_v29 = vmul.f32 %v2622_v25, %v2011_v34  ;;  %v2667_v28 = vpop.f32.mrb[2].mxu0 }
 0x37e   : > { %v2066_v17 = vadd.f32 %v2623_v24, %v2051_v61  ;;  %v2052_v51 = vmul.f32 %v2667_v28, %v2622_v25  ;;  %v2014_v32 = vpop.f32.mrb[3].mxu0 }
 0x37f   : > { %v2064_v55 = vadd.f32 %v2623_v24, %v2049_v29  ;;  %v2050_v47 = vmul.f32 %v2622_v25, %v2014_v32 }
 0x380   : > { %v2074_v30 = vmax.f32 %v2066_v17, 0.0  ;;  %v2067_v52 = vadd.f32 %v2623_v24, %v2052_v51 }
 0x381   : > { %v4564_v4 = vmax.f32 %v2064_v55, 0.0  ;;  %v2065_v37 = vadd.f32 %v2623_v24, %v2050_v47 }
 0x382   : > { %v4566_v31 = vmax.f32 %v2067_v52, 0.0  ;;  %v2082_v14 = vrot.slane %v2074_v30, 7  ;;  %v2106_v22 = vrot.slane %v2074_v30, 1 }
 0x383   : > { %v2073_v62 = vmax.f32 %v2065_v37, 0.0  ;;  %v2104_v3 = vrot.slane %v4564_v4, 1  ;;  %v2080_v39 = vrot.slane %v4564_v4, 7 }
 0x384   : > { %v2083_v10 = vrot.slane %v4566_v31, 7  ;;  %v2107_v42 = vrot.slane %v4566_v31, 1  ;;  %v2886_v36 = vpack.i.bf16 %v4566_v31, %v2074_v30 }
 0x385   : > { %v2081_v50 = vrot.slane %v2073_v62, 7  ;;  %v2105_v56 = vrot.slane %v2073_v62, 1  ;;  %v2891_v43 = vpack.i.bf16 %v2073_v62, %v4564_v4 }
 0x386   : > { %2887 = vrot.lane.b32.xlu0 %v2886_v36, %s3259_s15  ;;  %v2116_v8 = vsel %vm1769_vm10, %v2106_v22, %v2107_v42  ;;  %v4578_v60 = vsel %vm1742_vm11, %v2082_v14, %v2083_v10  ;;  %v2966_v36 = vld [vmem:[#allocation10 + $0x10] sm:$0xff]  }
 0x387   : > { %2892 = vrot.lane.b32.xlu1 %v2891_v43, %s3259_s15  ;;  %v2117_v54 = vsel %vm1769_vm10, %v2105_v56, %v2106_v22  ;;  %v2118_v15 = vsel %vm1769_vm10, %v2104_v3, %v2105_v56  ;;  %v4590_v0 = vsel %vm1742_vm11, %v2081_v50, %v2082_v14  ;;  %v4598_v38 = vsel %vm1742_vm11, %v2080_v39, %v2081_v50  ;;  %v2964_v22 = vld [vmem:[#allocation10] sm:$0xff]  }
 0x388   : > { %v2120_v18 = vsel %vm380_vm9, 0.0, %v2118_v15  ;;  %v2121_v46 = vsel %vm380_vm9, 0.0, %v2117_v54  ;;  %v2122_v33 = vsel %vm380_vm9, 0.0, %v2116_v8  ;;  %2672 = vmatprep.subr.bf16.mxu1 %v2964_v22  ;;  %v2097_v8 = vsel %vm379_vm12, 0.0, %v4598_v38 }
 0x389   : > { %v2896_v27 = vpack.i.bf16 %v2121_v46, %v2120_v18  ;;  %2673 = vmatpush3.bf16.msra.mxu1 %v2964_v22 }
 0x38b   : > { %2897 = vrot.lane.b32.xlu1 %v2896_v27, %s3263_s19 }
 0x3c9   : > { %v2670_v48 = vpop.f32.mrb[4].mxu0 }
 0x3ca   : > { %v2055_v49 = vmul.f32 %v2670_v48, %v2622_v25  ;;  %v2027_v6 = vpop.f32.mrb[5].mxu0 }
 0x3cb   : > { %v2053_v57 = vmul.f32 %v2622_v25, %v2027_v6  ;;  %v2671_v23 = vpop.f32.mrb[6].mxu0  ;;  %v2967_v6 = vld [vmem:[#allocation10 + $0x18] sm:$0xff]  }
 0x3cc   : > { %v2070_v45 = vadd.f32 %v2623_v24, %v2055_v49  ;;  %v2056_v44 = vmul.f32 %v2671_v23, %v2622_v25  ;;  %v2030_v53 = vpop.f32.mrb[7].mxu0 }
 0x3cd   : > { %v2068_v35 = vadd.f32 %v2623_v24, %v2053_v57  ;;  %v2054_v2 = vmul.f32 %v2622_v25, %v2030_v53 }
 0x3ce   : > { %v2078_v19 = vmax.f32 %v2070_v45, 0.0  ;;  %v2071_v40 = vadd.f32 %v2623_v24, %v2056_v44  ;;  %v2098_v44 = vsel %vm379_vm12, 0.0, %v4590_v0 }
 0x3cf   : > { %v2076_v21 = vmax.f32 %v2068_v35, 0.0  ;;  %v2069_v58 = vadd.f32 %v2623_v24, %v2054_v2  ;;  %v2968_v35 = vld [vmem:[#allocation10 + $0x20] ss:$0 sps:$4 sm:$0xff]   ;;  %v2099_v2 = vsel %vm379_vm12, 0.0, %v4578_v60 }
 0x3d0   : > { %v2079_v20 = vmax.f32 %v2071_v40, 0.0  ;;  %v2110_v7 = vrot.slane %v2078_v19, 1  ;;  %v2086_v61 = vrot.slane %v2078_v19, 7  ;;  %v2337_v0 = vsel %vm2335_vm3, %v2968_v35, 0 }
 0x3d1   : > { %v2108_v63 = vrot.slane %v2076_v21, 1  ;;  %v2077_v12 = vmax.f32 %v2069_v58, 0.0  ;;  %v2084_v11 = vrot.slane %v2076_v21, 7 }
 0x3d2   : > { %v2087_v26 = vrot.slane %v2079_v20, 7  ;;  %v2111_v16 = vrot.slane %v2079_v20, 1  ;;  %v2911_v1 = vpack.i.bf16 %v2079_v20, %v2078_v19 }
 0x3d3   : > { %v2085_v41 = vrot.slane %v2077_v12, 7  ;;  %v2901_v13 = vpack.i.bf16 %v2077_v12, %v2076_v21  ;;  %v2115_v25 = vsel %vm1769_vm10, %v2107_v42, %v2108_v63  ;;  %v2109_v9 = vrot.slane %v2077_v12, 1 }
 0x3d4   : > { %v2123_v24 = vsel %vm380_vm9, 0.0, %v2115_v25  ;;  %v2112_v34 = vsel %vm1769_vm10, %v2110_v7, %v2111_v16  ;;  %v2095_v29 = vsel %vm1742_vm11, %v2087_v26, %v2080_v39  ;;  %v2091_v52 = vsel %vm1742_vm11, %v2083_v10, %v2084_v11  ;;  %v2965_v10 = vld [vmem:[#allocation10 + $0x8] sm:$0xff]  }
 0x3d5   : > { %2902 = vrot.lane.b32.xlu0 %v2901_v13, %s3259_s15  ;;  %v2906_v28 = vpack.i.bf16 %v2123_v24, %v2122_v33  ;;  %v2114_v17 = vsel %vm1769_vm10, %v2108_v63, %v2109_v9  ;;  %v2113_v51 = vsel %vm1769_vm10, %v2109_v9, %v2110_v7  ;;  %v2126_v32 = vsel %vm380_vm9, 0.0, %v2112_v34  ;;  %2674 = vmatprep.subr.bf16.mxu1 %v2965_v10 }
 0x3d6   : > { %v2125_v55 = vsel %vm380_vm9, 0.0, %v2113_v51  ;;  %v4623_v30 = vsel %vm1742_vm11, %v2084_v11, %v2085_v41  ;;  %v4629_v37 = vsel %vm1742_vm11, %v2085_v41, %v2086_v61  ;;  %v2124_v31 = vsel %vm380_vm9, 0.0, %v2114_v17  ;;  %2675 = vmatpush3.bf16.msra.mxu1 %v2965_v10 }
 0x3d7   : > { %2907 = vrot.lane.b32.xlu1 %v2906_v28, %s3263_s19  ;;  %v2916_v47 = vpack.i.bf16 %v2126_v32, %v2125_v55  ;;  %v4635_v14 = vsel %vm1742_vm11, %v2086_v61, %v2087_v26  ;;  %v2119_v62 = vsel %vm1769_vm10, %v2111_v16, %v2104_v3  ;;  %2676 = vmatprep.subr.bf16.mxu1 %v2966_v36  ;;  %v2096_v43 = vsel %vm379_vm12, 0.0, %v2095_v29 }
 0x3d8   : > { %v2127_v42 = vsel %vm380_vm9, 0.0, %v2119_v62  ;;  %v2100_v21 = vsel %vm379_vm12, 0.0, %v2091_v52  ;;  %v2101_v25 = vsel %vm379_vm12, 0.0, %v4623_v30  ;;  %v2102_v9 = vsel %vm379_vm12, 0.0, %v4629_v37 }
 0x3d9   : > { %2176 = vrot.lane.b32.xlu0 %v2124_v31, %s3263_s19  ;;  %v2103_v24 = vsel %vm379_vm12, 0.0, %v4635_v14 }
 0x3da   : > { %2677 = vmatpush3.bf16.msra.mxu1 %v2966_v36 }
 0x3db   : > { %2912 = vrot.lane.b32.xlu1 %v2911_v1, %s3259_s15  ;;  %2678 = vmatprep.subr.bf16.mxu1 %v2967_v6 }
 0x3dd   : > { %2917 = vrot.lane.b32.xlu0 %v2916_v47, %s3263_s19 }
 0x3de   : > { %2679 = vmatpush3.bf16.msra.mxu1 %v2967_v6 }
 0x3df   : > { %2182 = vrot.lane.b32.xlu1 %v2127_v42, %s3263_s19  ;;  %2691 = vmatprep.subr.msk.bf16.mxu1 %vm2335_vm3, %v2968_v35 }
 0x3e2   : > { %2681 = vmatpush3.bf16.msra.mxu1 %v2337_v0 }
 0x3f8   : > { %v2888_v49 = vpop.permute.xlu0 %2887 }
 0x3f9   : > { %v2893_v50 = vpop.permute.xlu1 %2892  ;;  %v2890_v38 = vunpack.i.h.bf16 %v2888_v49  ;;  %v2889_v57 = vunpack.i.l.bf16 %v2888_v49 }
 0x3fa   : > { %v2895_v4 = vunpack.i.h.bf16 %v2893_v50  ;;  %v2894_v56 = vunpack.i.l.bf16 %v2893_v50 }
 0x3fb   : > { %v2194_v58 = vsel %vm1852_vm13, %v2098_v44, %v2889_v57  ;;  %v2195_v20 = vsel %vm1852_vm13, %v2099_v2, %v2890_v38 }
 0x3fc   : > { %v2192_v15 = vsel %vm1852_vm13, %v2096_v43, %v2894_v56  ;;  %v2193_v18 = vsel %vm1852_vm13, %v2097_v8, %v2895_v4 }
 0x3fd   : > { %v2898_v3 = vpop.permute.xlu1 %2897 }
 0x3fe   : > { %v2900_v39 = vunpack.i.h.bf16 %v2898_v3  ;;  %v2899_v54 = vunpack.i.l.bf16 %v2898_v3 }
 0x400   : > { %v4655_v46 = vsel %vm2200_vm2, %v2192_v15, %v2899_v54  ;;  %v4658_v27 = vsel %vm2200_vm2, %v2193_v18, %v2900_v39 }
 0x401   : > { %v2921_v48 = vpack.i.bf16 %v4658_v27, %v4655_v46 }
 0x403   : > { %2922 = vrot.lane.b32.xlu0 %v2921_v48, %s3261_s13 }
 0x447   : > { %v2903_v23 = vpop.permute.xlu0 %2902 }
 0x448   : > { %v2904_v45 = vunpack.i.l.bf16 %v2903_v23  ;;  %v2905_v60 = vunpack.i.h.bf16 %v2903_v23 }
 0x449   : > { %v2908_v53 = vpop.permute.xlu1 %2907 }
 0x44a   : > { %v2910_v19 = vunpack.i.h.bf16 %v2908_v53  ;;  %v2909_v40 = vunpack.i.l.bf16 %v2908_v53  ;;  %v2196_v7 = vsel %vm1852_vm13, %v2100_v21, %v2904_v45  ;;  %v2197_v51 = vsel %vm1852_vm13, %v2101_v25, %v2905_v60  ;;  %v2634_v25 = vld [vmem:[#allocation13] ss:$0 sm:$0xff] }
 0x44b   : > { %v2177_v63 = vpop.permute.xlu0 %2176 }
 0x44c   : > { %v2203_v12 = vsel %vm2200_vm2, %v2194_v58, %v2909_v40  ;;  %v4676_v33 = vsel %vm2200_vm2, %v2195_v20, %v2910_v19  ;;  %v4681_v1 = vsel %vm2200_vm2, %v2196_v7, %v2177_v63 }
 0x44d   : > { %v2913_v11 = vpop.permute.xlu1 %2912  ;;  %v2931_v26 = vpack.i.bf16 %v4676_v33, %v2203_v12  ;;  %v2926_v16 = vpack.i.bf16 %v2203_v12, %v4658_v27  ;;  %v2936_v55 = vpack.i.bf16 %v4681_v1, %v4676_v33 }
 0x44e   : > { %v2915_v41 = vunpack.i.h.bf16 %v2913_v11  ;;  %v2914_v13 = vunpack.i.l.bf16 %v2913_v11 }
 0x44f   : > { %2932 = vrot.lane.b32.xlu1 %v2931_v26, %s3261_s13  ;;  %2927 = vrot.lane.b32.xlu0 %v2926_v16, %s3264_s14  ;;  %v2918_v61 = vpop.permute.xlu0 %2917 }
 0x450   : > { %v2198_v34 = vsel %vm1852_vm13, %v2102_v9, %v2914_v13  ;;  %v2920_v29 = vunpack.i.h.bf16 %v2918_v61  ;;  %v2919_v28 = vunpack.i.l.bf16 %v2918_v61  ;;  %v2199_v17 = vsel %vm1852_vm13, %v2103_v24, %v2915_v41 }
 0x451   : > { %v2183_v32 = vpop.permute.xlu1 %2182 }
 0x452   : > { %v2208_v47 = vsel %vm2200_vm2, %v2199_v17, %v2183_v32  ;;  %v2207_v30 = vsel %vm2200_vm2, %v2198_v34, %v2920_v29  ;;  %v2206_v52 = vsel %vm2200_vm2, %v2197_v51, %v2919_v28 }
 0x453   : > { %2937 = vrot.lane.b32.xlu1 %v2936_v55, %s3264_s14  ;;  %v2946_v59 = vpack.i.bf16 %v2206_v52, %v4681_v1  ;;  %v2941_v37 = vpack.i.bf16 %v2208_v47, %v2207_v30  ;;  %v2951_v31 = vpack.i.bf16 %v2207_v30, %v2206_v52  ;;  %v2956_v14 = vpack.i.bf16 %v3262_v5, %v2208_v47 }
 0x455   : > { %2947 = vrot.lane.b32.xlu0 %v2946_v59, %s3261_s13 }
 0x457   : > { %2942 = vrot.lane.b32.xlu1 %v2941_v37, %s3261_s13  ;;  %s3171_s13 = sshll.u32 %s3265_s28, 4  ;;  %s3172_s13 = int_to_ptr.vmem [resolvable:$false] %s3171_s13 }
 0x458   : > { %s3173_s19 = scalar_lea.vmem %s3172_s13, 2048  ;;  %p3174_p1 = scmp.lt.s32.totalorder %s4742_s17, %s3172_s13 }
 0x459   : > { %2952 = vrot.lane.b32.xlu0 %v2951_v31, %s3264_s14  ;;  %p3175_p3 = scmp.lt.s32.totalorder %s3173_s19, %s3167_s8 }
 0x45b   : > { %2957 = vrot.lane.b32.xlu1 %v2956_v14, %s3264_s14  ;;  %p3176_p2 = por %p3175_p3, %p3174_p1 }
 0x45d   : > { %p3177_p8 = pnand %p3176_p2, %p3170_p13 }
 0x475   : > { %v2923_v62 = vpop.permute.xlu0 %2922 }
 0x476   : > { %v2925_v22 = vunpack.i.h.bf16 %v2923_v62  ;;  %v2924_v10 = vunpack.i.l.bf16 %v2923_v62 }
 0x478   : > { %v2265_v56 = vsel %vm1927_vm0, 0.0, %v2924_v10  ;;  %v2266_v8 = vsel %vm1927_vm0, %v4655_v46, %v2925_v22 }
 0x4c1   : > { %v2933_v42 = vpop.permute.xlu1 %2932  ;;  %v2928_v36 = vpop.permute.xlu0 %2927 }
 0x4c2   : > { %v2930_v50 = vunpack.i.h.bf16 %v2928_v36  ;;  %v2929_v4 = vunpack.i.l.bf16 %v2928_v36  ;;  %v2935_v3 = vunpack.i.h.bf16 %v2933_v42  ;;  %v2934_v43 = vunpack.i.l.bf16 %v2933_v42 }
 0x4c4   : > { %v2274_v39 = vsel %vm2273_vm4, %v2265_v56, %v2929_v4  ;;  %v2275_v5 = vsel %vm2273_vm4, %v2266_v8, %v2930_v50  ;;  %v2268_v49 = vsel %vm1927_vm0, %v2203_v12, %v2935_v3  ;;  %v2267_v6 = vsel %vm1927_vm0, %v4658_v27, %v2934_v43 }
 0x4c5   : > { %v2938_v54 = vpop.permute.xlu1 %2937  ;;  %v2282_v15 = vpack.c.bf16 %v2275_v5, %v2274_v39 }
 0x4c6   : > { %v2940_v18 = vunpack.i.h.bf16 %v2938_v54  ;;  %v2939_v48 = vunpack.i.l.bf16 %v2938_v54 }
 0x4c7   : > { %2682 = vmatprep.mubr.msk.bf16.mxu1 %vm2322_vm5, %v2282_v15  ;;  %v2948_v38 = vpop.permute.xlu0 %2947 }
 0x4c8   : > { %v2277_v57 = vsel %vm2273_vm4, %v2268_v49, %v2940_v18  ;;  %v2276_v46 = vsel %vm2273_vm4, %v2267_v6, %v2939_v48  ;;  %v2950_v45 = vunpack.i.h.bf16 %v2948_v38  ;;  %v2949_v44 = vunpack.i.l.bf16 %v2948_v38 }
 0x4c9   : > { %v2283_v23 = vpack.c.bf16 %v2277_v57, %v2276_v46  ;;  %v2943_v53 = vpop.permute.xlu1 %2942 }
 0x4ca   : > { %v2945_v35 = vunpack.i.h.bf16 %v2943_v53  ;;  %v2944_v2 = vunpack.i.l.bf16 %v2943_v53  ;;  %v2270_v27 = vsel %vm1927_vm0, %v4681_v1, %v2950_v45  ;;  %v2269_v58 = vsel %vm1927_vm0, %v4676_v33, %v2949_v44  ;;  %v2633_v33 = vld [vmem:[#allocation11] ss:$0 sm:$0xff] }
 0x4cb   : > { %2683 = vmatmul.mubr.msk.bf16.vlgmr.msra.gmra.mrb[0].mxu1 %vm2322_vm5, %v2283_v23  ;;  %v2953_v19 = vpop.permute.xlu0 %2952 }
 0x4cc   : > { %v2955_v40 = vunpack.i.h.bf16 %v2953_v19  ;;  %v2954_v21 = vunpack.i.l.bf16 %v2953_v19  ;;  %v2272_v60 = vsel %vm1927_vm0, %v2207_v30, %v2945_v35  ;;  %v2271_v11 = vsel %vm1927_vm0, %v2206_v52, %v2944_v2 }
 0x4cd   : > { %v2958_v20 = vpop.permute.xlu1 %2957 }
 0x4ce   : > { %v2279_v7 = vsel %vm2273_vm4, %v2270_v27, %v2955_v40  ;;  %v2278_v63 = vsel %vm2273_vm4, %v2269_v58, %v2954_v21  ;;  %v2960_v0 = vunpack.i.h.bf16 %v2958_v20  ;;  %v2959_v12 = vunpack.i.l.bf16 %v2958_v20 }
 0x4cf   : > { %v2284_v26 = vpack.c.bf16 %v2279_v7, %v2278_v63 }
 0x4d0   : > { %v2280_v16 = vsel %vm2273_vm4, %v2271_v11, %v2959_v12  ;;  %v2281_v1 = vsel %vm2273_vm4, %v2272_v60, %v2960_v0 }
 0x4d1   : > { %v2285_v41 = vpack.c.bf16 %v2281_v1, %v2280_v16  ;;  %2686 = vmatprep.mubr.msk.bf16.mxu1 %vm2322_vm5, %v2284_v26 }
 0x4d3   : > { %2687 = vmatmul.mubr.msk.bf16.gmra.mrb[4].mxu1 %vm2322_vm5, %v2285_v41 }
 0x59e   : > { %v2684_v13 = vpop.f32.mrb[0].mxu1 }
 0x59f   : > { %v2413_v9 = vmul.f32 %v2684_v13, %v2633_v33  ;;  %v2373_v61 = vpop.f32.mrb[1].mxu1 }
 0x5a0   : > { %v2411_v24 = vmul.f32 %v2633_v33, %v2373_v61  ;;  %v2685_v34 = vpop.f32.mrb[2].mxu1 }
 0x5a1   : > { %v2428_v29 = vadd.f32 %v2634_v25, %v2413_v9  ;;  %v2414_v28 = vmul.f32 %v2685_v34, %v2633_v33  ;;  %v2376_v17 = vpop.f32.mrb[3].mxu1 }
 0x5a2   : > { %v2426_v51 = vadd.f32 %v2634_v25, %v2411_v24  ;;  %v2412_v32 = vmul.f32 %v2633_v33, %v2376_v17 }
 0x5a3   : > { %v2436_v55 = vmax.f32 %v2428_v29, 0.0  ;;  %v2429_v47 = vadd.f32 %v2634_v25, %v2414_v28 }
 0x5a4   : > { %v2434_v30 = vmax.f32 %v2426_v51, 0.0  ;;  %v2427_v52 = vadd.f32 %v2634_v25, %v2412_v32 }
 0x5a5   : > { %2444 = vst.msk [vmem:[%s375_s29 + $0x10] sm:$0xff] %vm1852_vm13, %v2436_v55  ;;  %v2437_v59 = vmax.f32 %v2429_v47, 0.0 }
 0x5a6   : > { %2442 = vst.msk [vmem:[%s375_s29] sm:$0xff] %vm1852_vm13, %v2434_v30  ;;  %v2435_v37 = vmax.f32 %v2427_v52, 0.0  ;;  %v2688_v31 = vpop.f32.mrb[4].mxu1 }
 0x5a7   : > { %2445 = vst.msk [vmem:[%s375_s29 + $0x18] sm:$0xff] %vm1852_vm13, %v2437_v59  ;;  %v2417_v14 = vmul.f32 %v2688_v31, %v2633_v33  ;;  %v2389_v62 = vpop.f32.mrb[5].mxu1 }
 0x5a8   : > { %2443 = vst.msk [vmem:[%s375_s29 + $0x8] sm:$0xff] %vm1852_vm13, %v2435_v37  ;;  %v2415_v22 = vmul.f32 %v2633_v33, %v2389_v62  ;;  %v2689_v10 = vpop.f32.mrb[6].mxu1 }
 0x5a9   : > { %v2432_v42 = vadd.f32 %v2634_v25, %v2417_v14  ;;  %v2418_v36 = vmul.f32 %v2689_v10, %v2633_v33  ;;  %v2392_v50 = vpop.f32.mrb[7].mxu1 }
 0x5aa   : > { %v2430_v4 = vadd.f32 %v2634_v25, %v2415_v22  ;;  %v2416_v56 = vmul.f32 %v2633_v33, %v2392_v50 }
 0x5ab   : > { %v2440_v3 = vmax.f32 %v2432_v42, 0.0  ;;  %v2433_v43 = vadd.f32 %v2634_v25, %v2418_v36 }
 0x5ac   : > { %v2438_v8 = vmax.f32 %v2430_v4, 0.0  ;;  %v2431_v39 = vadd.f32 %v2634_v25, %v2416_v56 }
 0x5ad   : > { %2448 = vst.msk [vmem:[%s375_s29 + $0x30] sm:$0xff] %vm1852_vm13, %v2440_v3  ;;  %v2441_v5 = vmax.f32 %v2433_v43, 0.0 }
 0x5ae   : > { %2446 = vst.msk [vmem:[%s375_s29 + $0x20] sm:$0xff] %vm1852_vm13, %v2438_v8  ;;  %v2439_v54 = vmax.f32 %v2431_v39, 0.0 }
 0x5af   : > { %2449 = vst.msk [vmem:[%s375_s29 + $0x38] sm:$0xff] %vm1852_vm13, %v2441_v5 }
 0x5b0   : > { %2447 = vst.msk [vmem:[%s375_s29 + $0x28] sm:$0xff] %vm1852_vm13, %v2439_v54 }
 0x5b1   : > { %3180 = shalt.err (!%p3177_p8)
}
 0x5b2   : > { %s3181_s14 = scalar_lea.hbm %s4739_s16, 1024  ;;  %s3185_s9 = scalar_lea.hbm %s4796_s7, 2048 }
 0x5b3   : > { %p3182_p4 = scmp.ne.s32.totalorder %s4739_s16, %s3181_s14  ;;  %p3186_p0 = scmp.lt.u32.totalorder %s4739_s16, %s4796_s7 }
 0x5b4   : > { %p3187_p5 = scmp.lt.u32.totalorder %s3185_s9, %s3181_s14  ;;  %p3189_p6 = scmp.lt.u32.totalorder %s3181_s14, %s4739_s16 }
 0x5b5   : > { %p3183_p10 = pnand %p3182_p4, %p4832_p9 }
 0x5b6   : > { %p3188_p7 = por %p3187_p5, %p3186_p0 }
 0x5b7   : > { %p3184_p11 = pneg %p3183_p10 }
 0x5b8   : > { %p3190_p12 = por %p3189_p6, %p3188_p7 }
 0x5ba   : > { %p3191_p13 = pnand %p3190_p12, %p3184_p11 }
 0x5bc   : > { %3194 = shalt.err (!%p3191_p13)
}
 0x5bd   : > { %s3266_s8 = smov 128  }
 0x5be   : > { %2718 = dma.vmem_to_hbm [thread:$0]  (%p4832_p9), %s4742_s17, 1024, %s4739_s16, %s2451_s30, %s3266_s8, %s3266_s8, %s3259_s15  }
 0x5bf PF: > { %s2479_s28 = sand.u32 1, %s3233_s24   ;;  %p4833_p1 = scmp.ne.s32.totalorder %s4809_s21, 0 }
 0x5c0   : > { %p4834_p3 = scmp.ge.s32.totalorder %s3245_s27, 2  ;;  %s2480_s13 = scalar_lea.sflag [#allocation4], %s2479_s28 }
 0x5c2   : > { %p2744_p2 = pnand %p4834_p3, %p4833_p1 }
 0x5c4   : > { %3228 = dma.done.wait (!%p2744_p2), %s2480_s13, 1024  }
 0x5c5   : > { %3230 = vsyncadd (!%p2744_p2), %s2480_s13, 4294966272  ;;  %p23_p8 = scmp.ge.s32.totalorder %s3491_s11, 4   ;;  %s4835_s24 = smov %s3237_s25 }
 0x5c6   : > { %s4836_s25 = smov %s3241_s26  ;;  %s4837_s26 = smov %s3502_s12 }
 0x5c7   : > { %s4838_s27 = smov %s3491_s11  ;;  %25 = sbr.rel (!%p23_p8) target bundleno = 8 (0x8), region = 117 }
 0x5ce   :  { %2485 = vsyncpa [#allocation3], 1 }
 0x5cf   :  { %2487 = vsyncpa [#allocation3 + $0x1], 1 }
 0x5d0   :  { %2488 = vsyncpa [#allocation6], 1 }
 0x5d1   :  { %2489 = vsyncpa [#allocation9], 1 }
 0x5d2   :  { %2490 = vsyncpa [#allocation12], 1 }
 0x5d3   :  { %2491 = vsyncpa [#allocation4], 1 }
 0x5d4   :  { %2493 = vsyncpa [#allocation4 + $0x1], 1 }

</bundles_post_ra>
